<compile_context>
chip_gen: v5e
topology: v5e:2x2
jax: 0.10.0
libtpu: 0.0.40
codegen_flags: <defaults>
</compile_context>

<pallas_src>
import functools

import jax
import jax.numpy as jnp
from jax import lax
from jax.experimental import pallas as pl
from jax.experimental.pallas import tpu as pltpu

EPS = 1e-5  # PyTorch nn.LayerNorm default eps


def _layernorm(x, g, b):
    # x: (R, C) f32, g/b: (1, C) f32
    mu = jnp.mean(x, axis=-1, keepdims=True)
    var = jnp.mean((x - mu) ** 2, axis=-1, keepdims=True)
    return (x - mu) * lax.rsqrt(var + EPS) * g + b


def _gelu_exact(x):
    # PyTorch nn.GELU default (erf formulation).  (tanh approx would move this
    # to the EUP but deviates slightly from the PyTorch reference.)
    return 0.5 * x * (1.0 + lax.erf(x * jnp.float32(0.7071067811865476)))


def encoder_kernel(slot_ref, x_ref, pos_ref,
                   n1g_ref, n1b_ref,
                   wqkv_ref, wproj_ref, bproj_ref,
                   n2g_ref, n2b_ref,
                   w1_ref, b1_ref, w2_ref, b2_ref,
                   out_ref,
                   x_scr, pv_scr,
                   *, num_heads, scale):
    """One transformer Block per grid step (grid axis = depth, 'arbitrary').

    Activations are carried across depth steps in `x_scr` (VMEM, f32); the
    per-depth weight slices are streamed in by the BlockSpec pipeline.
    `slot_ref` (scalar prefetch) is only consumed by the output index_map.
    """
    del slot_ref
    d = pl.program_id(0)

    @pl.when(d == 0)
    def _():
        x_scr[...] = x_ref[...].astype(jnp.float32)

    B, N, C = x_scr.shape
    H = num_heads
    hd = C // H

    # pos is re-added before every block: x = block(x + pos)
    x = (x_scr[...] + pos_ref[...].astype(jnp.float32)).reshape(B * N, C)

    # ---- Attention branch --------------------------------------------------
    h = _layernorm(x, n1g_ref[0], n1b_ref[0]).astype(jnp.bfloat16)
    qkv = jnp.dot(h, wqkv_ref[0], preferred_element_type=jnp.float32)  # (B*N, 3C)

    # Softmax scale applied to the f32 q slab (exact); one bf16 cast per slab
    # (hoisted out of the head loop).
    q = (qkv[:, 0:C] * scale).reshape(B, N, C).astype(jnp.bfloat16)
    k = qkv[:, C:2 * C].reshape(B, N, C).astype(jnp.bfloat16)
    v = qkv[:, 2 * C:3 * C].reshape(B, N, C).astype(jnp.bfloat16)

    # Static head loop; each iteration is batched over B (3-D einsums).
    for hh in range(H):
        cs = slice(hh * hd, (hh + 1) * hd)
        s = jnp.einsum('bqd,bkd->bqk', q[:, :, cs], k[:, :, cs],
                       preferred_element_type=jnp.float32)            # (B, N, N)
        s = s - jnp.max(s, axis=-1, keepdims=True)
        p = jnp.exp(s)
        p = p * pl.reciprocal(jnp.sum(p, axis=-1, keepdims=True), approx=True)
        # Lane-slice placement only; the (N,H,hd)->(N,C) assembly is free.
        pv_scr[:, :, cs] = jnp.einsum('bqk,bkd->bqd', p.astype(jnp.bfloat16),
                                      v[:, :, cs],
                                      preferred_element_type=jnp.float32)

    # Single full-K output projection over the whole (B*N, C) slab.
    attn = jnp.dot(pv_scr[...].reshape(B * N, C).astype(jnp.bfloat16),
                   wproj_ref[0], preferred_element_type=jnp.float32) + bproj_ref[0]
    x = x + attn

    # ---- MLP branch ---------------------------------------------------------
    h = _layernorm(x, n2g_ref[0], n2b_ref[0]).astype(jnp.bfloat16)
    h = jnp.dot(h, w1_ref[0], preferred_element_type=jnp.float32) + b1_ref[0]
    h = _gelu_exact(h)
    h = jnp.dot(h.astype(jnp.bfloat16), w2_ref[0],
                preferred_element_type=jnp.float32) + b2_ref[0]
    x = x + h

    xf = x.reshape(B, N, C)
    x_scr[...] = xf                        # carry to the next depth step
    out_ref[0] = xf.astype(out_ref.dtype)  # routed to its fetch slot (or overwritten)


def _rep_spec(shape):
    """Constant-index (resident) block covering the full array."""
    zeros = (0,) * len(shape)
    return pl.BlockSpec(shape, lambda d, tbl: zeros)


def _depth_spec(shape):
    """Select slice `d` of an array stacked along a leading depth axis."""
    zeros = (0,) * len(shape)
    return pl.BlockSpec((1,) + shape, lambda d, tbl: (d,) + zeros)


def run_encoder(x, pos, p, num_heads, fetch_idx):
    """Runs all `depth` blocks in one fused pallas_call.

    Returns (outs, fetched): outs has shape (len(fetched), B, N, C) holding the
    activations after each fetched block (fetch_idx within range, plus the
    final block).  Non-fetched blocks never generate HBM writeback traffic.
    """
    B, N, C = x.shape
    depth = p["wqkv"].shape[0]
    Hm = p["w1"].shape[-1]
    scale = float(C // num_heads) ** -0.5

    # slot_tbl[d] = output slot written at depth step d.  Non-fetched steps map
    # to the slot of the NEXT fetched block, so their (unused) value is simply
    # overwritten in VMEM before that slot is ever copied back to HBM.
    fetched = sorted({i for i in fetch_idx if i < depth} | {depth - 1})
    slot = [next(s for s, f in enumerate(fetched) if f >= d_) for d_ in range(depth)]
    slot_tbl = jnp.asarray(slot, dtype=jnp.int32)

    kernel = functools.partial(encoder_kernel, num_heads=num_heads, scale=scale)
    # NOTE(v7x): at larger batches, add a leading batch grid axis with
    # dimension_semantics=("parallel", "arbitrary") to use both TensorCores;
    # at B=2, N=16 the fully fused single-axis variant is the better trade.
    outs = pl.pallas_call(
        kernel,
        out_shape=jax.ShapeDtypeStruct((len(fetched), B, N, C), x.dtype),
        grid_spec=pltpu.PrefetchScalarGridSpec(
            num_scalar_prefetch=1,
            grid=(depth,),
            in_specs=[
                _rep_spec((B, N, C)),            # x (consumed only at d == 0)
                _rep_spec((B, N, C)),            # pos (re-added every block)
                _depth_spec((1, C)),             # norm1 gamma
                _depth_spec((1, C)),             # norm1 beta
                _depth_spec((C, 3 * C)),         # qkv weight (bf16)
                _depth_spec((C, C)),             # proj weight (bf16)
                _depth_spec((1, C)),             # proj bias
                _depth_spec((1, C)),             # norm2 gamma
                _depth_spec((1, C)),             # norm2 beta
                _depth_spec((C, Hm)),            # fc1 weight (bf16)
                _depth_spec((1, Hm)),            # fc1 bias
                _depth_spec((Hm, C)),            # fc2 weight (bf16)
                _depth_spec((1, C)),             # fc2 bias
            ],
            out_specs=pl.BlockSpec((1, B, N, C),
                                   lambda d, tbl: (tbl[d], 0, 0, 0)),
            scratch_shapes=[pltpu.VMEM((B, N, C), jnp.float32),   # x carry
                            pltpu.VMEM((B, N, C), jnp.float32)],  # per-head PV slab
        ),
        compiler_params=pltpu.CompilerParams(
            dimension_semantics=("arbitrary",)),
    )(slot_tbl, x, pos,
      p["n1g"], p["n1b"], p["wqkv"], p["wproj"], p["bproj"],
      p["n2g"], p["n2b"], p["w1"], p["b1"], p["w2"], p["b2"])
    return outs, fetched


def transformer_encoder(x, pos, params, num_heads, fetch_idx=(3, 7, 11)):
    """Matches TransformerEncoder.forward: returns (x, feature_list)."""
    depth = params["wqkv"].shape[0]
    outs, fetched = run_encoder(x, pos, params, num_heads, fetch_idx)
    x_out = outs[fetched.index(depth - 1)]
    feature_list = [outs[fetched.index(i)] for i in fetch_idx if i < depth]
    return x_out, feature_list


def xavier_uniform(key, fan_in, fan_out, dtype=jnp.float32):
    limit = (6.0 / (fan_in + fan_out)) ** 0.5
    return jax.random.uniform(key, (fan_in, fan_out), dtype, -limit, limit)


def init_block_params(key, dim, mlp_ratio):
    hidden = int(dim * mlp_ratio)
    ks = jax.random.split(key, 4)
    return {
        "n1g": jnp.ones((1, dim), jnp.float32),
        "n1b": jnp.zeros((1, dim), jnp.float32),
        "wqkv": xavier_uniform(ks[0], dim, 3 * dim),      # qkv_bias=False
        "wproj": xavier_uniform(ks[1], dim, dim),
        "bproj": jnp.zeros((1, dim), jnp.float32),
        "n2g": jnp.ones((1, dim), jnp.float32),
        "n2b": jnp.zeros((1, dim), jnp.float32),
        "w1": xavier_uniform(ks[2], dim, hidden),
        "b1": jnp.zeros((1, hidden), jnp.float32),
        "w2": xavier_uniform(ks[3], hidden, dim),
        "b2": jnp.zeros((1, dim), jnp.float32),
    }


def stack_params(blocks):
    """Stack per-block params along depth; store matmul weights in bf16
    (f32 accumulation in the kernel); LayerNorm params and biases stay f32."""
    stk = lambda name: jnp.stack([b[name] for b in blocks], axis=0)
    return {
        "n1g": stk("n1g"), "n1b": stk("n1b"),
        "wqkv": stk("wqkv").astype(jnp.bfloat16),
        "wproj": stk("wproj").astype(jnp.bfloat16),
        "bproj": stk("bproj"),
        "n2g": stk("n2g"), "n2b": stk("n2b"),
        "w1": stk("w1").astype(jnp.bfloat16), "b1": stk("b1"),
        "w2": stk("w2").astype(jnp.bfloat16), "b2": stk("b2"),
    }


if __name__ == "__main__":
    # Small shapes consistent with the module (embed_dim divisible by num_heads).
    B, N, C = 2, 16, 128
    num_heads = 8
    depth = 4            # module default depth
    mlp_ratio = 4.0

    key = jax.random.PRNGKey(0)
    kx, kpos, kparams = jax.random.split(key, 3)

    x = jax.random.normal(kx, (B, N, C), jnp.float32)
    pos = jax.random.normal(kpos, (B, N, C), jnp.float32)

    block_keys = jax.random.split(kparams, depth)
    blocks = [init_block_params(block_keys[i], C, mlp_ratio) for i in range(depth)]
    params = stack_params(blocks)

    x_out, feats = transformer_encoder(x, pos, params, num_heads)
    x_out = jax.block_until_ready(x_out)

    assert x_out.shape == (B, N, C)
    assert bool(jnp.all(jnp.isfinite(x_out)))
    for f in feats:
        assert f.shape == (B, N, C)
        assert bool(jnp.all(jnp.isfinite(f)))
    print("KERNEL_OK")
</pallas_src>

<mosaic_0001>
module attributes {stable_mosaic.version = 11 : i64} {
  func.func @encoder_kernel(%arg0: i32, %arg1: memref<4xi32, #tpu.memory_space<smem>>, %arg2: memref<2x16x128xf32, #tpu.memory_space<vmem>>, %arg3: memref<2x16x128xf32, #tpu.memory_space<vmem>>, %arg4: memref<1x1x128xf32, #tpu.memory_space<vmem>>, %arg5: memref<1x1x128xf32, #tpu.memory_space<vmem>>, %arg6: memref<1x128x384xbf16, #tpu.memory_space<vmem>>, %arg7: memref<1x128x128xbf16, #tpu.memory_space<vmem>>, %arg8: memref<1x1x128xf32, #tpu.memory_space<vmem>>, %arg9: memref<1x1x128xf32, #tpu.memory_space<vmem>>, %arg10: memref<1x1x128xf32, #tpu.memory_space<vmem>>, %arg11: memref<1x128x512xbf16, #tpu.memory_space<vmem>>, %arg12: memref<1x1x512xf32, #tpu.memory_space<vmem>>, %arg13: memref<1x512x128xbf16, #tpu.memory_space<vmem>>, %arg14: memref<1x1x128xf32, #tpu.memory_space<vmem>>, %arg15: memref<1x2x16x128xf32, #tpu.memory_space<vmem>>, %arg16: memref<2x16x128xf32, #tpu.memory_space<vmem>>, %arg17: memref<2x16x128xf32, #tpu.memory_space<vmem>>) attributes {dimension_semantics = [#tpu.dimension_semantics<arbitrary>], iteration_bounds = array<i64: 4>, scalar_prefetch = 1 : i64, scratch_operands = 2 : i64, tpu.core_type = #tpu.core_type<tc>, window_params = [{pipeline_mode = #tpu.pipeline_mode<synchronous>, transform_indices = @transform_0, window_bounds = array<i64: 2, 16, 128>}, {pipeline_mode = #tpu.pipeline_mode<synchronous>, transform_indices = @transform_1, window_bounds = array<i64: 2, 16, 128>}, {transform_indices = @transform_2, window_bounds = array<i64: 1, 1, 128>}, {transform_indices = @transform_3, window_bounds = array<i64: 1, 1, 128>}, {transform_indices = @transform_4, window_bounds = array<i64: 1, 128, 384>}, {transform_indices = @transform_5, window_bounds = array<i64: 1, 128, 128>}, {transform_indices = @transform_6, window_bounds = array<i64: 1, 1, 128>}, {transform_indices = @transform_7, window_bounds = array<i64: 1, 1, 128>}, {transform_indices = @transform_8, window_bounds = array<i64: 1, 1, 128>}, {transform_indices = @transform_9, window_bounds = array<i64: 1, 128, 512>}, {transform_indices = @transform_10, window_bounds = array<i64: 1, 1, 512>}, {transform_indices = @transform_11, window_bounds = array<i64: 1, 512, 128>}, {transform_indices = @transform_12, window_bounds = array<i64: 1, 1, 128>}, {transform_indices = @transform_13, window_bounds = array<i64: 1, 2, 16, 128>}]} {
    %c0_i32 = arith.constant 0 : i32
    %0 = arith.cmpi eq, %arg0, %c0_i32 : i32
    %1 = arith.extui %0 : i1 to i32
    %c0_i32_0 = arith.constant 0 : i32
    %2 = arith.cmpi ne, %1, %c0_i32_0 : i32
    scf.if %2 {
      %c0_115 = arith.constant 0 : index
      %c0_116 = arith.constant 0 : index
      %c0_117 = arith.constant 0 : index
      %251 = vector.load %arg2[%c0_115, %c0_116, %c0_117] : memref<2x16x128xf32, #tpu.memory_space<vmem>>, vector<2x16x128xf32>
      %c0_118 = arith.constant 0 : index
      %c0_119 = arith.constant 0 : index
      %c0_120 = arith.constant 0 : index
      %252 = vector.load %arg16[%c0_118, %c0_119, %c0_120] : memref<2x16x128xf32, #tpu.memory_space<vmem>>, vector<2x16x128xf32>
      tpu.vector_store %arg16[%c0_118, %c0_119, %c0_120], %251 {strides = array<i32>} : memref<2x16x128xf32, #tpu.memory_space<vmem>>, vector<2x16x128xf32>,
    } else {
    }
    %c0 = arith.constant 0 : index
    %c0_1 = arith.constant 0 : index
    %c0_2 = arith.constant 0 : index
    %3 = vector.load %arg16[%c0, %c0_1, %c0_2] : memref<2x16x128xf32, #tpu.memory_space<vmem>>, vector<2x16x128xf32>
    %c0_3 = arith.constant 0 : index
    %c0_4 = arith.constant 0 : index
    %c0_5 = arith.constant 0 : index
    %4 = vector.load %arg3[%c0_3, %c0_4, %c0_5] : memref<2x16x128xf32, #tpu.memory_space<vmem>>, vector<2x16x128xf32>
    %5 = arith.addf %3, %4 : vector<2x16x128xf32>
    %6 = vector.shape_cast %5 : vector<2x16x128xf32> to vector<32x128xf32>
    %c0_6 = arith.constant 0 : index
    %c0_7 = arith.constant 0 : index
    %c0_8 = arith.constant 0 : index
    %7 = vector.load %arg4[%c0_6, %c0_7, %c0_8] : memref<1x1x128xf32, #tpu.memory_space<vmem>>, vector<1x1x128xf32>
    %8 = vector.shape_cast %7 : vector<1x1x128xf32> to vector<1x128xf32>
    %c0_9 = arith.constant 0 : index
    %c0_10 = arith.constant 0 : index
    %c0_11 = arith.constant 0 : index
    %9 = vector.load %arg5[%c0_9, %c0_10, %c0_11] : memref<1x1x128xf32, #tpu.memory_space<vmem>>, vector<1x1x128xf32>
    %10 = vector.shape_cast %9 : vector<1x1x128xf32> to vector<1x128xf32>
    %cst = arith.constant dense<0.000000e+00> : vector<32xf32>
    %11 = vector.multi_reduction <add>, %6, %cst [1] : vector<32x128xf32> to vector<32xf32>
    %12 = vector.shape_cast %11 : vector<32xf32> to vector<32x1xf32>
    %cst_12 = arith.constant 1.280000e+02 : f32
    %13 = vector.broadcast %cst_12 : f32 to vector<32x1xf32>
    %14 = arith.divf %12, %13 : vector<32x1xf32>
    %15 = vector.broadcast %14 : vector<32x1xf32> to vector<32x128xf32>
    %16 = arith.subf %6, %15 : vector<32x128xf32>
    %17 = arith.mulf %16, %16 : vector<32x128xf32>
    %cst_13 = arith.constant dense<0.000000e+00> : vector<32xf32>
    %18 = vector.multi_reduction <add>, %17, %cst_13 [1] : vector<32x128xf32> to vector<32xf32>
    %19 = vector.shape_cast %18 : vector<32xf32> to vector<32x1xf32>
    %cst_14 = arith.constant 1.280000e+02 : f32
    %20 = vector.broadcast %cst_14 : f32 to vector<32x1xf32>
    %21 = arith.divf %19, %20 : vector<32x1xf32>
    %22 = vector.broadcast %14 : vector<32x1xf32> to vector<32x128xf32>
    %23 = arith.subf %6, %22 : vector<32x128xf32>
    %cst_15 = arith.constant 9.99999974E-6 : f32
    %24 = vector.broadcast %cst_15 : f32 to vector<32x1xf32>
    %25 = arith.addf %21, %24 : vector<32x1xf32>
    %26 = math.rsqrt %25 : vector<32x1xf32>
    %27 = vector.broadcast %26 : vector<32x1xf32> to vector<32x128xf32>
    %28 = arith.mulf %23, %27 : vector<32x128xf32>
    %29 = vector.broadcast %8 : vector<1x128xf32> to vector<32x128xf32>
    %30 = arith.mulf %28, %29 : vector<32x128xf32>
    %31 = vector.broadcast %10 : vector<1x128xf32> to vector<32x128xf32>
    %32 = arith.addf %30, %31 : vector<32x128xf32>
    %33 = arith.truncf %32 : vector<32x128xf32> to vector<32x128xbf16>
    %c0_16 = arith.constant 0 : index
    %c0_17 = arith.constant 0 : index
    %c0_18 = arith.constant 0 : index
    %34 = vector.load %arg6[%c0_16, %c0_17, %c0_18] : memref<1x128x384xbf16, #tpu.memory_space<vmem>>, vector<1x128x384xbf16>
    %35 = vector.shape_cast %34 : vector<1x128x384xbf16> to vector<128x384xbf16>
    %cst_19 = arith.constant dense<0.000000e+00> : vector<32x384xf32>
    %36 = tpu.matmul %33, %35, %cst_19 {dimension_numbers = #tpu.dot_dimension_numbers<[1], [0], [0], [1], [0, 0, 1, 1], [], []>} : vector<32x128xbf16>, vector<128x384xbf16>, vector<32x384xf32> -> vector<32x384xf32>
    %37 = vector.extract_strided_slice %36 {offsets = [0, 0], sizes = [32, 128], strides = [1, 1]} : vector<32x384xf32> to vector<32x128xf32>
    %cst_20 = arith.constant 2.500000e-01 : f32
    %38 = vector.broadcast %cst_20 : f32 to vector<32x128xf32>
    %39 = arith.mulf %37, %38 : vector<32x128xf32>
    %40 = vector.shape_cast %39 : vector<32x128xf32> to vector<2x16x128xf32>
    %41 = arith.truncf %40 : vector<2x16x128xf32> to vector<2x16x128xbf16>
    %42 = vector.extract_strided_slice %36 {offsets = [0, 128], sizes = [32, 128], strides = [1, 1]} : vector<32x384xf32> to vector<32x128xf32>
    %43 = vector.shape_cast %42 : vector<32x128xf32> to vector<2x16x128xf32>
    %44 = arith.truncf %43 : vector<2x16x128xf32> to vector<2x16x128xbf16>
    %45 = vector.extract_strided_slice %36 {offsets = [0, 256], sizes = [32, 128], strides = [1, 1]} : vector<32x384xf32> to vector<32x128xf32>
    %46 = vector.shape_cast %45 : vector<32x128xf32> to vector<2x16x128xf32>
    %47 = arith.truncf %46 : vector<2x16x128xf32> to vector<2x16x128xbf16>
    %48 = vector.extract_strided_slice %41 {offsets = [0, 0, 0], sizes = [2, 16, 16], strides = [1, 1, 1]} : vector<2x16x128xbf16> to vector<2x16x16xbf16>
    %49 = vector.extract_strided_slice %44 {offsets = [0, 0, 0], sizes = [2, 16, 16], strides = [1, 1, 1]} : vector<2x16x128xbf16> to vector<2x16x16xbf16>
    "tpu.trace_start"() <{level = 10 : i32, message = "bqd,bkd->bqk"}> : () -> ()
    %cst_21 = arith.constant dense<0.000000e+00> : vector<2x16x16xf32>
    %50 = tpu.matmul %48, %49, %cst_21 {dimension_numbers = #tpu.dot_dimension_numbers<[2], [2], [1], [1], [0, 0, 0, 1, 1, 1], [0], [0]>} : vector<2x16x16xbf16>, vector<2x16x16xbf16>, vector<2x16x16xf32> -> vector<2x16x16xf32>
    "tpu.trace_stop"() : () -> ()
    %cst_22 = arith.constant dense<0xFF800000> : vector<2x16xf32>
    %51 = vector.multi_reduction <maximumf>, %50, %cst_22 [2] : vector<2x16x16xf32> to vector<2x16xf32>
    %52 = vector.shape_cast %51 : vector<2x16xf32> to vector<2x16x1xf32>
    %53 = vector.broadcast %52 : vector<2x16x1xf32> to vector<2x16x16xf32>
    %54 = arith.subf %50, %53 : vector<2x16x16xf32>
    %55 = math.exp %54 : vector<2x16x16xf32>
    %cst_23 = arith.constant dense<0.000000e+00> : vector<2x16xf32>
    %56 = vector.multi_reduction <add>, %55, %cst_23 [2] : vector<2x16x16xf32> to vector<2x16xf32>
    %57 = vector.shape_cast %56 : vector<2x16xf32> to vector<2x16x1xf32>
    %58 = tpu.reciprocal %57 {approx = true} : vector<2x16x1xf32> -> vector<2x16x1xf32>
    %59 = vector.broadcast %58 : vector<2x16x1xf32> to vector<2x16x16xf32>
    %60 = arith.mulf %55, %59 : vector<2x16x16xf32>
    %61 = arith.truncf %60 : vector<2x16x16xf32> to vector<2x16x16xbf16>
    %62 = vector.extract_strided_slice %47 {offsets = [0, 0, 0], sizes = [2, 16, 16], strides = [1, 1, 1]} : vector<2x16x128xbf16> to vector<2x16x16xbf16>
    "tpu.trace_start"() <{level = 10 : i32, message = "bqk,bkd->bqd"}> : () -> ()
    %cst_24 = arith.constant dense<0.000000e+00> : vector<2x16x16xf32>
    %63 = tpu.matmul %61, %62, %cst_24 {dimension_numbers = #tpu.dot_dimension_numbers<[2], [1], [1], [2], [0, 0, 0, 1, 1, 2], [0], [0]>} : vector<2x16x16xbf16>, vector<2x16x16xbf16>, vector<2x16x16xf32> -> vector<2x16x16xf32>
    "tpu.trace_stop"() : () -> ()
    %c0_25 = arith.constant 0 : index
    %c0_26 = arith.constant 0 : index
    %c0_27 = arith.constant 0 : index
    %64 = vector.load %arg17[%c0_25, %c0_26, %c0_27] : memref<2x16x128xf32, #tpu.memory_space<vmem>>, vector<2x16x16xf32>
    tpu.vector_store %arg17[%c0_25, %c0_26, %c0_27], %63 {strides = array<i32>} : memref<2x16x128xf32, #tpu.memory_space<vmem>>, vector<2x16x16xf32>,
    %65 = vector.extract_strided_slice %41 {offsets = [0, 0, 16], sizes = [2, 16, 16], strides = [1, 1, 1]} : vector<2x16x128xbf16> to vector<2x16x16xbf16>
    %66 = vector.extract_strided_slice %44 {offsets = [0, 0, 16], sizes = [2, 16, 16], strides = [1, 1, 1]} : vector<2x16x128xbf16> to vector<2x16x16xbf16>
    "tpu.trace_start"() <{level = 10 : i32, message = "bqd,bkd->bqk"}> : () -> ()
    %cst_28 = arith.constant dense<0.000000e+00> : vector<2x16x16xf32>
    %67 = tpu.matmul %65, %66, %cst_28 {dimension_numbers = #tpu.dot_dimension_numbers<[2], [2], [1], [1], [0, 0, 0, 1, 1, 1], [0], [0]>} : vector<2x16x16xbf16>, vector<2x16x16xbf16>, vector<2x16x16xf32> -> vector<2x16x16xf32>
    "tpu.trace_stop"() : () -> ()
    %cst_29 = arith.constant dense<0xFF800000> : vector<2x16xf32>
    %68 = vector.multi_reduction <maximumf>, %67, %cst_29 [2] : vector<2x16x16xf32> to vector<2x16xf32>
    %69 = vector.shape_cast %68 : vector<2x16xf32> to vector<2x16x1xf32>
    %70 = vector.broadcast %69 : vector<2x16x1xf32> to vector<2x16x16xf32>
    %71 = arith.subf %67, %70 : vector<2x16x16xf32>
    %72 = math.exp %71 : vector<2x16x16xf32>
    %cst_30 = arith.constant dense<0.000000e+00> : vector<2x16xf32>
    %73 = vector.multi_reduction <add>, %72, %cst_30 [2] : vector<2x16x16xf32> to vector<2x16xf32>
    %74 = vector.shape_cast %73 : vector<2x16xf32> to vector<2x16x1xf32>
    %75 = tpu.reciprocal %74 {approx = true} : vector<2x16x1xf32> -> vector<2x16x1xf32>
    %76 = vector.broadcast %75 : vector<2x16x1xf32> to vector<2x16x16xf32>
    %77 = arith.mulf %72, %76 : vector<2x16x16xf32>
    %78 = arith.truncf %77 : vector<2x16x16xf32> to vector<2x16x16xbf16>
    %79 = vector.extract_strided_slice %47 {offsets = [0, 0, 16], sizes = [2, 16, 16], strides = [1, 1, 1]} : vector<2x16x128xbf16> to vector<2x16x16xbf16>
    "tpu.trace_start"() <{level = 10 : i32, message = "bqk,bkd->bqd"}> : () -> ()
    %cst_31 = arith.constant dense<0.000000e+00> : vector<2x16x16xf32>
    %80 = tpu.matmul %78, %79, %cst_31 {dimension_numbers = #tpu.dot_dimension_numbers<[2], [1], [1], [2], [0, 0, 0, 1, 1, 2], [0], [0]>} : vector<2x16x16xbf16>, vector<2x16x16xbf16>, vector<2x16x16xf32> -> vector<2x16x16xf32>
    "tpu.trace_stop"() : () -> ()
    %c0_32 = arith.constant 0 : index
    %c0_33 = arith.constant 0 : index
    %c16 = arith.constant 16 : index
    %81 = vector.load %arg17[%c0_32, %c0_33, %c16] : memref<2x16x128xf32, #tpu.memory_space<vmem>>, vector<2x16x16xf32>
    tpu.vector_store %arg17[%c0_32, %c0_33, %c16], %80 {strides = array<i32>} : memref<2x16x128xf32, #tpu.memory_space<vmem>>, vector<2x16x16xf32>,
    %82 = vector.extract_strided_slice %41 {offsets = [0, 0, 32], sizes = [2, 16, 16], strides = [1, 1, 1]} : vector<2x16x128xbf16> to vector<2x16x16xbf16>
    %83 = vector.extract_strided_slice %44 {offsets = [0, 0, 32], sizes = [2, 16, 16], strides = [1, 1, 1]} : vector<2x16x128xbf16> to vector<2x16x16xbf16>
    "tpu.trace_start"() <{level = 10 : i32, message = "bqd,bkd->bqk"}> : () -> ()
    %cst_34 = arith.constant dense<0.000000e+00> : vector<2x16x16xf32>
    %84 = tpu.matmul %82, %83, %cst_34 {dimension_numbers = #tpu.dot_dimension_numbers<[2], [2], [1], [1], [0, 0, 0, 1, 1, 1], [0], [0]>} : vector<2x16x16xbf16>, vector<2x16x16xbf16>, vector<2x16x16xf32> -> vector<2x16x16xf32>
    "tpu.trace_stop"() : () -> ()
    %cst_35 = arith.constant dense<0xFF800000> : vector<2x16xf32>
    %85 = vector.multi_reduction <maximumf>, %84, %cst_35 [2] : vector<2x16x16xf32> to vector<2x16xf32>
    %86 = vector.shape_cast %85 : vector<2x16xf32> to vector<2x16x1xf32>
    %87 = vector.broadcast %86 : vector<2x16x1xf32> to vector<2x16x16xf32>
    %88 = arith.subf %84, %87 : vector<2x16x16xf32>
    %89 = math.exp %88 : vector<2x16x16xf32>
    %cst_36 = arith.constant dense<0.000000e+00> : vector<2x16xf32>
    %90 = vector.multi_reduction <add>, %89, %cst_36 [2] : vector<2x16x16xf32> to vector<2x16xf32>
    %91 = vector.shape_cast %90 : vector<2x16xf32> to vector<2x16x1xf32>
    %92 = tpu.reciprocal %91 {approx = true} : vector<2x16x1xf32> -> vector<2x16x1xf32>
    %93 = vector.broadcast %92 : vector<2x16x1xf32> to vector<2x16x16xf32>
    %94 = arith.mulf %89, %93 : vector<2x16x16xf32>
    %95 = arith.truncf %94 : vector<2x16x16xf32> to vector<2x16x16xbf16>
    %96 = vector.extract_strided_slice %47 {offsets = [0, 0, 32], sizes = [2, 16, 16], strides = [1, 1, 1]} : vector<2x16x128xbf16> to vector<2x16x16xbf16>
    "tpu.trace_start"() <{level = 10 : i32, message = "bqk,bkd->bqd"}> : () -> ()
    %cst_37 = arith.constant dense<0.000000e+00> : vector<2x16x16xf32>
    %97 = tpu.matmul %95, %96, %cst_37 {dimension_numbers = #tpu.dot_dimension_numbers<[2], [1], [1], [2], [0, 0, 0, 1, 1, 2], [0], [0]>} : vector<2x16x16xbf16>, vector<2x16x16xbf16>, vector<2x16x16xf32> -> vector<2x16x16xf32>
    "tpu.trace_stop"() : () -> ()
    %c0_38 = arith.constant 0 : index
    %c0_39 = arith.constant 0 : index
    %c32 = arith.constant 32 : index
    %98 = vector.load %arg17[%c0_38, %c0_39, %c32] : memref<2x16x128xf32, #tpu.memory_space<vmem>>, vector<2x16x16xf32>
    tpu.vector_store %arg17[%c0_38, %c0_39, %c32], %97 {strides = array<i32>} : memref<2x16x128xf32, #tpu.memory_space<vmem>>, vector<2x16x16xf32>,
    %99 = vector.extract_strided_slice %41 {offsets = [0, 0, 48], sizes = [2, 16, 16], strides = [1, 1, 1]} : vector<2x16x128xbf16> to vector<2x16x16xbf16>
    %100 = vector.extract_strided_slice %44 {offsets = [0, 0, 48], sizes = [2, 16, 16], strides = [1, 1, 1]} : vector<2x16x128xbf16> to vector<2x16x16xbf16>
    "tpu.trace_start"() <{level = 10 : i32, message = "bqd,bkd->bqk"}> : () -> ()
    %cst_40 = arith.constant dense<0.000000e+00> : vector<2x16x16xf32>
    %101 = tpu.matmul %99, %100, %cst_40 {dimension_numbers = #tpu.dot_dimension_numbers<[2], [2], [1], [1], [0, 0, 0, 1, 1, 1], [0], [0]>} : vector<2x16x16xbf16>, vector<2x16x16xbf16>, vector<2x16x16xf32> -> vector<2x16x16xf32>
    "tpu.trace_stop"() : () -> ()
    %cst_41 = arith.constant dense<0xFF800000> : vector<2x16xf32>
    %102 = vector.multi_reduction <maximumf>, %101, %cst_41 [2] : vector<2x16x16xf32> to vector<2x16xf32>
    %103 = vector.shape_cast %102 : vector<2x16xf32> to vector<2x16x1xf32>
    %104 = vector.broadcast %103 : vector<2x16x1xf32> to vector<2x16x16xf32>
    %105 = arith.subf %101, %104 : vector<2x16x16xf32>
    %106 = math.exp %105 : vector<2x16x16xf32>
    %cst_42 = arith.constant dense<0.000000e+00> : vector<2x16xf32>
    %107 = vector.multi_reduction <add>, %106, %cst_42 [2] : vector<2x16x16xf32> to vector<2x16xf32>
    %108 = vector.shape_cast %107 : vector<2x16xf32> to vector<2x16x1xf32>
    %109 = tpu.reciprocal %108 {approx = true} : vector<2x16x1xf32> -> vector<2x16x1xf32>
    %110 = vector.broadcast %109 : vector<2x16x1xf32> to vector<2x16x16xf32>
    %111 = arith.mulf %106, %110 : vector<2x16x16xf32>
    %112 = arith.truncf %111 : vector<2x16x16xf32> to vector<2x16x16xbf16>
    %113 = vector.extract_strided_slice %47 {offsets = [0, 0, 48], sizes = [2, 16, 16], strides = [1, 1, 1]} : vector<2x16x128xbf16> to vector<2x16x16xbf16>
    "tpu.trace_start"() <{level = 10 : i32, message = "bqk,bkd->bqd"}> : () -> ()
    %cst_43 = arith.constant dense<0.000000e+00> : vector<2x16x16xf32>
    %114 = tpu.matmul %112, %113, %cst_43 {dimension_numbers = #tpu.dot_dimension_numbers<[2], [1], [1], [2], [0, 0, 0, 1, 1, 2], [0], [0]>} : vector<2x16x16xbf16>, vector<2x16x16xbf16>, vector<2x16x16xf32> -> vector<2x16x16xf32>
    "tpu.trace_stop"() : () -> ()
    %c0_44 = arith.constant 0 : index
    %c0_45 = arith.constant 0 : index
    %c48 = arith.constant 48 : index
    %115 = vector.load %arg17[%c0_44, %c0_45, %c48] : memref<2x16x128xf32, #tpu.memory_space<vmem>>, vector<2x16x16xf32>
    tpu.vector_store %arg17[%c0_44, %c0_45, %c48], %114 {strides = array<i32>} : memref<2x16x128xf32, #tpu.memory_space<vmem>>, vector<2x16x16xf32>,
    %116 = vector.extract_strided_slice %41 {offsets = [0, 0, 64], sizes = [2, 16, 16], strides = [1, 1, 1]} : vector<2x16x128xbf16> to vector<2x16x16xbf16>
    %117 = vector.extract_strided_slice %44 {offsets = [0, 0, 64], sizes = [2, 16, 16], strides = [1, 1, 1]} : vector<2x16x128xbf16> to vector<2x16x16xbf16>
    "tpu.trace_start"() <{level = 10 : i32, message = "bqd,bkd->bqk"}> : () -> ()
    %cst_46 = arith.constant dense<0.000000e+00> : vector<2x16x16xf32>
    %118 = tpu.matmul %116, %117, %cst_46 {dimension_numbers = #tpu.dot_dimension_numbers<[2], [2], [1], [1], [0, 0, 0, 1, 1, 1], [0], [0]>} : vector<2x16x16xbf16>, vector<2x16x16xbf16>, vector<2x16x16xf32> -> vector<2x16x16xf32>
    "tpu.trace_stop"() : () -> ()
    %cst_47 = arith.constant dense<0xFF800000> : vector<2x16xf32>
    %119 = vector.multi_reduction <maximumf>, %118, %cst_47 [2] : vector<2x16x16xf32> to vector<2x16xf32>
    %120 = vector.shape_cast %119 : vector<2x16xf32> to vector<2x16x1xf32>
    %121 = vector.broadcast %120 : vector<2x16x1xf32> to vector<2x16x16xf32>
    %122 = arith.subf %118, %121 : vector<2x16x16xf32>
    %123 = math.exp %122 : vector<2x16x16xf32>
    %cst_48 = arith.constant dense<0.000000e+00> : vector<2x16xf32>
    %124 = vector.multi_reduction <add>, %123, %cst_48 [2] : vector<2x16x16xf32> to vector<2x16xf32>
    %125 = vector.shape_cast %124 : vector<2x16xf32> to vector<2x16x1xf32>
    %126 = tpu.reciprocal %125 {approx = true} : vector<2x16x1xf32> -> vector<2x16x1xf32>
    %127 = vector.broadcast %126 : vector<2x16x1xf32> to vector<2x16x16xf32>
    %128 = arith.mulf %123, %127 : vector<2x16x16xf32>
    %129 = arith.truncf %128 : vector<2x16x16xf32> to vector<2x16x16xbf16>
    %130 = vector.extract_strided_slice %47 {offsets = [0, 0, 64], sizes = [2, 16, 16], strides = [1, 1, 1]} : vector<2x16x128xbf16> to vector<2x16x16xbf16>
    "tpu.trace_start"() <{level = 10 : i32, message = "bqk,bkd->bqd"}> : () -> ()
    %cst_49 = arith.constant dense<0.000000e+00> : vector<2x16x16xf32>
    %131 = tpu.matmul %129, %130, %cst_49 {dimension_numbers = #tpu.dot_dimension_numbers<[2], [1], [1], [2], [0, 0, 0, 1, 1, 2], [0], [0]>} : vector<2x16x16xbf16>, vector<2x16x16xbf16>, vector<2x16x16xf32> -> vector<2x16x16xf32>
    "tpu.trace_stop"() : () -> ()
    %c0_50 = arith.constant 0 : index
    %c0_51 = arith.constant 0 : index
    %c64 = arith.constant 64 : index
    %132 = vector.load %arg17[%c0_50, %c0_51, %c64] : memref<2x16x128xf32, #tpu.memory_space<vmem>>, vector<2x16x16xf32>
    tpu.vector_store %arg17[%c0_50, %c0_51, %c64], %131 {strides = array<i32>} : memref<2x16x128xf32, #tpu.memory_space<vmem>>, vector<2x16x16xf32>,
    %133 = vector.extract_strided_slice %41 {offsets = [0, 0, 80], sizes = [2, 16, 16], strides = [1, 1, 1]} : vector<2x16x128xbf16> to vector<2x16x16xbf16>
    %134 = vector.extract_strided_slice %44 {offsets = [0, 0, 80], sizes = [2, 16, 16], strides = [1, 1, 1]} : vector<2x16x128xbf16> to vector<2x16x16xbf16>
    "tpu.trace_start"() <{level = 10 : i32, message = "bqd,bkd->bqk"}> : () -> ()
    %cst_52 = arith.constant dense<0.000000e+00> : vector<2x16x16xf32>
    %135 = tpu.matmul %133, %134, %cst_52 {dimension_numbers = #tpu.dot_dimension_numbers<[2], [2], [1], [1], [0, 0, 0, 1, 1, 1], [0], [0]>} : vector<2x16x16xbf16>, vector<2x16x16xbf16>, vector<2x16x16xf32> -> vector<2x16x16xf32>
    "tpu.trace_stop"() : () -> ()
    %cst_53 = arith.constant dense<0xFF800000> : vector<2x16xf32>
    %136 = vector.multi_reduction <maximumf>, %135, %cst_53 [2] : vector<2x16x16xf32> to vector<2x16xf32>
    %137 = vector.shape_cast %136 : vector<2x16xf32> to vector<2x16x1xf32>
    %138 = vector.broadcast %137 : vector<2x16x1xf32> to vector<2x16x16xf32>
    %139 = arith.subf %135, %138 : vector<2x16x16xf32>
    %140 = math.exp %139 : vector<2x16x16xf32>
    %cst_54 = arith.constant dense<0.000000e+00> : vector<2x16xf32>
    %141 = vector.multi_reduction <add>, %140, %cst_54 [2] : vector<2x16x16xf32> to vector<2x16xf32>
    %142 = vector.shape_cast %141 : vector<2x16xf32> to vector<2x16x1xf32>
    %143 = tpu.reciprocal %142 {approx = true} : vector<2x16x1xf32> -> vector<2x16x1xf32>
    %144 = vector.broadcast %143 : vector<2x16x1xf32> to vector<2x16x16xf32>
    %145 = arith.mulf %140, %144 : vector<2x16x16xf32>
    %146 = arith.truncf %145 : vector<2x16x16xf32> to vector<2x16x16xbf16>
    %147 = vector.extract_strided_slice %47 {offsets = [0, 0, 80], sizes = [2, 16, 16], strides = [1, 1, 1]} : vector<2x16x128xbf16> to vector<2x16x16xbf16>
    "tpu.trace_start"() <{level = 10 : i32, message = "bqk,bkd->bqd"}> : () -> ()
    %cst_55 = arith.constant dense<0.000000e+00> : vector<2x16x16xf32>
    %148 = tpu.matmul %146, %147, %cst_55 {dimension_numbers = #tpu.dot_dimension_numbers<[2], [1], [1], [2], [0, 0, 0, 1, 1, 2], [0], [0]>} : vector<2x16x16xbf16>, vector<2x16x16xbf16>, vector<2x16x16xf32> -> vector<2x16x16xf32>
    "tpu.trace_stop"() : () -> ()
    %c0_56 = arith.constant 0 : index
    %c0_57 = arith.constant 0 : index
    %c80 = arith.constant 80 : index
    %149 = vector.load %arg17[%c0_56, %c0_57, %c80] : memref<2x16x128xf32, #tpu.memory_space<vmem>>, vector<2x16x16xf32>
    tpu.vector_store %arg17[%c0_56, %c0_57, %c80], %148 {strides = array<i32>} : memref<2x16x128xf32, #tpu.memory_space<vmem>>, vector<2x16x16xf32>,
    %150 = vector.extract_strided_slice %41 {offsets = [0, 0, 96], sizes = [2, 16, 16], strides = [1, 1, 1]} : vector<2x16x128xbf16> to vector<2x16x16xbf16>
    %151 = vector.extract_strided_slice %44 {offsets = [0, 0, 96], sizes = [2, 16, 16], strides = [1, 1, 1]} : vector<2x16x128xbf16> to vector<2x16x16xbf16>
    "tpu.trace_start"() <{level = 10 : i32, message = "bqd,bkd->bqk"}> : () -> ()
    %cst_58 = arith.constant dense<0.000000e+00> : vector<2x16x16xf32>
    %152 = tpu.matmul %150, %151, %cst_58 {dimension_numbers = #tpu.dot_dimension_numbers<[2], [2], [1], [1], [0, 0, 0, 1, 1, 1], [0], [0]>} : vector<2x16x16xbf16>, vector<2x16x16xbf16>, vector<2x16x16xf32> -> vector<2x16x16xf32>
    "tpu.trace_stop"() : () -> ()
    %cst_59 = arith.constant dense<0xFF800000> : vector<2x16xf32>
    %153 = vector.multi_reduction <maximumf>, %152, %cst_59 [2] : vector<2x16x16xf32> to vector<2x16xf32>
    %154 = vector.shape_cast %153 : vector<2x16xf32> to vector<2x16x1xf32>
    %155 = vector.broadcast %154 : vector<2x16x1xf32> to vector<2x16x16xf32>
    %156 = arith.subf %152, %155 : vector<2x16x16xf32>
    %157 = math.exp %156 : vector<2x16x16xf32>
    %cst_60 = arith.constant dense<0.000000e+00> : vector<2x16xf32>
    %158 = vector.multi_reduction <add>, %157, %cst_60 [2] : vector<2x16x16xf32> to vector<2x16xf32>
    %159 = vector.shape_cast %158 : vector<2x16xf32> to vector<2x16x1xf32>
    %160 = tpu.reciprocal %159 {approx = true} : vector<2x16x1xf32> -> vector<2x16x1xf32>
    %161 = vector.broadcast %160 : vector<2x16x1xf32> to vector<2x16x16xf32>
    %162 = arith.mulf %157, %161 : vector<2x16x16xf32>
    %163 = arith.truncf %162 : vector<2x16x16xf32> to vector<2x16x16xbf16>
    %164 = vector.extract_strided_slice %47 {offsets = [0, 0, 96], sizes = [2, 16, 16], strides = [1, 1, 1]} : vector<2x16x128xbf16> to vector<2x16x16xbf16>
    "tpu.trace_start"() <{level = 10 : i32, message = "bqk,bkd->bqd"}> : () -> ()
    %cst_61 = arith.constant dense<0.000000e+00> : vector<2x16x16xf32>
    %165 = tpu.matmul %163, %164, %cst_61 {dimension_numbers = #tpu.dot_dimension_numbers<[2], [1], [1], [2], [0, 0, 0, 1, 1, 2], [0], [0]>} : vector<2x16x16xbf16>, vector<2x16x16xbf16>, vector<2x16x16xf32> -> vector<2x16x16xf32>
    "tpu.trace_stop"() : () -> ()
    %c0_62 = arith.constant 0 : index
    %c0_63 = arith.constant 0 : index
    %c96 = arith.constant 96 : index
    %166 = vector.load %arg17[%c0_62, %c0_63, %c96] : memref<2x16x128xf32, #tpu.memory_space<vmem>>, vector<2x16x16xf32>
    tpu.vector_store %arg17[%c0_62, %c0_63, %c96], %165 {strides = array<i32>} : memref<2x16x128xf32, #tpu.memory_space<vmem>>, vector<2x16x16xf32>,
    %167 = vector.extract_strided_slice %41 {offsets = [0, 0, 112], sizes = [2, 16, 16], strides = [1, 1, 1]} : vector<2x16x128xbf16> to vector<2x16x16xbf16>
    %168 = vector.extract_strided_slice %44 {offsets = [0, 0, 112], sizes = [2, 16, 16], strides = [1, 1, 1]} : vector<2x16x128xbf16> to vector<2x16x16xbf16>
    "tpu.trace_start"() <{level = 10 : i32, message = "bqd,bkd->bqk"}> : () -> ()
    %cst_64 = arith.constant dense<0.000000e+00> : vector<2x16x16xf32>
    %169 = tpu.matmul %167, %168, %cst_64 {dimension_numbers = #tpu.dot_dimension_numbers<[2], [2], [1], [1], [0, 0, 0, 1, 1, 1], [0], [0]>} : vector<2x16x16xbf16>, vector<2x16x16xbf16>, vector<2x16x16xf32> -> vector<2x16x16xf32>
    "tpu.trace_stop"() : () -> ()
    %cst_65 = arith.constant dense<0xFF800000> : vector<2x16xf32>
    %170 = vector.multi_reduction <maximumf>, %169, %cst_65 [2] : vector<2x16x16xf32> to vector<2x16xf32>
    %171 = vector.shape_cast %170 : vector<2x16xf32> to vector<2x16x1xf32>
    %172 = vector.broadcast %171 : vector<2x16x1xf32> to vector<2x16x16xf32>
    %173 = arith.subf %169, %172 : vector<2x16x16xf32>
    %174 = math.exp %173 : vector<2x16x16xf32>
    %cst_66 = arith.constant dense<0.000000e+00> : vector<2x16xf32>
    %175 = vector.multi_reduction <add>, %174, %cst_66 [2] : vector<2x16x16xf32> to vector<2x16xf32>
    %176 = vector.shape_cast %175 : vector<2x16xf32> to vector<2x16x1xf32>
    %177 = tpu.reciprocal %176 {approx = true} : vector<2x16x1xf32> -> vector<2x16x1xf32>
    %178 = vector.broadcast %177 : vector<2x16x1xf32> to vector<2x16x16xf32>
    %179 = arith.mulf %174, %178 : vector<2x16x16xf32>
    %180 = arith.truncf %179 : vector<2x16x16xf32> to vector<2x16x16xbf16>
    %181 = vector.extract_strided_slice %47 {offsets = [0, 0, 112], sizes = [2, 16, 16], strides = [1, 1, 1]} : vector<2x16x128xbf16> to vector<2x16x16xbf16>
    "tpu.trace_start"() <{level = 10 : i32, message = "bqk,bkd->bqd"}> : () -> ()
    %cst_67 = arith.constant dense<0.000000e+00> : vector<2x16x16xf32>
    %182 = tpu.matmul %180, %181, %cst_67 {dimension_numbers = #tpu.dot_dimension_numbers<[2], [1], [1], [2], [0, 0, 0, 1, 1, 2], [0], [0]>} : vector<2x16x16xbf16>, vector<2x16x16xbf16>, vector<2x16x16xf32> -> vector<2x16x16xf32>
    "tpu.trace_stop"() : () -> ()
    %c0_68 = arith.constant 0 : index
    %c0_69 = arith.constant 0 : index
    %c112 = arith.constant 112 : index
    %183 = vector.load %arg17[%c0_68, %c0_69, %c112] : memref<2x16x128xf32, #tpu.memory_space<vmem>>, vector<2x16x16xf32>
    tpu.vector_store %arg17[%c0_68, %c0_69, %c112], %182 {strides = array<i32>} : memref<2x16x128xf32, #tpu.memory_space<vmem>>, vector<2x16x16xf32>,
    %c0_70 = arith.constant 0 : index
    %c0_71 = arith.constant 0 : index
    %c0_72 = arith.constant 0 : index
    %184 = vector.load %arg17[%c0_70, %c0_71, %c0_72] : memref<2x16x128xf32, #tpu.memory_space<vmem>>, vector<2x16x128xf32>
    %185 = vector.shape_cast %184 : vector<2x16x128xf32> to vector<32x128xf32>
    %186 = arith.truncf %185 : vector<32x128xf32> to vector<32x128xbf16>
    %c0_73 = arith.constant 0 : index
    %c0_74 = arith.constant 0 : index
    %c0_75 = arith.constant 0 : index
    %187 = vector.load %arg7[%c0_73, %c0_74, %c0_75] : memref<1x128x128xbf16, #tpu.memory_space<vmem>>, vector<1x128x128xbf16>
    %188 = vector.shape_cast %187 : vector<1x128x128xbf16> to vector<128x128xbf16>
    %cst_76 = arith.constant dense<0.000000e+00> : vector<32x128xf32>
    %189 = tpu.matmul %186, %188, %cst_76 {dimension_numbers = #tpu.dot_dimension_numbers<[1], [0], [0], [1], [0, 0, 1, 1], [], []>} : vector<32x128xbf16>, vector<128x128xbf16>, vector<32x128xf32> -> vector<32x128xf32>
    %c0_77 = arith.constant 0 : index
    %c0_78 = arith.constant 0 : index
    %c0_79 = arith.constant 0 : index
    %190 = vector.load %arg8[%c0_77, %c0_78, %c0_79] : memref<1x1x128xf32, #tpu.memory_space<vmem>>, vector<1x1x128xf32>
    %191 = vector.shape_cast %190 : vector<1x1x128xf32> to vector<1x128xf32>
    %192 = vector.broadcast %191 : vector<1x128xf32> to vector<32x128xf32>
    %193 = arith.addf %189, %192 : vector<32x128xf32>
    %194 = arith.addf %6, %193 : vector<32x128xf32>
    %c0_80 = arith.constant 0 : index
    %c0_81 = arith.constant 0 : index
    %c0_82 = arith.constant 0 : index
    %195 = vector.load %arg9[%c0_80, %c0_81, %c0_82] : memref<1x1x128xf32, #tpu.memory_space<vmem>>, vector<1x1x128xf32>
    %196 = vector.shape_cast %195 : vector<1x1x128xf32> to vector<1x128xf32>
    %c0_83 = arith.constant 0 : index
    %c0_84 = arith.constant 0 : index
    %c0_85 = arith.constant 0 : index
    %197 = vector.load %arg10[%c0_83, %c0_84, %c0_85] : memref<1x1x128xf32, #tpu.memory_space<vmem>>, vector<1x1x128xf32>
    %198 = vector.shape_cast %197 : vector<1x1x128xf32> to vector<1x128xf32>
    %cst_86 = arith.constant dense<0.000000e+00> : vector<32xf32>
    %199 = vector.multi_reduction <add>, %194, %cst_86 [1] : vector<32x128xf32> to vector<32xf32>
    %200 = vector.shape_cast %199 : vector<32xf32> to vector<32x1xf32>
    %cst_87 = arith.constant 1.280000e+02 : f32
    %201 = vector.broadcast %cst_87 : f32 to vector<32x1xf32>
    %202 = arith.divf %200, %201 : vector<32x1xf32>
    %203 = vector.broadcast %202 : vector<32x1xf32> to vector<32x128xf32>
    %204 = arith.subf %194, %203 : vector<32x128xf32>
    %205 = arith.mulf %204, %204 : vector<32x128xf32>
    %cst_88 = arith.constant dense<0.000000e+00> : vector<32xf32>
    %206 = vector.multi_reduction <add>, %205, %cst_88 [1] : vector<32x128xf32> to vector<32xf32>
    %207 = vector.shape_cast %206 : vector<32xf32> to vector<32x1xf32>
    %cst_89 = arith.constant 1.280000e+02 : f32
    %208 = vector.broadcast %cst_89 : f32 to vector<32x1xf32>
    %209 = arith.divf %207, %208 : vector<32x1xf32>
    %210 = vector.broadcast %202 : vector<32x1xf32> to vector<32x128xf32>
    %211 = arith.subf %194, %210 : vector<32x128xf32>
    %cst_90 = arith.constant 9.99999974E-6 : f32
    %212 = vector.broadcast %cst_90 : f32 to vector<32x1xf32>
    %213 = arith.addf %209, %212 : vector<32x1xf32>
    %214 = math.rsqrt %213 : vector<32x1xf32>
    %215 = vector.broadcast %214 : vector<32x1xf32> to vector<32x128xf32>
    %216 = arith.mulf %211, %215 : vector<32x128xf32>
    %217 = vector.broadcast %196 : vector<1x128xf32> to vector<32x128xf32>
    %218 = arith.mulf %216, %217 : vector<32x128xf32>
    %219 = vector.broadcast %198 : vector<1x128xf32> to vector<32x128xf32>
    %220 = arith.addf %218, %219 : vector<32x128xf32>
    %221 = arith.truncf %220 : vector<32x128xf32> to vector<32x128xbf16>
    %c0_91 = arith.constant 0 : index
    %c0_92 = arith.constant 0 : index
    %c0_93 = arith.constant 0 : index
    %222 = vector.load %arg11[%c0_91, %c0_92, %c0_93] : memref<1x128x512xbf16, #tpu.memory_space<vmem>>, vector<1x128x512xbf16>
    %223 = vector.shape_cast %222 : vector<1x128x512xbf16> to vector<128x512xbf16>
    %cst_94 = arith.constant dense<0.000000e+00> : vector<32x512xf32>
    %224 = tpu.matmul %221, %223, %cst_94 {dimension_numbers = #tpu.dot_dimension_numbers<[1], [0], [0], [1], [0, 0, 1, 1], [], []>} : vector<32x128xbf16>, vector<128x512xbf16>, vector<32x512xf32> -> vector<32x512xf32>
    %c0_95 = arith.constant 0 : index
    %c0_96 = arith.constant 0 : index
    %c0_97 = arith.constant 0 : index
    %225 = vector.load %arg12[%c0_95, %c0_96, %c0_97] : memref<1x1x512xf32, #tpu.memory_space<vmem>>, vector<1x1x512xf32>
    %226 = vector.shape_cast %225 : vector<1x1x512xf32> to vector<1x512xf32>
    %227 = vector.broadcast %226 : vector<1x512xf32> to vector<32x512xf32>
    %228 = arith.addf %224, %227 : vector<32x512xf32>
    %cst_98 = arith.constant 5.000000e-01 : f32
    %229 = vector.broadcast %cst_98 : f32 to vector<32x512xf32>
    %230 = arith.mulf %229, %228 : vector<32x512xf32>
    %cst_99 = arith.constant 0.707106769 : f32
    %231 = vector.broadcast %cst_99 : f32 to vector<32x512xf32>
    %232 = arith.mulf %228, %231 : vector<32x512xf32>
    %233 = math.erf %232 : vector<32x512xf32>
    %cst_100 = arith.constant 1.000000e+00 : f32
    %234 = vector.broadcast %cst_100 : f32 to vector<32x512xf32>
    %235 = arith.addf %234, %233 : vector<32x512xf32>
    %236 = arith.mulf %230, %235 : vector<32x512xf32>
    %237 = arith.truncf %236 : vector<32x512xf32> to vector<32x512xbf16>
    %c0_101 = arith.constant 0 : index
    %c0_102 = arith.constant 0 : index
    %c0_103 = arith.constant 0 : index
    %238 = vector.load %arg13[%c0_101, %c0_102, %c0_103] : memref<1x512x128xbf16, #tpu.memory_space<vmem>>, vector<1x512x128xbf16>
    %239 = vector.shape_cast %238 : vector<1x512x128xbf16> to vector<512x128xbf16>
    %cst_104 = arith.constant dense<0.000000e+00> : vector<32x128xf32>
    %240 = tpu.matmul %237, %239, %cst_104 {dimension_numbers = #tpu.dot_dimension_numbers<[1], [0], [0], [1], [0, 0, 1, 1], [], []>} : vector<32x512xbf16>, vector<512x128xbf16>, vector<32x128xf32> -> vector<32x128xf32>
    %c0_105 = arith.constant 0 : index
    %c0_106 = arith.constant 0 : index
    %c0_107 = arith.constant 0 : index
    %241 = vector.load %arg14[%c0_105, %c0_106, %c0_107] : memref<1x1x128xf32, #tpu.memory_space<vmem>>, vector<1x1x128xf32>
    %242 = vector.shape_cast %241 : vector<1x1x128xf32> to vector<1x128xf32>
    %243 = vector.broadcast %242 : vector<1x128xf32> to vector<32x128xf32>
    %244 = arith.addf %240, %243 : vector<32x128xf32>
    %245 = arith.addf %194, %244 : vector<32x128xf32>
    %246 = vector.shape_cast %245 : vector<32x128xf32> to vector<2x16x128xf32>
    %c0_108 = arith.constant 0 : index
    %c0_109 = arith.constant 0 : index
    %c0_110 = arith.constant 0 : index
    %247 = vector.load %arg16[%c0_108, %c0_109, %c0_110] : memref<2x16x128xf32, #tpu.memory_space<vmem>>, vector<2x16x128xf32>
    tpu.vector_store %arg16[%c0_108, %c0_109, %c0_110], %246 {strides = array<i32>} : memref<2x16x128xf32, #tpu.memory_space<vmem>>, vector<2x16x128xf32>,
    %c0_111 = arith.constant 0 : index
    %c0_112 = arith.constant 0 : index
    %c0_113 = arith.constant 0 : index
    %c0_114 = arith.constant 0 : index
    %248 = vector.load %arg15[%c0_111, %c0_112, %c0_113, %c0_114] : memref<1x2x16x128xf32, #tpu.memory_space<vmem>>, vector<1x2x16x128xf32>
    %249 = vector.shape_cast %248 : vector<1x2x16x128xf32> to vector<2x16x128xf32>
    %250 = vector.shape_cast %246 : vector<2x16x128xf32> to vector<1x2x16x128xf32>
    tpu.vector_store %arg15[%c0_111, %c0_112, %c0_113, %c0_114], %250 {strides = array<i32>} : memref<1x2x16x128xf32, #tpu.memory_space<vmem>>, vector<1x2x16x128xf32>,
    return
  }
  func.func @transform_0(%arg0: i32, %arg1: memref<4xi32, #tpu.memory_space<smem>>) -> (i32, i32, i32) {
    %c0_i32 = arith.constant 0 : i32
    %c0_i32_0 = arith.constant 0 : i32
    %c0_i32_1 = arith.constant 0 : i32
    %c0_i32_2 = arith.constant 0 : i32
    return %c0_i32, %c0_i32_0, %c0_i32_1 : i32, i32, i32
  }
  func.func @transform_1(%arg0: i32, %arg1: memref<4xi32, #tpu.memory_space<smem>>) -> (i32, i32, i32) {
    %c0_i32 = arith.constant 0 : i32
    %c0_i32_0 = arith.constant 0 : i32
    %c0_i32_1 = arith.constant 0 : i32
    %c0_i32_2 = arith.constant 0 : i32
    return %c0_i32, %c0_i32_0, %c0_i32_1 : i32, i32, i32
  }
  func.func @transform_2(%arg0: i32, %arg1: memref<4xi32, #tpu.memory_space<smem>>) -> (i32, i32, i32) {
    %c0_i32 = arith.constant 0 : i32
    %c0_i32_0 = arith.constant 0 : i32
    %c0_i32_1 = arith.constant 0 : i32
    return %arg0, %c0_i32, %c0_i32_0 : i32, i32, i32
  }
  func.func @transform_3(%arg0: i32, %arg1: memref<4xi32, #tpu.memory_space<smem>>) -> (i32, i32, i32) {
    %c0_i32 = arith.constant 0 : i32
    %c0_i32_0 = arith.constant 0 : i32
    %c0_i32_1 = arith.constant 0 : i32
    return %arg0, %c0_i32, %c0_i32_0 : i32, i32, i32
  }
  func.func @transform_4(%arg0: i32, %arg1: memref<4xi32, #tpu.memory_space<smem>>) -> (i32, i32, i32) {
    %c0_i32 = arith.constant 0 : i32
    %c0_i32_0 = arith.constant 0 : i32
    %c0_i32_1 = arith.constant 0 : i32
    return %arg0, %c0_i32, %c0_i32_0 : i32, i32, i32
  }
  func.func @transform_5(%arg0: i32, %arg1: memref<4xi32, #tpu.memory_space<smem>>) -> (i32, i32, i32) {
    %c0_i32 = arith.constant 0 : i32
    %c0_i32_0 = arith.constant 0 : i32
    %c0_i32_1 = arith.constant 0 : i32
    return %arg0, %c0_i32, %c0_i32_0 : i32, i32, i32
  }
  func.func @transform_6(%arg0: i32, %arg1: memref<4xi32, #tpu.memory_space<smem>>) -> (i32, i32, i32) {
    %c0_i32 = arith.constant 0 : i32
    %c0_i32_0 = arith.constant 0 : i32
    %c0_i32_1 = arith.constant 0 : i32
    return %arg0, %c0_i32, %c0_i32_0 : i32, i32, i32
  }
  func.func @transform_7(%arg0: i32, %arg1: memref<4xi32, #tpu.memory_space<smem>>) -> (i32, i32, i32) {
    %c0_i32 = arith.constant 0 : i32
    %c0_i32_0 = arith.constant 0 : i32
    %c0_i32_1 = arith.constant 0 : i32
    return %arg0, %c0_i32, %c0_i32_0 : i32, i32, i32
  }
  func.func @transform_8(%arg0: i32, %arg1: memref<4xi32, #tpu.memory_space<smem>>) -> (i32, i32, i32) {
    %c0_i32 = arith.constant 0 : i32
    %c0_i32_0 = arith.constant 0 : i32
    %c0_i32_1 = arith.constant 0 : i32
    return %arg0, %c0_i32, %c0_i32_0 : i32, i32, i32
  }
  func.func @transform_9(%arg0: i32, %arg1: memref<4xi32, #tpu.memory_space<smem>>) -> (i32, i32, i32) {
    %c0_i32 = arith.constant 0 : i32
    %c0_i32_0 = arith.constant 0 : i32
    %c0_i32_1 = arith.constant 0 : i32
    return %arg0, %c0_i32, %c0_i32_0 : i32, i32, i32
  }
  func.func @transform_10(%arg0: i32, %arg1: memref<4xi32, #tpu.memory_space<smem>>) -> (i32, i32, i32) {
    %c0_i32 = arith.constant 0 : i32
    %c0_i32_0 = arith.constant 0 : i32
    %c0_i32_1 = arith.constant 0 : i32
    return %arg0, %c0_i32, %c0_i32_0 : i32, i32, i32
  }
  func.func @transform_11(%arg0: i32, %arg1: memref<4xi32, #tpu.memory_space<smem>>) -> (i32, i32, i32) {
    %c0_i32 = arith.constant 0 : i32
    %c0_i32_0 = arith.constant 0 : i32
    %c0_i32_1 = arith.constant 0 : i32
    return %arg0, %c0_i32, %c0_i32_0 : i32, i32, i32
  }
  func.func @transform_12(%arg0: i32, %arg1: memref<4xi32, #tpu.memory_space<smem>>) -> (i32, i32, i32) {
    %c0_i32 = arith.constant 0 : i32
    %c0_i32_0 = arith.constant 0 : i32
    %c0_i32_1 = arith.constant 0 : i32
    return %arg0, %c0_i32, %c0_i32_0 : i32, i32, i32
  }
  func.func @transform_13(%arg0: i32, %arg1: memref<4xi32, #tpu.memory_space<smem>>) -> (i32, i32, i32, i32) {
    %0 = arith.index_cast %arg0 : i32 to index
    %1 = memref.load %arg1[%0] : memref<4xi32, #tpu.memory_space<smem>>
    %c0_i32 = arith.constant 0 : i32
    %c0_i32_0 = arith.constant 0 : i32
    %c0_i32_1 = arith.constant 0 : i32
    %c0_i32_2 = arith.constant 0 : i32
    return %1, %c0_i32, %c0_i32_0, %c0_i32_1 : i32, i32, i32, i32
  }
}

</mosaic_0001>

<bundles_post_ra>
// kernel: tpu_custom_call.1
= control target key start
LH: loop header
LB: loop body
LE: loop exit
PB: predicated region body
PF: predicated region fallthrough
CT: control target
= control target key end

     0   :  { %s5604_s16 = smov [#allocation5]   ;;  %s7689_s0 = inlined_call_operand.hbm [shape: s32[4], index: 0, kind: input, shape index: {}]   ;;  %s7690_s1 = inlined_call_operand.hbm [shape: f32[2,16,128], index: 1, kind: input, shape index: {}]   ;;  %s7691_s2 = inlined_call_operand.hbm [shape: f32[2,16,128], index: 2, kind: input, shape index: {}]   ;;  %s7692_s3 = inlined_call_operand.hbm [shape: f32[4,1,128], index: 3, kind: input, shape index: {}]   ;;  %s7693_s4 = inlined_call_operand.hbm [shape: f32[4,1,128], index: 4, kind: input, shape index: {}]   ;;  %s7694_s5 = inlined_call_operand.hbm [shape: bf16[4,128,384], index: 5, kind: input, shape index: {}]   ;;  %s7695_s6 = inlined_call_operand.hbm [shape: bf16[4,128,128], index: 6, kind: input, shape index: {}]   ;;  %s7696_s7 = inlined_call_operand.vmem [shape: f32[4,1,128], index: 7, kind: input, shape index: {}]   ;;  %s7697_s8 = inlined_call_operand.hbm [shape: f32[4,1,128], index: 8, kind: input, shape index: {}]   ;;  %s7698_s9 = inlined_call_operand.vmem [shape: f32[4,1,128], index: 9, kind: input, shape index: {}]   ;;  %s7699_s10 = inlined_call_operand.hbm [shape: bf16[4,128,512], index: 10, kind: input, shape index: {}]   ;;  %s7700_s11 = inlined_call_operand.hbm [shape: f32[4,1,512], index: 11, kind: input, shape index: {}]   ;;  %s7701_s12 = inlined_call_operand.hbm [shape: bf16[4,512,128], index: 12, kind: input, shape index: {}]   ;;  %s7702_s13 = inlined_call_operand.vmem [shape: f32[4,1,128], index: 13, kind: input, shape index: {}]   ;;  %s7703_s14 = inlined_call_operand.hbm [shape: f32[1,2,16,128], index: 14, kind: output, shape index: {}]  }
   0x1   :  { %7725 = sst [smem:[#allocation37_spill]] %s7690_s1  ;;  %s20_s15 = sshll.u32 %s7689_s0, 4  ;;  %s21_s15 = int_to_ptr.hbm [resolvable:$true] %s20_s15 }
   0x2   :  { %7726 = sst [smem:[#allocation38_spill]] %s7691_s2 }
   0x3   :  { %7727 = sst [smem:[#allocation39_spill]] %s7692_s3 }
   0x4   :  { %7728 = sst [smem:[#allocation40_spill]] %s7693_s4 }
   0x5   :  { %7729 = sst [smem:[#allocation41_spill]] %s7694_s5 }
   0x6   :  { %7730 = sst [smem:[#allocation42_spill]] %s7696_s7 }
   0x7   :  { %7731 = sst [smem:[#allocation43_spill]] %s7698_s9 }
   0x8   :  { %7732 = sst [smem:[#allocation44_spill]] %s7702_s13 }
   0x9   :  { %7733 = sst [smem:[#allocation45_spill]] %s7703_s14 }
   0xa   :  { %23 = dma.hbm_to_smem %s21_s15, 16, %s5604_s16, [#allocation4] }
   0xb   :  { %5558 = dma.done.wait [#allocation4], 16 }
   0xc   :  { %5559 = vsyncadd [#allocation4], 4294967280 }
   0xd   :  { %26 = sfence }
   0xe   :  { %27 = vsyncpa [#allocation7], 0 }
   0xf   :  { %28 = vsyncpa [#allocation10], 0 }
  0x10   :  { %29 = vsyncpa [#allocation8], 0 }
  0x11   :  { %31 = vsyncpa [#allocation8 + $0x1], 0  ;;  %s5703_s17 = smov 0   ;;  %s5705_s18 = smov 0  }
  0x12   :  { %s5707_s19 = smov 0   ;;  %s5709_s20 = smov 0  }
  0x13   :  { %s5711_s21 = smov 0   ;;  %s5713_s0 = smov 0  }
  0x14   :  { %s5715_s22 = smov 0  }
  0x15 LB: > { %7734 = sst [smem:[#allocation26_spill]] %s5578_s17  ;;  %s5737_s23 = sadd.s32 4294967295, %s5602_s22   ;;  %s5602_s22 = sphi %s5715_s22, %s7823_s22   ;;  %s5598_s0 = sphi %s5713_s0, %s7829_s0   ;;  %s5594_s21 = sphi %s5711_s21, %s7828_s21   ;;  %s5590_s20 = sphi %s5709_s20, %s7827_s20   ;;  %s5586_s19 = sphi %s5707_s19, %s7826_s19   ;;  %s5582_s18 = sphi %s5705_s18, %s7825_s18   ;;  %s5578_s17 = sphi %s5703_s17, %s7824_s17  }
  0x16   : > { %7735 = sst [smem:[#allocation27_spill]] %s5582_s18  ;;  %s4293_s24 = sadd.s32 4294967294, %s5602_s22  }
  0x17   : > { %7736 = sst [smem:[#allocation28_spill]] %s5586_s19  ;;  %s5741_s25 = sadd.s32 1, %s5602_s22  }
  0x18   : > { %7737 = sst [smem:[#allocation29_spill]] %s5594_s21  ;;  %s86_s26 = sadd.s32 1, %s5598_s0 }
  0x19   : > { %7738 = sst [smem:[#allocation30_spill]] %s5598_s0  ;;  %s83_s27 = ssub.s32 %s5602_s22, %s5741_s25 }
  0x1a   : > { %7739 = sst [smem:[#allocation31_spill]] %s5741_s25  ;;  %p93_p0 = scmp.ne.s32.totalorder %s5598_s0, %s5594_s21 }
  0x1b   : > { %p84_p1 = scmp.eq.s32.totalorder %s83_s27, 0  ;;  %p94_p2 = scmp.eq.s32.totalorder %s5602_s22, 0 }
  0x1c   : > { %p99_p3 = scmp.ne.s32.totalorder %s5594_s21, %s5590_s20  ;;  %p7713_p4 = scmp.eq.s32.totalorder %s5737_s23, 0 }
  0x1d   : > { %s5752_s28 = scalar_select %p84_p1, %s5598_s0, %s86_s26  }
  0x1e   : > { %p5754_p5 = por %p94_p2, %p93_p0  ;;  %p5760_p6 = por %p7713_p4, %p99_p3 }
  0x1f   : > { %7740 = sst [smem:[#allocation32_spill]] %s5752_s28  ;;  %s374_s16 = sadd.s32 1, %s5586_s19 }
  0x20   : > { %s7742_s30 = scalar_select %p5760_p6, 1, 0 }
  0x21   : > { %s369_s15 = sld [smem:[#allocation5 + %s5602_s22]]  ;;  %p384_p7 = scmp.ne.s32.totalorder %s5586_s19, %s5582_s18 }
  0x22   : > { %7743 = sst [smem:[#allocation33_spill]] %s7742_s30  ;;  %p385_p8 = scmp.eq.s32.totalorder %s5737_s23, 3 }
  0x23   : > { %s370_s14 = sld [smem:[#allocation5 + %s5741_s25]]  ;;  %p390_p9 = scmp.ne.s32.totalorder %s5582_s18, %s5578_s17 }
  0x24   : > { %p391_p10 = scmp.eq.s32.totalorder %s4293_s24, 3  ;;  %p4294_p11 = scmp.ge.s32.totalorder %s5602_s22, 1 }
  0x25   : > { %p5773_p12 = por %p385_p8, %p384_p7  ;;  %p398_p13 = scmp.lt.s32.totalorder %s5602_s22, 5 }
  0x26   : > { %p5778_p0 = por %p391_p10, %p390_p9  ;;  %s7749_s1 = sld [smem:[#allocation37_spill]] }
  0x27   : > { %s7744_s20 = scalar_select %p5773_p12, 1, 0 }
  0x28   : > { %s7746_s26 = scalar_select %p5778_p0, 1, 0 }
  0x29   : > { %7745 = sst [smem:[#allocation34_spill]] %s7744_s20  ;;  %p5783_p2 = pnand %p4294_p11, %p398_p13 }
  0x2a   : > { %7747 = sst [smem:[#allocation35_spill]] %s7746_s26  ;;  %s371_s17 = ssub.s32 %s369_s15, %s370_s14 }
  0x2b   : > { %p372_p3 = scmp.eq.s32.totalorder %s371_s17, 0  ;;  %p4887_p7 = pneg %p5783_p2 }
  0x2c   : > { %s409_s24 = sshll.u32 %s7749_s1, 4  ;;  %s5605_s20 = smov [#allocation6]   ;;  %s410_s24 = int_to_ptr.hbm [resolvable:$true] %s409_s24 }
  0x2d   : > { %s5793_s26 = scalar_select %p372_p3, %s5586_s19, %s374_s16  }
  0x2e   : > { %s411_s13 = sshll.u32 %s5605_s20, 4  ;;  %p5797_p8 = pnand %p4887_p7, %p7713_p4  ;;  %s412_s13 = int_to_ptr.vmem [resolvable:$true] %s411_s13 }
  0x2f   : > { %7750 = sst [smem:[#allocation36_spill]] %s5793_s26  ;;  %s7712_s25 = smov 128  }
  0x30   : > { %s7714_s28 = smov 8   ;;  %p4925_p9 = scmp.lt.s32.totalorder %s5602_s22, 4 }
  0x31   : > { %4890 = dma.hbm_to_vmem [thread:$0]  (!%p5797_p8), %s410_s24, 512, %s412_s13, [#allocation7], %s7712_s25, %s7712_s25, %s7714_s28  }
  0x32   : > { %s439_s14 = sand.u32 1, %s5602_s22   ;;  %s5809_s17 = sand.u32 1, %s5598_s0  }
  0x33   : > { %p5813_p10 = pnand %p4925_p9, %p5754_p5  ;;  %s7753_s3 = sld [smem:[#allocation39_spill]] }
  0x34   : > { %s442_s26 = scalar_lea.vmem [#allocation11], %s5809_s17  ;;  %s5822_s13 = scalar_lea.sflag [#allocation7], %s439_s14 }
  0x35   : > { %s449_s19 = sshll.u32 %s442_s26, 4  ;;  %p5826_p5 = pneg %p5813_p10  ;;  %s450_s19 = int_to_ptr.vmem [resolvable:$true] %s449_s19 }
  0x39   : > { %s445_s1 = scalar_lea.hbm %s7753_s3, %s5602_s22 }
  0x3a   : > { %s447_s7 = sshll.u32 %s445_s1, 4  ;;  %s5239_s1 = scalar_lea.hbm %s7753_s3, 4  ;;  %s448_s7 = int_to_ptr.hbm [resolvable:$true] %s447_s7 }
  0x3b   : > { %s5232_s24 = sshra.s32 %s448_s7, 4  ;;  %s5233_s24 = int_to_ptr.hbm [resolvable:$true] %s5232_s24 }
  0x3c   : > { %s5234_s29 = scalar_lea.hbm %s5233_s24, 1  ;;  %p5240_p7 = scmp.lt.s32.totalorder %s5233_s24, %s7753_s3 }
  0x3d   : > { %p5235_p11 = scmp.ne.s32.totalorder %s5233_s24, %s5234_s29  ;;  %p5241_p9 = scmp.lt.s32.totalorder %s5239_s1, %s5234_s29 }
  0x3f   : > { %p5237_p13 = pnand %p5826_p5, %p5235_p11  ;;  %p5242_p1 = por %p5241_p9, %p5240_p7 }
  0x41   : > { %p5238_p3 = pneg %p5237_p13 }
  0x43   : > { %p5243_p4 = pnand %p5242_p1, %p5238_p3 }
  0x45   : > { %5246 = shalt.err (!%p5243_p4)
}
  0x46   : > { %4897 = dma.hbm_to_vmem [thread:$0]  (!%p5813_p10), %s448_s7, 16, %s450_s19, %s5822_s13  }
  0x47   : > { %s7755_s4 = sld [smem:[#allocation40_spill]]  ;;  %s459_s18 = scalar_lea.vmem [#allocation12], %s5809_s17 }
  0x48   : > { %s466_s30 = sshll.u32 %s459_s18, 4  ;;  %s467_s30 = int_to_ptr.vmem [resolvable:$true] %s466_s30 }
  0x4d   : > { %s462_s16 = scalar_lea.hbm %s7755_s4, %s5602_s22  ;;  %s5269_s7 = scalar_lea.hbm %s7755_s4, 4 }
  0x4e   : > { %s464_s26 = sshll.u32 %s462_s16, 4  ;;  %s465_s26 = int_to_ptr.hbm [resolvable:$true] %s464_s26 }
  0x4f   : > { %s5262_s24 = sshra.s32 %s465_s26, 4  ;;  %s5263_s24 = int_to_ptr.hbm [resolvable:$true] %s5262_s24 }
  0x50   : > { %s5264_s29 = scalar_lea.hbm %s5263_s24, 1  ;;  %p5270_p13 = scmp.lt.s32.totalorder %s5263_s24, %s7755_s4 }
  0x51   : > { %p5265_p4 = scmp.ne.s32.totalorder %s5263_s24, %s5264_s29  ;;  %p5271_p3 = scmp.lt.s32.totalorder %s5269_s7, %s5264_s29 }
  0x53   : > { %p5267_p1 = pnand %p5265_p4, %p5826_p5  ;;  %p5272_p7 = por %p5271_p3, %p5270_p13 }
  0x55   : > { %p5268_p11 = pneg %p5267_p1 }
  0x57   : > { %p5273_p9 = pnand %p5272_p7, %p5268_p11 }
  0x59   : > { %5276 = shalt.err (!%p5273_p9)
}
  0x5a   : > { %4900 = dma.hbm_to_vmem [thread:$0]  (!%p5813_p10), %s465_s26, 16, %s467_s30, %s5822_s13  }
  0x5b   : > { %s4856_s18 = smul.u32 192, %s5809_s17  ;;  %s4299_s28 = sshll.u32 %s5809_s17, 6 }
  0x5c   : > { %s4857_s0 = smul.u32 192, %s5602_s22  ;;  %s7756_s5 = sld [smem:[#allocation41_spill]] }
  0x5d   : > { %s477_s24 = scalar_lea.vmem [#allocation13], %s4856_s18 }
  0x5e   : > { %s485_s29 = sshll.u32 %s477_s24, 4  ;;  %s486_s29 = int_to_ptr.vmem [resolvable:$true] %s485_s29 }
  0x62   : > { %s482_s20 = scalar_lea.hbm %s7756_s5, %s4857_s0  ;;  %s5299_s3 = scalar_lea.hbm %s7756_s5, 768 }
  0x63   : > { %s483_s7 = sshll.u32 %s482_s20, 4  ;;  %s484_s7 = int_to_ptr.hbm [resolvable:$true] %s483_s7 }
  0x64   : > { %s5292_s19 = sshra.s32 %s484_s7, 4  ;;  %s5293_s19 = int_to_ptr.hbm [resolvable:$true] %s5292_s19 }
  0x65   : > { %s5294_s14 = scalar_lea.hbm %s5293_s19, 192  ;;  %p5300_p13 = scmp.lt.s32.totalorder %s5293_s19, %s7756_s5 }
  0x66   : > { %p5295_p4 = scmp.ne.s32.totalorder %s5293_s19, %s5294_s14  ;;  %p5301_p3 = scmp.lt.s32.totalorder %s5299_s3, %s5294_s14 }
  0x68   : > { %p5297_p1 = pnand %p5295_p4, %p5826_p5  ;;  %p5302_p7 = por %p5301_p3, %p5300_p13 }
  0x6a   : > { %p5298_p11 = pneg %p5297_p1 }
  0x6c   : > { %p5303_p9 = pnand %p5302_p7, %p5298_p11 }
  0x6e   : > { %5306 = shalt.err (!%p5303_p9)
}
  0x6f   : > { %s5608_s18 = smov 192   ;;  %s5609_s0 = smov 12  }
  0x70   : > { %4903 = dma.hbm_to_vmem [thread:$0]  (!%p5813_p10), %s484_s7, 3072, %s486_s29, %s5822_s13, %s5608_s18, %s5608_s18, %s5609_s0  }
  0x71   : > { %s4756_s16 = sshll.u32 %s5602_s22, 6  ;;  %s499_s1 = scalar_lea.vmem [#allocation14], %s4299_s28 }
  0x72   : > { %s507_s20 = sshll.u32 %s499_s1, 4  ;;  %s504_s4 = scalar_lea.hbm %s7695_s6, %s4756_s16  ;;  %s508_s20 = int_to_ptr.vmem [resolvable:$true] %s507_s20 }
  0x73   : > { %s505_s3 = sshll.u32 %s504_s4, 4  ;;  %s5329_s29 = scalar_lea.hbm %s7695_s6, 256  ;;  %s506_s3 = int_to_ptr.hbm [resolvable:$true] %s505_s3 }
  0x74   : > { %s5322_s21 = sshra.s32 %s506_s3, 4  ;;  %s5323_s21 = int_to_ptr.hbm [resolvable:$true] %s5322_s21 }
  0x75   : > { %s5324_s19 = scalar_lea.hbm %s5323_s21, 64  ;;  %p5330_p13 = scmp.lt.s32.totalorder %s5323_s21, %s7695_s6 }
  0x76   : > { %p5325_p4 = scmp.ne.s32.totalorder %s5323_s21, %s5324_s19  ;;  %p5331_p3 = scmp.lt.s32.totalorder %s5329_s29, %s5324_s19 }
  0x78   : > { %p5327_p1 = pnand %p5325_p4, %p5826_p5  ;;  %p5332_p7 = por %p5331_p3, %p5330_p13 }
  0x7a   : > { %p5328_p11 = pneg %p5327_p1 }
  0x7c   : > { %p5333_p9 = pnand %p5332_p7, %p5328_p11 }
  0x7e   : > { %5336 = shalt.err (!%p5333_p9)
}
  0x7f   : > { %s7721_s18 = smov 64   ;;  %s7722_s0 = smov 4  }
  0x80   : > { %4906 = dma.hbm_to_vmem [thread:$0]  (!%p5813_p10), %s506_s3, 1024, %s508_s20, %s5822_s13, %s7721_s18, %s7721_s18, %s7722_s0  }
  0x81   : > { %s529_s24 = scalar_lea.hbm %s7697_s8, %s5602_s22  ;;  %s526_s4 = scalar_lea.vmem [#allocation15], %s5809_s17 }
  0x82   : > { %s531_s30 = sshll.u32 %s529_s24, 4  ;;  %s533_s21 = sshll.u32 %s526_s4, 4  ;;  %s532_s30 = int_to_ptr.hbm [resolvable:$true] %s531_s30  ;;  %s534_s21 = int_to_ptr.vmem [resolvable:$true] %s533_s21 }
  0x83   : > { %s5352_s19 = sshra.s32 %s532_s30, 4  ;;  %s5359_s20 = scalar_lea.hbm %s7697_s8, 4  ;;  %s5353_s19 = int_to_ptr.hbm [resolvable:$true] %s5352_s19 }
  0x84   : > { %s5354_s14 = scalar_lea.hbm %s5353_s19, 1  ;;  %p5360_p13 = scmp.lt.s32.totalorder %s5353_s19, %s7697_s8 }
  0x85   : > { %p5355_p4 = scmp.ne.s32.totalorder %s5353_s19, %s5354_s14  ;;  %p5361_p3 = scmp.lt.s32.totalorder %s5359_s20, %s5354_s14 }
  0x87   : > { %p5357_p1 = pnand %p5355_p4, %p5826_p5  ;;  %p5362_p7 = por %p5361_p3, %p5360_p13 }
  0x89   : > { %p5358_p11 = pneg %p5357_p1 }
  0x8b   : > { %p5363_p9 = pnand %p5362_p7, %p5358_p11 }
  0x8d   : > { %5366 = shalt.err (!%p5363_p9)
}
  0x8e   : > { %4909 = dma.hbm_to_vmem [thread:$0]  (!%p5813_p10), %s532_s30, 16, %s534_s21, %s5822_s13  }
  0x8f   : > { %s7723_s7 = sshll.u32 %s5809_s17, 8  ;;  %s4757_s16 = sshll.u32 %s5602_s22, 8 }
  0x90   : > { %s555_s4 = scalar_lea.hbm %s7699_s10, %s4757_s16  ;;  %s550_s14 = scalar_lea.vmem [#allocation16], %s7723_s7 }
  0x91   : > { %s556_s19 = sshll.u32 %s555_s4, 4  ;;  %s558_s26 = sshll.u32 %s550_s14, 4  ;;  %s557_s19 = int_to_ptr.hbm [resolvable:$true] %s556_s19  ;;  %s559_s26 = int_to_ptr.vmem [resolvable:$true] %s558_s26 }
  0x92   : > { %s5382_s29 = sshra.s32 %s557_s19, 4  ;;  %s5389_s3 = scalar_lea.hbm %s7699_s10, 1024  ;;  %s5383_s29 = int_to_ptr.hbm [resolvable:$true] %s5382_s29 }
  0x93   : > { %s5384_s20 = scalar_lea.hbm %s5383_s29, 256  ;;  %p5390_p13 = scmp.lt.s32.totalorder %s5383_s29, %s7699_s10 }
  0x94   : > { %p5385_p4 = scmp.ne.s32.totalorder %s5383_s29, %s5384_s20  ;;  %p5391_p3 = scmp.lt.s32.totalorder %s5389_s3, %s5384_s20 }
  0x96   : > { %p5387_p1 = pnand %p5385_p4, %p5826_p5  ;;  %p5392_p7 = por %p5391_p3, %p5390_p13 }
  0x98   : > { %p5388_p11 = pneg %p5387_p1 }
  0x9a   : > { %p5393_p9 = pnand %p5392_p7, %p5388_p11 }
  0x9c   : > { %5396 = shalt.err (!%p5393_p9)
}
  0x9d   : > { %s5612_s24 = smov 256   ;;  %s5613_s4 = smov 16  }
  0x9e   : > { %4912 = dma.hbm_to_vmem [thread:$0]  (!%p5813_p10), %s557_s19, 4096, %s559_s26, %s5822_s13, %s5612_s24, %s5612_s24, %s5613_s4  }
  0x9f   : > { %s4305_s14 = sshll.u32 %s5809_s17, 2  ;;  %s4306_s30 = sshll.u32 %s5602_s22, 2 }
  0xa0   : > { %s576_s28 = scalar_lea.hbm %s7700_s11, %s4306_s30  ;;  %s572_s20 = scalar_lea.vmem [#allocation17], %s4305_s14 }
  0xa1   : > { %s578_s29 = sshll.u32 %s576_s28, 4  ;;  %s580_s3 = sshll.u32 %s572_s20, 4  ;;  %s579_s29 = int_to_ptr.hbm [resolvable:$true] %s578_s29  ;;  %s581_s3 = int_to_ptr.vmem [resolvable:$true] %s580_s3 }
  0xa2   : > { %s5412_s1 = sshra.s32 %s579_s29, 4  ;;  %s5419_s26 = scalar_lea.hbm %s7700_s11, 16  ;;  %s5413_s1 = int_to_ptr.hbm [resolvable:$true] %s5412_s1 }
  0xa3   : > { %s5414_s0 = scalar_lea.hbm %s5413_s1, 4  ;;  %p5420_p13 = scmp.lt.s32.totalorder %s5413_s1, %s7700_s11 }
  0xa4   : > { %p5415_p4 = scmp.ne.s32.totalorder %s5413_s1, %s5414_s0  ;;  %p5421_p3 = scmp.lt.s32.totalorder %s5419_s26, %s5414_s0 }
  0xa6   : > { %p5417_p1 = pnand %p5415_p4, %p5826_p5  ;;  %p5422_p7 = por %p5421_p3, %p5420_p13 }
  0xa8   : > { %p5418_p11 = pneg %p5417_p1 }
  0xaa   : > { %p5423_p9 = pnand %p5422_p7, %p5418_p11 }
  0xac   : > { %5426 = shalt.err (!%p5423_p9)
}
  0xad   : > { %4915 = dma.hbm_to_vmem [thread:$0]  (!%p5813_p10), %s579_s29, 64, %s581_s3, %s5822_s13  }
  0xae   : > { %s7757_s2 = sld [smem:[#allocation38_spill]]  ;;  %s5614_s30 = smov [#allocation9]  }
  0xaf   : > { %s425_s21 = sshll.u32 %s5614_s30, 4  ;;  %s7758_s0 = smov 8   ;;  %s426_s21 = int_to_ptr.vmem [resolvable:$true] %s425_s21 }
  0xb0   : > { %s7759_s28 = smov 128   ;;  %s596_s19 = scalar_lea.hbm %s7701_s12, %s4757_s16 }
  0xb1   : > { %s7760_s29 = sshll.u32 %s5809_s17, 8  ;;  %s597_s24 = sshll.u32 %s596_s19, 4  ;;  %s598_s24 = int_to_ptr.hbm [resolvable:$true] %s597_s24 }
  0xb2   : > { %s591_s3 = scalar_lea.vmem [#allocation18], %s7760_s29  ;;  %s5472_s4 = sshra.s32 %s598_s24, 4  ;;  %s5473_s4 = int_to_ptr.hbm [resolvable:$true] %s5472_s4 }
  0xb3   : > { %s599_s26 = sshll.u32 %s591_s3, 4  ;;  %s5474_s18 = scalar_lea.hbm %s5473_s4, 256  ;;  %s600_s26 = int_to_ptr.vmem [resolvable:$true] %s599_s26 }
  0xb4   : > { %s423_s7 = sshll.u32 %s7757_s2, 4  ;;  %p5475_p4 = scmp.ne.s32.totalorder %s5473_s4, %s5474_s18  ;;  %s424_s7 = int_to_ptr.hbm [resolvable:$true] %s423_s7 }
  0xb5   : > { %4893 = dma.hbm_to_vmem [thread:$0]  (!%p5797_p8), %s424_s7, 512, %s426_s21, [#allocation10], %s7759_s28, %s7759_s28, %s7758_s0  }
  0xb6   : > { %p5477_p1 = pnand %p5475_p4, %p5826_p5  ;;  %s5479_s7 = scalar_lea.hbm %s7701_s12, 1024 }
  0xb7   : > { %p5480_p8 = scmp.lt.s32.totalorder %s5473_s4, %s7701_s12  ;;  %p5481_p13 = scmp.lt.s32.totalorder %s5479_s7, %s5474_s18 }
  0xb8   : > { %p5478_p11 = pneg %p5477_p1 }
  0xb9   : > { %p5482_p3 = por %p5481_p13, %p5480_p8 }
  0xbb   : > { %p5483_p7 = pnand %p5482_p3, %p5478_p11 }
  0xbd   : > { %5486 = shalt.err (!%p5483_p7)
}
  0xbe   : > { %s7761_s17 = smov 4   ;;  %s7762_s16 = smov 64  }
  0xbf   : > { %4918 = dma.hbm_to_vmem [thread:$0]  (!%p5813_p10), %s598_s24, 4096, %s600_s26, %s5822_s13, %s7762_s16, %s7762_s16, %s7761_s17  }
  0xc0   : > { %617 = sbr.rel (%p5783_p2) target bundleno = 2464 (0x9a0), region = 72  ;;  %p7763_p5 = scmp.eq.s32.totalorder (!%p5783_p2), %s5737_s23, 0 }
  0xc5   : > { %5561 = dma.done.wait (%p7763_p5), [#allocation7], 512   ;;  %p7764_p9 = pmov %p7763_p5 }
  0xc6   : > { %p7765_p4 = pmov %p7763_p5 }
  0xc7   : > { %5563 = vsyncadd (%p7764_p9), [#allocation7], 4294966784 }
  0xc8   : > { %5565 = dma.done.wait (%p7765_p4), [#allocation10], 512   ;;  %p7766_p1 = pmov %p7765_p4 }
  0xc9   : > { %s7767_s25 = sld [smem:[#allocation29_spill]]  ;;  %s629_s0 = sand.u32 1, %s5737_s23  }
  0xca   : > { %5567 = vsyncadd (%p7766_p1), [#allocation10], 4294966784  ;;  %s630_s27 = scalar_lea.sflag [#allocation7], %s629_s0 }
  0xcf   : > { %s5985_s13 = sand.u32 1, %s7767_s25  }
  0xd0   : > { %5569 = dma.done.wait (%p5760_p6), %s630_s27, 12400  }
  0xd1   : > { %5571 = vsyncadd (%p5760_p6), %s630_s27, 4294954896  ;;  %s7769_s20 = sld [smem:[#allocation27_spill]]  ;;  %s4858_s1 = smul.u32 192, %s5985_s13 }
  0xd2   : > { %s4313_s19 = sshll.u32 %s5985_s13, 6  ;;  %s4314_s29 = sshll.u32 %s5985_s13, 8 }
  0xd3   : > { %s4315_s3 = sshll.u32 %s5985_s13, 2  ;;  %p785_p2 = scmp.lt.s32.totalorder %s5737_s23, 3 }
  0xd4   : > { %s7770_s14 = sld [smem:[#allocation42_spill]]  ;;  %s6018_s28 = scalar_lea.vmem [#allocation14], %s4313_s19 }
  0xd5   : > { %s6001_s4 = scalar_select %p785_p2, %s5737_s23, 3 }
  0xd6   : > { %s7771_s17 = sld [smem:[#allocation43_spill]]  ;;  %s670_s2 = scalar_lea.vmem [#allocation15], %s5985_s13 }
  0xd7   : > { %s7724_s26 = sand.u32 1, %s7769_s20   ;;  %s7772_s0 = sld [smem:[#allocation44_spill]] }
  0xd8   : > { %s4317_s24 = sshll.u32 %s7724_s26, 5  ;;  %s641_s20 = scalar_lea.vmem [#allocation12], %s5985_s13 }
  0xd9   : > { %s6016_s26 = scalar_lea.vmem [#allocation13], %s4858_s1  ;;  %s6021_s5 = scalar_lea.vmem [#allocation16], %s4314_s29 }
  0xda   : > { %s787_s7 = scalar_lea.vmem %s7770_s14, %s6001_s4  ;;  %s6023_s18 = scalar_lea.vmem [#allocation17], %s4315_s3 }
  0xdb   : > { %s6025_s9 = scalar_lea.vmem [#allocation18], %s4314_s29  ;;  %s6027_s14 = scalar_lea.vmem [#allocation19], %s4317_s24 }
  0xdc   : > { %s790_s16 = scalar_lea.vmem %s7771_s17, %s6001_s4  ;;  %p7773_p6 = scmp.ne.s32.totalorder %s5737_s23, 0 }
  0xdd   : > { %s793_s27 = scalar_lea.vmem %s7772_s0, %s6001_s4 }
  0xde   : > { %799 = sbr.rel (%p7773_p6) target bundleno = 232 (0xe8), region = 116 }
  0xe3   : > { %v800_v0 = vld [vmem:[#allocation6] sm:$0xff]  ;;  %v801_v1 = vld [vmem:[#allocation6 + $0x8] sm:$0xff]  ;;  %v802_v2 = vld [vmem:[#allocation6 + $0x10] sm:$0xff] }
  0xe4   : > { %804 = vst [vmem:[#allocation2 + $0x10] sm:$0xff] %v800_v0  ;;  %v803_v3 = vld [vmem:[#allocation6 + $0x18] sm:$0xff] }
  0xe5   : > { %805 = vst [vmem:[#allocation2] sm:$0xff] %v801_v1 }
  0xe6   : > { %806 = vst [vmem:[#allocation2 + $0x18] sm:$0xff] %v802_v2 }
  0xe7   : > { %807 = vst [vmem:[#allocation2 + $0x8] sm:$0xff] %v803_v3 }
  0xe8 PF: > { %v814_v5 = vld [vmem:[#allocation9 + $0x10] sm:$0xff]  ;;  %v812_v8 = vld [vmem:[#allocation9] sm:$0xff]  ;;  %v815_v11 = vld [vmem:[#allocation9 + $0x18] sm:$0xff]  ;;  %v5615_v16 = vmov 128.0   ;;  %s7774_s1 = scalar_lea.vmem [#allocation11], %s5985_s13  ;;  %vm1168_vm13 = vcmask 130048  }
  0xe9   : > { %v813_v13 = vld [vmem:[#allocation9 + $0x8] sm:$0xff]  ;;  %5012 = vrcp.f32 %v5615_v16  ;;  %v4781_v40 = vld [vmem:[%s6016_s26 + $0xb0] sm:$0xf0]  ;;  %v4780_v41 = vld [vmem:[%s6016_s26 + $0xac] sm:$0xf]  ;;  %s5616_s19 = smov 80  }
  0xea   : > { %v4405_v39 = vld [vmem:[%s6016_s26 + $0xa8] sm:$0xf]  ;;  %v4407_v43 = vld [vmem:[%s6016_s26 + $0xb4] sm:$0xf0]  ;;  %v4413_v44 = vld [vmem:[%s6016_s26 + $0xb0] sm:$0xf] }
  0xeb   : > { %v808_v6 = vld [vmem:[#allocation2 + $0x10] sm:$0xff]  ;;  %v4406_v42 = vor.u32 %v4781_v40, %v4405_v39  ;;  %v4782_v45 = vld [vmem:[%s6016_s26 + $0xb8] sm:$0xf0]  ;;  %v4410_v46 = vor.u32 %v4780_v41, %v4407_v43  ;;  %v4777_v50 = vld [vmem:[%s6016_s26 + $0x94] sm:$0xf]  ;;  %s5617_s29 = smov 112  }
  0xec   : > { %v6033_v9 = vadd.f32 %v812_v8, %v808_v6  ;;  %v809_v12 = vld [vmem:[#allocation2] sm:$0xff]  ;;  %v4414_v47 = vor.u32 %v4782_v45, %v4413_v44  ;;  %v4393_v48 = vld [vmem:[%s6016_s26 + $0x90] sm:$0xf]  ;;  %v4401_v53 = vld [vmem:[%s6016_s26 + $0x98] sm:$0xf]  ;;  %s5618_s3 = smov 96  }
  0xed   : > { %v810_v4 = vld [vmem:[#allocation2 + $0x18] sm:$0xff]  ;;  %v6039_v15 = vadd.f32 %v813_v13, %v809_v12  ;;  %1085 = vmatpush.bf16.msra.mxu0 %v4406_v42  ;;  %1104 = vmatpush.bf16.msra.mxu1 %v4410_v46  ;;  %v4778_v49 = vld [vmem:[%s6016_s26 + $0x98] sm:$0xf0]  ;;  %v4395_v52 = vld [vmem:[%s6016_s26 + $0x9c] sm:$0xf0]  ;;  %s5620_s24 = smov 48  }
  0xee   : > { %v6031_v7 = vadd.f32 %v814_v5, %v810_v4  ;;  %v811_v10 = vld [vmem:[#allocation2 + $0x8] sm:$0xff]  ;;  %822 = vadd.xlane.f32.xlu0 %v6033_v9  ;;  %1123 = vmatpush.bf16.msra.mxu2 %v4414_v47  ;;  %v4394_v51 = vor.u32 %v4778_v49, %v4393_v48  ;;  %v4398_v55 = vor.u32 %v4777_v50, %v4395_v52  ;;  %v4381_v57 = vld [vmem:[%s6016_s26 + $0x78] sm:$0xf]  ;;  %v4774_v59 = vld [vmem:[%s6016_s26 + $0x7c] sm:$0xf]  ;;  %s5621_s30 = smov 32  }
  0xef   : > { %v6037_v14 = vadd.f32 %v815_v11, %v811_v10  ;;  %v5013_v17 = vpop.eup %5012  ;;  %v4779_v54 = vld [vmem:[%s6016_s26 + $0xa0] sm:$0xf0]  ;;  %v4383_v61 = vld [vmem:[%s6016_s26 + $0x84] sm:$0xf0]  ;;  %v4389_v62 = vld [vmem:[%s6016_s26 + $0x80] sm:$0xf] }
  0xf0   : > { %826 = vadd.xlane.f32.xlu1 %v6031_v7  ;;  %v831_v18 = vmul.f32 128.0, %v5013_v17  ;;  %vm835_vm0 = vweird.f32 %v5013_v17  ;;  %v4402_v56 = vor.u32 %v4779_v54, %v4401_v53  ;;  %v4775_v58 = vld [vmem:[%s6016_s26 + $0x80] sm:$0xf0]  ;;  %v4776_v63 = vld [vmem:[%s6016_s26 + $0x88] sm:$0xf0]  ;;  %v4386_v0 = vor.u32 %v4774_v59, %v4383_v61  ;;  %s5622_s21 = smov 16  }
  0xf1   : > { %1086 = vmatpush.bf16.msra.mxu0 %v4394_v51  ;;  %1105 = vmatpush.bf16.msra.mxu1 %v4398_v55  ;;  %v4382_v60 = vor.u32 %v4775_v58, %v4381_v57  ;;  %v4390_v1 = vor.u32 %v4776_v63, %v4389_v62  ;;  %v4369_v2 = vld [vmem:[%s6016_s26 + $0x60] sm:$0xf]  ;;  %v4772_v3 = vld [vmem:[%s6016_s26 + $0x68] sm:$0xf0]  ;;  %v4771_v4 = vld [vmem:[%s6016_s26 + $0x64] sm:$0xf] }
  0xf2   : > { %v832_v19 = vsub.f32 1.0, %v831_v18  ;;  %1124 = vmatpush.bf16.msra.mxu2 %v4402_v56  ;;  %v4370_v5 = vor.u32 %v4772_v3, %v4369_v2  ;;  %v4371_v6 = vld [vmem:[%s6016_s26 + $0x6c] sm:$0xf0]  ;;  %v4377_v8 = vld [vmem:[%s6016_s26 + $0x68] sm:$0xf]  ;;  %vm1489_vm14 = vcmask 261248  }
  0xf3   : > { %v4773_v10 = vld [vmem:[%s6016_s26 + $0x70] sm:$0xf0]  ;;  %v4374_v11 = vor.u32 %v4771_v4, %v4371_v6  ;;  %v4357_v13 = vld [vmem:[%s6016_s26 + $0x48] sm:$0xf]  ;;  %v4763_v39 = vld [vmem:[%s6016_s26 + $0x20] sm:$0xf0] }
  0xf4   : > { %v833_v20 = vmul.f32 %v5013_v17, %v832_v19  ;;  %v4378_v12 = vor.u32 %v4773_v10, %v4377_v8  ;;  %v4769_v16 = vld [vmem:[%s6016_s26 + $0x50] sm:$0xf0]  ;;  %v4359_v19 = vld [vmem:[%s6016_s26 + $0x54] sm:$0xf0]  ;;  %v4762_v40 = vld [vmem:[%s6016_s26 + $0x1c] sm:$0xf] }
  0xf5   : > { %1087 = vmatpush.bf16.msra.mxu0 %v4382_v60  ;;  %1106 = vmatpush.bf16.msra.mxu1 %v4386_v0  ;;  %v4358_v18 = vor.u32 %v4769_v16, %v4357_v13  ;;  %v4335_v42 = vld [vmem:[%s6016_s26 + $0x24] sm:$0xf0]  ;;  %v4341_v43 = vld [vmem:[%s6016_s26 + $0x20] sm:$0xf]  ;;  %v4764_v44 = vld [vmem:[%s6016_s26 + $0x28] sm:$0xf0] }
  0xf6   : > { %824 = vadd.xlane.f32.xlu0 %v6039_v15  ;;  %v834_v21 = vadd.f32 %v5013_v17, %v833_v20  ;;  %1125 = vmatpush.bf16.msra.mxu2 %v4390_v1  ;;  %v4365_v20 = vld [vmem:[%s6016_s26 + $0x50] sm:$0xf]  ;;  %v4338_v45 = vor.u32 %v4762_v40, %v4335_v42  ;;  %v4342_v46 = vor.u32 %v4764_v44, %v4341_v43  ;;  %v4321_v47 = vld [vmem:[%s6016_s26] sm:$0xf]  ;;  %v4760_v48 = vld [vmem:[%s6016_s26 + $0x8] sm:$0xf0] }
  0xf7   : > { %v4759_v49 = vld [vmem:[%s6016_s26 + $0x4] sm:$0xf]  ;;  %v4322_v52 = vor.u32 %v4760_v48, %v4321_v47  ;;  %v4323_v53 = vld [vmem:[%s6016_s26 + $0xc] sm:$0xf0]  ;;  %v4329_v54 = vld [vmem:[%s6016_s26 + $0x8] sm:$0xf] }
  0xf8   : > { %828 = vadd.xlane.f32.xlu1 %v6037_v14  ;;  %v6043_v22 = vsel %vm835_vm0, %v5013_v17, %v834_v21  ;;  %v4768_v17 = vld [vmem:[%s6016_s26 + $0x4c] sm:$0xf]  ;;  %v4770_v21 = vld [vmem:[%s6016_s26 + $0x58] sm:$0xf0]  ;;  %v4761_v55 = vld [vmem:[%s6016_s26 + $0x10] sm:$0xf0]  ;;  %v4326_v57 = vor.u32 %v4759_v49, %v4323_v53 }
  0xf9   : > { %1088 = vmatpush.bf16.msra.mxu0 %v4370_v5  ;;  %1107 = vmatpush.bf16.msra.mxu1 %v4374_v11  ;;  %v4330_v58 = vor.u32 %v4761_v55, %v4329_v54  ;;  %v5007_v40 = vld [vmem:[%s641_s20] ss:$0 sm:$0xff]  ;;  %vm1656_vm15 = vcmask 392448   ;;  %vm1823_vm0 = vcmask 523648   ;;  %s4883_s4 = scalar_select %p5773_p12, [#allocation5], [#allocation20] }
  0xfa   : > { %1126 = vmatpush.bf16.msra.mxu2 %v4378_v12  ;;  %s7831_s23 = smov (!%p5773_p12, %s5737_s23), 0 }
  0xfd   : > { %1089 = vmatpush.bf16.msra.mxu0 %v4358_v18 }
 0x161   : > { %v823_v25 = vpop.xlane.xlu0 %822 }
 0x162   : > { %v837_v26 = vmul.f32 %v6043_v22, %v823_v25  ;;  %v4345_v25 = vld [vmem:[%s6016_s26 + $0x30] sm:$0xf] }
 0x163   : > { %v827_v23 = vpop.xlane.xlu1 %826 }
 0x164   : > { %v839_v24 = vmul.f32 %v6043_v22, %v827_v23  ;;  %v6051_v28 = vsub.f32 %v6033_v9, %v837_v26  ;;  %v4362_v23 = vor.u32 %v4768_v17, %v4359_v19  ;;  %v4766_v26 = vld [vmem:[%s6016_s26 + $0x38] sm:$0xf0] }
 0x166   : > { %v6048_v27 = vsub.f32 %v6031_v7, %v839_v24  ;;  %v845_v30 = vmul.f32 %v6051_v28, %v6051_v28  ;;  %v4366_v24 = vor.u32 %v4770_v21, %v4365_v20  ;;  %1108 = vmatpush.bf16.msra.mxu1 %v4362_v23 }
 0x168   : > { %v847_v29 = vmul.f32 %v6048_v27, %v6048_v27  ;;  %849 = vadd.xlane.f32.xlu2 %v845_v30  ;;  %1127 = vmatpush.bf16.msra.mxu2 %v4366_v24  ;;  %v4346_v30 = vor.u32 %v4766_v26, %v4345_v25 }
 0x169   : > { %v825_v33 = vpop.xlane.xlu0 %824 }
 0x16a   : > { %853 = vadd.xlane.f32.xlu0 %v847_v29  ;;  %v838_v34 = vmul.f32 %v6043_v22, %v825_v33  ;;  %v4765_v29 = vld [vmem:[%s6016_s26 + $0x34] sm:$0xf]  ;;  %v4767_v33 = vld [vmem:[%s6016_s26 + $0x40] sm:$0xf0]  ;;  %1090 = vmatpush.bf16.msra.mxu0 %v4346_v30 }
 0x16b   : > { %v829_v31 = vpop.xlane.xlu1 %828 }
 0x16c   : > { %v840_v32 = vmul.f32 %v6043_v22, %v829_v31  ;;  %v6063_v36 = vsub.f32 %v6039_v15, %v838_v34  ;;  %v4347_v31 = vld [vmem:[%s6016_s26 + $0x3c] sm:$0xf0] }
 0x16d   : > { %v4350_v34 = vor.u32 %v4765_v29, %v4347_v31  ;;  %v5006_v31 = vld [vmem:[%s7774_s1] ss:$0 sm:$0xff] }
 0x16e   : > { %v6060_v35 = vsub.f32 %v6037_v14, %v840_v32  ;;  %v846_v38 = vmul.f32 %v6063_v36, %v6063_v36  ;;  %v4353_v32 = vld [vmem:[%s6016_s26 + $0x38] sm:$0xf] }
 0x16f   : > { %1109 = vmatpush.bf16.msra.mxu1 %v4350_v34 }
 0x170   : > { %v848_v37 = vmul.f32 %v6060_v35, %v6060_v35  ;;  %851 = vadd.xlane.f32.xlu2 %v846_v38  ;;  %v4333_v38 = vld [vmem:[%s6016_s26 + $0x18] sm:$0xf]  ;;  %s5619_s26 = smov 64  }
 0x171   : > { %v4334_v41 = vor.u32 %v4763_v39, %v4333_v38 }
 0x172   : > { %855 = vadd.xlane.f32.xlu1 %v848_v37  ;;  %v4354_v37 = vor.u32 %v4767_v33, %v4353_v32 }
 0x173   : > { %1091 = vmatpush.bf16.msra.mxu0 %v4334_v41  ;;  %1110 = vmatpush.bf16.msra.mxu1 %v4338_v45 }
 0x174   : > { %1128 = vmatpush.bf16.msra.mxu2 %v4354_v37 }
 0x177   : > { %1092 = vmatpush.bf16.msra.mxu0 %v4322_v52  ;;  %1111 = vmatpush.bf16.msra.mxu1 %v4326_v57 }
 0x178   : > { %1129 = vmatpush.bf16.msra.mxu2 %v4342_v46 }
 0x17c   : > { %1130 = vmatpush.bf16.msra.mxu2 %v4330_v58 }
 0x1db   : > { %v850_v50 = vpop.xlane.xlu2 %849 }
 0x1dc   : > { %v857_v56 = vmul.f32 %v850_v50, %v6043_v22 }
 0x1dd   : > { %v854_v51 = vpop.xlane.xlu0 %853 }
 0x1de   : > { %v861_v59 = vadd.f32 1e-05, %v857_v56  ;;  %v859_v60 = vmul.f32 %v854_v51, %v6043_v22 }
 0x1e0   : > { %5014 = vrsqrt.f32 %v861_v59  ;;  %v863_v61 = vadd.f32 1e-05, %v859_v60  ;;  %vm871_vm2 = vweird.f32 %v861_v59 }
 0x1e2   : > { %5016 = vrsqrt.f32 %v863_v61  ;;  %vm891_vm9 = vweird.f32 %v863_v61 }
 0x1e3   : > { %v852_v0 = vpop.xlane.xlu2 %851 }
 0x1e4   : > { %v858_v1 = vmul.f32 %v852_v0, %v6043_v22 }
 0x1e5   : > { %v856_v62 = vpop.xlane.xlu1 %855 }
 0x1e6   : > { %v860_v63 = vmul.f32 %v856_v62, %v6043_v22  ;;  %v5015_v3 = vpop.eup %5014  ;;  %v862_v4 = vadd.f32 1e-05, %v858_v1 }
 0x1e7   : > { %v866_v5 = vmul.f32 %v5015_v3, %v861_v59  ;;  %vm872_vm1 = vweird.f32 %v5015_v3 }
 0x1e8   : > { %v864_v2 = vadd.f32 1e-05, %v860_v63  ;;  %v5017_v10 = vpop.eup %5016  ;;  %vm873_vm3 = vmor %vm871_vm2, %vm872_vm1  ;;  %vm881_vm5 = vweird.f32 %v862_v4  ;;  %vm1990_vm1 = vcmask 654848   ;;  %vm2157_vm2 = vcmask 786048  }
 0x1e9   : > { %v867_v6 = vmul.f32 %v5015_v3, %v866_v5  ;;  %v886_v18 = vmul.f32 %v5017_v10, %v863_v61  ;;  %vm892_vm10 = vweird.f32 %v5017_v10 }
 0x1ea   : > { %5018 = vrsqrt.f32 %v864_v2  ;;  %vm901_vm7 = vweird.f32 %v864_v2  ;;  %vm893_vm12 = vmor %vm891_vm9, %vm892_vm10 }
 0x1eb   : > { %5020 = vrsqrt.f32 %v862_v4  ;;  %v868_v8 = vmul.f32 0.5, %v867_v6  ;;  %v887_v24 = vmul.f32 %v5017_v10, %v886_v18 }
 0x1ed   : > { %v869_v12 = vsub.f32 1.5, %v868_v8  ;;  %v888_v32 = vmul.f32 0.5, %v887_v24 }
 0x1ef   : > { %v870_v17 = vmul.f32 %v5015_v3, %v869_v12  ;;  %v889_v41 = vsub.f32 1.5, %v888_v32 }
 0x1f0   : > { %v5019_v11 = vpop.eup %5018 }
 0x1f1   : > { %v5021_v13 = vpop.eup %5020  ;;  %v896_v16 = vmul.f32 %v5019_v11, %v864_v2  ;;  %v874_v23 = vsel %vm873_vm3, %v5015_v3, %v870_v17  ;;  %vm902_vm8 = vweird.f32 %v5019_v11  ;;  %v890_v45 = vmul.f32 %v5017_v10, %v889_v41 }
 0x1f2   : > { %v876_v19 = vmul.f32 %v5021_v13, %v862_v4  ;;  %vm882_vm4 = vweird.f32 %v5021_v13  ;;  %v905_v30 = vmul.f32 %v874_v23, %v6051_v28  ;;  %vm903_vm11 = vmor %vm901_vm7, %vm902_vm8  ;;  %vm2324_vm3 = vcmask 917248  }
 0x1f3   : > { %v897_v20 = vmul.f32 %v5019_v11, %v896_v16  ;;  %vm883_vm6 = vmor %vm881_vm5, %vm882_vm4  ;;  %vm2491_vm4 = vcmask 1048448  }
 0x1f4   : > { %v877_v21 = vmul.f32 %v5021_v13, %v876_v19  ;;  %v912_v39 = vmul.f32 %v5006_v31, %v905_v30 }
 0x1f5   : > { %v898_v26 = vmul.f32 0.5, %v897_v20 }
 0x1f6   : > { %v878_v25 = vmul.f32 0.5, %v877_v21  ;;  %v919_v43 = vadd.f32 %v5007_v40, %v912_v39 }
 0x1f7   : > { %v899_v34 = vsub.f32 1.5, %v898_v26 }
 0x1f8   : > { %v879_v29 = vsub.f32 1.5, %v878_v25 }
 0x1f9   : > { %v900_v28 = vmul.f32 %v5019_v11, %v899_v34 }
 0x1fa   : > { %v880_v33 = vmul.f32 %v5021_v13, %v879_v29 }
 0x1fb   : > { %v904_v47 = vsel %vm903_vm11, %v5019_v11, %v900_v28 }
 0x1fc   : > { %v884_v37 = vsel %vm883_vm6, %v5021_v13, %v880_v33  ;;  %v908_v48 = vmul.f32 %v904_v47, %v6060_v35 }
 0x1fd   : > { %v906_v38 = vmul.f32 %v884_v37, %v6063_v36  ;;  %v894_v36 = vsel %vm893_vm12, %v5017_v10, %v890_v45 }
 0x1fe   : > { %v907_v49 = vmul.f32 %v894_v36, %v6048_v27  ;;  %v915_v50 = vmul.f32 %v5006_v31, %v908_v48 }
 0x1ff   : > { %v913_v42 = vmul.f32 %v5006_v31, %v906_v38 }
 0x200   : > { %v914_v51 = vmul.f32 %v5006_v31, %v907_v49  ;;  %v922_v52 = vadd.f32 %v5007_v40, %v915_v50 }
 0x201   : > { %v920_v44 = vadd.f32 %v5007_v40, %v913_v42 }
 0x202   : > { %v921_v53 = vadd.f32 %v5007_v40, %v914_v51 }
 0x203   : > { %v923_v46 = vpack.c.bf16 %v920_v44, %v919_v43 }
 0x204   : > { %v924_v54 = vpack.c.bf16 %v922_v52, %v921_v53 }
 0x205   : > { %1093 = vmatmul.bf16.vlgmr.msra.gmra.mxu0 %v923_v46  ;;  %1112 = vmatmul.bf16.vlgmr.msra.gmra.mxu1 %v923_v46 }
 0x206   : > { %1131 = vmatmul.bf16.vlgmr.msra.gmra.mxu2 %v923_v46 }
 0x215   : > { %1098 = vmatmul.bf16.gmra.mxu0 %v924_v54  ;;  %1117 = vmatmul.bf16.gmra.mxu1 %v924_v54 }
 0x216   : > { %1136 = vmatmul.bf16.gmra.mxu2 %v924_v54 }
 0x282   : > { %v1094_v55 = vpop.f32.mrf.mxu0  ;;  %v1113_v56 = vpop.f32.mrf.mxu1 }
 0x283   : > { %v1150_v57 = vpack.c.bf16 %v1113_v56, %v1113_v56  ;;  %v1142_v63 = vmul.f32 0.25, %v1094_v55 }
 0x285   : > { %v1165_v35 = vunpack.c.l.b16 %v1150_v57  ;;  %v1146_v2 = vpack.c.bf16 %v1142_v63, %v1142_v63 }
 0x287   : > { %v1160_v10 = vunpack.c.l.b16 %v1146_v2 }
 0x289   : > { %v1132_v58 = vpop.f32.mrf.mxu2 }
 0x28a   : > { %v1096_v59 = vpop.f32.mrf.mxu0  ;;  %v1115_v60 = vpop.f32.mrf.mxu1  ;;  %v1154_v19 = vpack.c.bf16 %v1132_v58, %v1132_v58 }
 0x28b   : > { %v1143_v61 = vmul.f32 0.25, %v1096_v59  ;;  %v1151_v62 = vpack.c.bf16 %v1115_v60, %v1115_v60 }
 0x28c   : > { %v1274_v29 = vunpack.c.l.b16 %v1154_v19 }
 0x28d   : > { %v1166_v0 = vunpack.c.l.b16 %v1151_v62  ;;  %v1147_v27 = vpack.c.bf16 %v1143_v61, %v1143_v61 }
 0x28f   : > { %v6129_v1 = vpack.c.b16 %v1166_v0, %v1165_v35  ;;  %v1161_v8 = vunpack.c.l.b16 %v1147_v27 }
 0x291   : > { %v1134_v3 = vpop.f32.mrf.mxu2  ;;  %1663 = vrot.lane.b32.xlu0 %v6129_v1, %s5616_s19  ;;  %1329 = vrot.lane.b32.xlu2 %v6129_v1, %s5617_s29  ;;  %v1173_v4 = vsel %vm1168_vm13, %v6129_v1, 0  ;;  %v1162_v11 = vpack.c.b16 %v1161_v8, %v1160_v10 }
 0x292   : > { %v1099_v5 = vpop.f32.mrf.mxu0  ;;  %v1118_v6 = vpop.f32.mrf.mxu1  ;;  %1182 = vmatpush.bf16.xpose.msra.mxu3 %v1173_v4  ;;  %v1155_v12 = vpack.c.bf16 %v1134_v3, %v1134_v3 }
 0x293   : > { %v1152_v13 = vpack.c.bf16 %v1118_v6, %v1118_v6  ;;  %v1144_v26 = vmul.f32 0.25, %v1099_v5 }
 0x294   : > { %v1275_v23 = vunpack.c.l.b16 %v1155_v12 }
 0x295   : > { %v1196_v24 = vunpack.c.l.b16 %v1152_v13  ;;  %v1148_v37 = vpack.c.bf16 %v1144_v26, %v1144_v26 }
 0x296   : > { %v6141_v32 = vpack.c.b16 %v1275_v23, %v1274_v29 }
 0x297   : > { %v1191_v42 = vunpack.c.l.b16 %v1148_v37 }
 0x299   : > { %v1137_v16 = vpop.f32.mrf.mxu2  ;;  %1496 = vrot.lane.b32.xlu2 %v6129_v1, %s5618_s3  ;;  %1327 = vrot.lane.b32.xlu0 %v1162_v11, %s5617_s29 }
 0x29a   : > { %4415 = vmatmul.msk.bf16.vlgmr.msra.gmra.mxu3 %vm1168_vm13, %v1162_v11  ;;  %v1101_v17 = vpop.f32.mrf.mxu0  ;;  %v1120_v18 = vpop.f32.mrf.mxu1  ;;  %v1156_v39 = vpack.c.bf16 %v1137_v16, %v1137_v16 }
 0x29b   : > { %v1153_v20 = vpack.c.bf16 %v1120_v18, %v1120_v18  ;;  %v1145_v21 = vmul.f32 0.25, %v1101_v17 }
 0x29c   : > { %v1302_v28 = vunpack.c.l.b16 %v1156_v39 }
 0x29d   : > { %v1197_v25 = vunpack.c.l.b16 %v1153_v20  ;;  %v1149_v31 = vpack.c.bf16 %v1145_v21, %v1145_v21 }
 0x29f   : > { %v1198_v30 = vpack.c.b16 %v1197_v25, %v1196_v24  ;;  %v1192_v40 = vunpack.c.l.b16 %v1149_v31 }
 0x2a1   : > { %v1139_v33 = vpop.f32.mrf.mxu2  ;;  %1494 = vrot.lane.b32.xlu2 %v1162_v11, %s5618_s3  ;;  %1828 = vrot.lane.b32.xlu0 %v1162_v11, %s5619_s26  ;;  %v1203_v34 = vsel %vm1168_vm13, %v1198_v30, 0  ;;  %v1193_v43 = vpack.c.b16 %v1192_v40, %v1191_v42 }
 0x2a2   : > { %v1157_v38 = vpack.c.bf16 %v1139_v33, %v1139_v33  ;;  %1353 = vrot.lane.b32.xlu1 %v1198_v30, %s5617_s29  ;;  %1212 = vmatpush.bf16.xpose.msrb.mxu3 %v1203_v34 }
 0x2a4   : > { %v1303_v41 = vunpack.c.l.b16 %v1157_v38 }
 0x2a6   : > { %v6148_v44 = vpack.c.b16 %v1303_v41, %v1302_v28 }
 0x2a9   : > { %1830 = vrot.lane.b32.xlu2 %v6129_v1, %s5619_s26  ;;  %1687 = vrot.lane.b32.xlu0 %v1198_v30, %s5616_s19 }
 0x2aa   : > { %1288 = vmatpush.bf16.msra.mxu3 %v6141_v32  ;;  %1661 = vrot.lane.b32.xlu1 %v1162_v11, %s5616_s19 }
 0x2ab   : > { %4416 = vmatmul.msk.bf16.vlgmr.msrb.gmra.mxu3 %vm1168_vm13, %v1193_v43 }
 0x2ae   : > { %1316 = vmatpush.bf16.msrb.mxu3 %v6148_v44 }
 0x2b1   : > { %1995 = vrot.lane.b32.xlu2 %v1162_v11, %s5620_s24  ;;  %1351 = vrot.lane.b32.xlu0 %v1193_v43, %s5617_s29 }
 0x2b2   : > { %1520 = vrot.lane.b32.xlu1 %v1198_v30, %s5618_s3 }
 0x2b9   : > { %1854 = vrot.lane.b32.xlu2 %v1198_v30, %s5619_s26  ;;  %2164 = vrot.lane.b32.xlu0 %v6129_v1, %s5621_s30 }
 0x2ba   : > { %1997 = vrot.lane.b32.xlu1 %v6129_v1, %s5620_s24 }
 0x2c1   : > { %1518 = vrot.lane.b32.xlu2 %v1193_v43, %s5618_s3  ;;  %2188 = vrot.lane.b32.xlu0 %v1198_v30, %s5621_s30 }
 0x2c2   : > { %2021 = vrot.lane.b32.xlu1 %v1198_v30, %s5620_s24 }
 0x2c9   : > { %2331 = vrot.lane.b32.xlu2 %v6129_v1, %s5622_s21  ;;  %2329 = vrot.lane.b32.xlu0 %v1162_v11, %s5622_s21 }
 0x2ca   : > { %1685 = vrot.lane.b32.xlu1 %v1193_v43, %s5616_s19 }
 0x2d1   : > { %2355 = vrot.lane.b32.xlu2 %v1198_v30, %s5622_s21  ;;  %1929 = vrot.lane.b32.xlu0 %v6141_v32, %s5619_s26 }
 0x2d2   : > { %2162 = vrot.lane.b32.xlu1 %v1162_v11, %s5621_s30 }
 0x2d9   : > { %1428 = vrot.lane.b32.xlu2 %v6141_v32, %s5617_s29  ;;  %1852 = vrot.lane.b32.xlu0 %v1193_v43, %s5619_s26 }
 0x2da   : > { %1595 = vrot.lane.b32.xlu1 %v6141_v32, %s5618_s3 }
 0x2e1   : > { %2096 = vrot.lane.b32.xlu2 %v6141_v32, %s5620_s24  ;;  %1453 = vrot.lane.b32.xlu0 %v6148_v44, %s5617_s29 }
 0x2e2   : > { %1762 = vrot.lane.b32.xlu1 %v6141_v32, %s5616_s19 }
 0x2e9   : > { %2019 = vrot.lane.b32.xlu2 %v1193_v43, %s5620_s24  ;;  %1620 = vrot.lane.b32.xlu0 %v6148_v44, %s5618_s3 }
 0x2ea   : > { %2186 = vrot.lane.b32.xlu1 %v1193_v43, %s5621_s30 }
 0x2eb   : > { %v1330_v45 = vpop.permute.xlu2 %1329 }
 0x2ec   : > { %v1335_v46 = vsel %vm1168_vm13, %v1330_v45, 0 }
 0x2ed   : > { %1344 = vmatpush.bf16.xpose.msrb.mxu1 %v1335_v46 }
 0x2f1   : > { %1787 = vrot.lane.b32.xlu2 %v6148_v44, %s5616_s19 }
 0x2f2   : > { %2353 = vrot.lane.b32.xlu1 %v1193_v43, %s5622_s21 }
 0x2f3   : > { %v1497_v47 = vpop.permute.xlu2 %1496 }
 0x2f4   : > { %v1502_v36 = vsel %vm1168_vm13, %v1497_v47, 0 }
 0x2f5   : > { %1511 = vmatpush.bf16.xpose.msrb.mxu0 %v1502_v36 }
 0x2fa   : > { %1954 = vrot.lane.b32.xlu1 %v6148_v44, %s5619_s26 }
 0x2fb   : > { %v1495_v48 = vpop.permute.xlu2 %1494 }
 0x2fc   : > { %4423 = vmatmul.msk.bf16.vlgmr.msrb.gmra.mxu0 %vm1168_vm13, %v1495_v48 }
 0x303   : > { %v1831_v49 = vpop.permute.xlu2 %1830  ;;  %v1664_v50 = vpop.permute.xlu0 %1663 }
 0x304   : > { %v1836_v51 = vsel %vm1168_vm13, %v1831_v49, 0  ;;  %v1669_v52 = vsel %vm1168_vm13, %v1664_v50, 0 }
 0x305   : > { %1678 = vmatpush.bf16.xpose.msra.mxu0 %v1669_v52 }
 0x30b   : > { %v1996_v53 = vpop.permute.xlu2 %1995  ;;  %v1328_v54 = vpop.permute.xlu0 %1327 }
 0x30c   : > { %4419 = vmatmul.msk.bf16.vlgmr.msrb.gmra.mxu1 %vm1168_vm13, %v1328_v54 }
 0x30d   : > { %1845 = vmatpush.bf16.xpose.msrb.mxu0 %v1836_v51 }
 0x313   : > { %v1855_v55 = vpop.permute.xlu2 %1854  ;;  %v1829_v56 = vpop.permute.xlu0 %1828 }
 0x314   : > { %v1354_v57 = vpop.permute.xlu1 %1353  ;;  %v1860_v17 = vsel %vm1168_vm13, %v1855_v55, 0 }
 0x315   : > { %v1359_v58 = vsel %vm1168_vm13, %v1354_v57, 0 }
 0x316   : > { %1368 = vmatpush.bf16.xpose.msra.mxu1 %v1359_v58 }
 0x31b   : > { %v1519_v59 = vpop.permute.xlu2 %1518  ;;  %v1688_v60 = vpop.permute.xlu0 %1687 }
 0x31c   : > { %v1662_v61 = vpop.permute.xlu1 %1661  ;;  %v1693_v3 = vsel %vm1168_vm13, %v1688_v60, 0 }
 0x31d   : > { %v6202_v62 = vpop.f32.mrf.mxu3  ;;  %4427 = vmatmul.msk.bf16.vlgmr.msra.gmra.mxu0 %vm1168_vm13, %v1662_v61 }
 0x31e   : > { %v1219_v63 = vsel %vm1168_vm13, %v6202_v62, -inf }
 0x31f   : > { %1220 = vmax.xlane.f32.xlu0 %v1219_v63 }
 0x323   : > { %v2332_v35 = vpop.permute.xlu2 %2331  ;;  %v1352_v0 = vpop.permute.xlu0 %1351 }
 0x324   : > { %v1521_v27 = vpop.permute.xlu1 %1520  ;;  %4420 = vmatmul.msk.bf16.vlgmr.msra.gmra.mxu1 %vm1168_vm13, %v1352_v0  ;;  %v2337_v24 = vsel %vm1168_vm13, %v2332_v35, 0 }
 0x325   : > { %v1526_v1 = vsel %vm1168_vm13, %v1521_v27, 0  ;;  %v6209_v2 = vpop.f32.mrf.mxu3 }
 0x326   : > { %1535 = vmatpush.bf16.xpose.msrb.mxu1 %v1526_v1  ;;  %v1222_v4 = vsel %vm1168_vm13, %v6209_v2, -inf }
 0x327   : > { %1223 = vmax.xlane.f32.xlu2 %v1222_v4 }
 0x32b   : > { %v2356_v5 = vpop.permute.xlu2 %2355  ;;  %v2165_v6 = vpop.permute.xlu0 %2164 }
 0x32c   : > { %v1998_v8 = vpop.permute.xlu1 %1997  ;;  %v2170_v10 = vsel %vm1168_vm13, %v2165_v6, 0  ;;  %v2361_v39 = vsel %vm1168_vm13, %v2356_v5, 0 }
 0x32d   : > { %v2003_v11 = vsel %vm1168_vm13, %v1998_v8, 0  ;;  %4431 = vmatmul.msk.bf16.vlgmr.msrb.gmra.mxu0 %vm1168_vm13, %v1829_v56 }
 0x32e   : > { %1702 = vmatpush.bf16.xpose.msra.mxu1 %v1693_v3  ;;  %v6216_v12 = vpop.f32.mrf.mxu3  ;;  %2012 = vmatpush.bf16.xpose.msra.mxu0 %v2003_v11 }
 0x32f   : > { %v1225_v13 = vsel %vm1168_vm13, %v6216_v12, -inf }
 0x330   : > { %1226 = vmax.xlane.f32.xlu1 %v1225_v13 }
 0x333   : > { %v1429_v16 = vpop.permute.xlu2 %1428  ;;  %v2189_v19 = vpop.permute.xlu0 %2188 }
 0x334   : > { %v2022_v18 = vpop.permute.xlu1 %2021  ;;  %1441 = vmatpush.bf16.msrb.mxu2 %v1429_v16  ;;  %4424 = vmatmul.msk.bf16.vlgmr.msrb.gmra.mxu1 %vm1168_vm13, %v1519_v59  ;;  %v2194_v34 = vsel %vm1168_vm13, %v2189_v19, 0 }
 0x335   : > { %v2027_v26 = vsel %vm1168_vm13, %v2022_v18, 0 }
 0x336   : > { %2179 = vmatpush.bf16.xpose.msrb.mxu0 %v2170_v10  ;;  %v6223_v20 = vpop.f32.mrf.mxu3  ;;  %1869 = vmatpush.bf16.xpose.msrb.mxu1 %v1860_v17 }
 0x337   : > { %v1228_v21 = vsel %vm1168_vm13, %v6223_v20, -inf }
 0x338   : > { %1229 = vmax.xlane.f32.xlu0 %v1228_v21 }
 0x33b   : > { %v2330_v25 = vpop.permute.xlu0 %2329  ;;  %v6236_v37 = vpop.permute.xlu2 %2096 }
 0x33c   : > { %v1686_v23 = vpop.permute.xlu1 %1685 }
 0x33d   : > { %4435 = vmatmul.msk.bf16.vlgmr.msra.gmra.mxu0 %vm1168_vm13, %v1996_v53 }
 0x33e   : > { %2346 = vmatpush.bf16.xpose.msra.mxu0 %v2337_v24 }
 0x343   : > { %v6231_v30 = vpop.permute.xlu0 %1929  ;;  %v2020_v38 = vpop.permute.xlu2 %2019 }
 0x344   : > { %v2163_v29 = vpop.permute.xlu1 %2162  ;;  %4428 = vmatmul.msk.bf16.vlgmr.msra.gmra.mxu1 %vm1168_vm13, %v1686_v23 }
 0x345   : > { %2036 = vmatpush.bf16.xpose.msra.mxu1 %v2027_v26 }
 0x34b   : > { %v1853_v33 = vpop.permute.xlu0 %1852  ;;  %v6266_v55 = vpop.permute.xlu2 %1787 }
 0x34c   : > { %v1596_v31 = vpop.permute.xlu1 %1595 }
 0x34d   : > { %1608 = vmatpush.bf16.msra.mxu2 %v1596_v31  ;;  %4439 = vmatmul.msk.bf16.vlgmr.msrb.gmra.mxu0 %vm1168_vm13, %v2163_v29 }
 0x353   : > { %v6248_v43 = vpop.permute.xlu0 %1453 }
 0x354   : > { %4432 = vmatmul.msk.bf16.vlgmr.msrb.gmra.mxu1 %vm1168_vm13, %v1853_v33  ;;  %v6241_v40 = vpop.permute.xlu1 %1762 }
 0x355   : > { %2203 = vmatpush.bf16.xpose.msrb.mxu1 %v2194_v34 }
 0x35b   : > { %v6257_v48 = vpop.permute.xlu0 %1620 }
 0x35c   : > { %v2187_v41 = vpop.permute.xlu1 %2186 }
 0x35d   : > { %4443 = vmatmul.msk.bf16.vlgmr.msra.gmra.mxu0 %vm1168_vm13, %v2330_v25 }
 0x364   : > { %4436 = vmatmul.msk.bf16.vlgmr.msra.gmra.mxu1 %vm1168_vm13, %v2020_v38  ;;  %v2354_v47 = vpop.permute.xlu1 %2353 }
 0x365   : > { %2370 = vmatpush.bf16.xpose.msra.mxu1 %v2361_v39 }
 0x36c   : > { %v6268_v56 = vpop.permute.xlu1 %1954 }
 0x374   : > { %4440 = vmatmul.msk.bf16.vlgmr.msrb.gmra.mxu1 %vm1168_vm13, %v2187_v41 }
 0x379   : > { %v6244_v42 = vpop.f32.mrf.mxu0 }
 0x37a   : > { %v1542_v28 = vsel %vm1168_vm13, %v6244_v42, -inf }
 0x37b   : > { %1543 = vmax.xlane.f32.xlu1 %v1542_v28 }
 0x381   : > { %v6250_v45 = vpop.f32.mrf.mxu0 }
 0x382   : > { %v1545_v46 = vsel %vm1168_vm13, %v6250_v45, -inf }
 0x383   : > { %1546 = vmax.xlane.f32.xlu0 %v1545_v46 }
 0x384   : > { %4444 = vmatmul.msk.bf16.vlgmr.msra.gmra.mxu1 %vm1168_vm13, %v2354_v47 }
 0x389   : > { %v6255_v36 = vpop.f32.mrf.mxu1 }
 0x38a   : > { %v1375_v49 = vsel %vm1168_vm13, %v6255_v36, -inf }
 0x38b   : > { %1376 = vmax.xlane.f32.xlu2 %v1375_v49 }
 0x391   : > { %v6261_v50 = vpop.f32.mrf.mxu1 }
 0x392   : > { %v1221_v51 = vpop.xlane.xlu0 %1220  ;;  %v1378_v52 = vsel %vm1168_vm13, %v6261_v50, -inf }
 0x393   : > { %v1231_v53 = vsub.f32 %v6202_v62, %v1221_v51  ;;  %1379 = vmax.xlane.f32.xlu1 %v1378_v52 }
 0x395   : > { %v1235_v54 = vmul.f32 1.442695, %v1231_v53 }
 0x397   : > { %5022 = vpow2.f32 %v1235_v54 }
 0x39a   : > { %v6270_v57 = vpop.f32.mrf.mxu0  ;;  %v1224_v59 = vpop.xlane.xlu2 %1223 }
 0x39b   : > { %v1232_v61 = vsub.f32 %v6209_v2, %v1224_v59  ;;  %v1709_v2 = vsel %vm1168_vm13, %v6270_v57, -inf }
 0x39d   : > { %v6272_v58 = vpop.eup %5022  ;;  %v1237_v1 = vmul.f32 1.442695, %v1232_v61 }
 0x39e   : > { %v1243_v60 = vsel %vm1168_vm13, %v6272_v58, 0.0 }
 0x39f   : > { %1244 = vadd.xlane.f32.xlu1 %v1243_v60 }
 0x3a1   : > { %v6277_v63 = vpop.f32.mrf.mxu1 }
 0x3a2   : > { %v6279_v35 = vpop.f32.mrf.mxu0  ;;  %v1381_v0 = vsel %vm1168_vm13, %v6277_v63, -inf }
 0x3a3   : > { %v1227_v62 = vpop.xlane.xlu1 %1226  ;;  %1382 = vmax.xlane.f32.xlu0 %v1381_v0  ;;  %v1712_v19 = vsel %vm1168_vm13, %v6279_v35, -inf }
 0x3a4   : > { %v1233_v27 = vsub.f32 %v6216_v12, %v1227_v62 }
 0x3a6   : > { %v1239_v3 = vmul.f32 1.442695, %v1233_v27 }
 0x3a8   : > { %5024 = vpow2.f32 %v1239_v3 }
 0x3a9   : > { %5026 = vpow2.f32 %v1237_v1  ;;  %v6284_v4 = vpop.f32.mrf.mxu1 }
 0x3aa   : > { %v6286_v5 = vpop.f32.mrf.mxu0  ;;  %v1384_v6 = vsel %vm1168_vm13, %v6284_v4, -inf }
 0x3ab   : > { %1710 = vmax.xlane.f32.xlu0 %v1709_v2  ;;  %1385 = vmax.xlane.f32.xlu2 %v1384_v6  ;;  %v1230_v10 = vpop.xlane.xlu0 %1229 }
 0x3ac   : > { %v1234_v13 = vsub.f32 %v6223_v20, %v1230_v10  ;;  %v1876_v20 = vsel %vm1168_vm13, %v6286_v5, -inf }
 0x3ae   : > { %v6292_v8 = vpop.eup %5024  ;;  %v1241_v21 = vmul.f32 1.442695, %v1234_v13 }
 0x3af   : > { %v1249_v11 = vsel %vm1168_vm13, %v6292_v8, 0.0  ;;  %v6296_v12 = vpop.eup %5026 }
 0x3b0   : > { %1250 = vadd.xlane.f32.xlu1 %v1249_v11  ;;  %v1246_v18 = vsel %vm1168_vm13, %v6296_v12, 0.0  ;;  %5028 = vpow2.f32 %v1241_v21 }
 0x3b1   : > { %v6299_v16 = vpop.f32.mrf.mxu1 }
 0x3b2   : > { %v6301_v17 = vpop.f32.mrf.mxu0  ;;  %v1548_v25 = vsel %vm1168_vm13, %v6299_v16, -inf }
 0x3b3   : > { %1247 = vadd.xlane.f32.xlu0 %v1246_v18  ;;  %1713 = vmax.xlane.f32.xlu2 %v1712_v19  ;;  %v1879_v34 = vsel %vm1168_vm13, %v6301_v17, -inf }
 0x3b6   : > { %v6317_v29 = vpop.eup %5028 }
 0x3b7   : > { %v1252_v38 = vsel %vm1168_vm13, %v6317_v29, 0.0 }
 0x3b9   : > { %v6307_v23 = vpop.f32.mrf.mxu1 }
 0x3ba   : > { %v6309_v24 = vpop.f32.mrf.mxu0  ;;  %v1551_v26 = vsel %vm1168_vm13, %v6307_v23, -inf }
 0x3bb   : > { %1877 = vmax.xlane.f32.xlu0 %v1876_v20  ;;  %1549 = vmax.xlane.f32.xlu2 %v1548_v25  ;;  %v2043_v39 = vsel %vm1168_vm13, %v6309_v24, -inf }
 0x3bc   : > { %1552 = vmax.xlane.f32.xlu1 %v1551_v26 }
 0x3c1   : > { %v6319_v31 = vpop.f32.mrf.mxu1 }
 0x3c2   : > { %v6321_v33 = vpop.f32.mrf.mxu0  ;;  %v1715_v46 = vsel %vm1168_vm13, %v6319_v31, -inf }
 0x3c3   : > { %1880 = vmax.xlane.f32.xlu2 %v1879_v34  ;;  %1253 = vadd.xlane.f32.xlu0 %v1252_v38  ;;  %v2046_v49 = vsel %vm1168_vm13, %v6321_v33, -inf }
 0x3c4   : > { %2044 = vmax.xlane.f32.xlu1 %v2043_v39 }
 0x3c9   : > { %v6329_v41 = vpop.f32.mrf.mxu1 }
 0x3ca   : > { %v6331_v28 = vpop.f32.mrf.mxu0  ;;  %v1718_v47 = vsel %vm1168_vm13, %v6329_v41, -inf }
 0x3cb   : > { %1716 = vmax.xlane.f32.xlu2 %v1715_v46  ;;  %2047 = vmax.xlane.f32.xlu0 %v2046_v49  ;;  %v2210_v53 = vsel %vm1168_vm13, %v6331_v28, -inf }
 0x3cc   : > { %1719 = vmax.xlane.f32.xlu1 %v1718_v47 }
 0x3d1   : > { %v6339_v51 = vpop.f32.mrf.mxu1 }
 0x3d2   : > { %v6341_v52 = vpop.f32.mrf.mxu0  ;;  %v1882_v54 = vsel %vm1168_vm13, %v6339_v51, -inf }
 0x3d3   : > { %2211 = vmax.xlane.f32.xlu2 %v2210_v53  ;;  %v2213_v59 = vsel %vm1168_vm13, %v6341_v52, -inf  ;;  %1883 = vmax.xlane.f32.xlu0 %v1882_v54 }
 0x3d4   : > { %2214 = vmax.xlane.f32.xlu1 %v2213_v59 }
 0x3d9   : > { %v6349_v60 = vpop.f32.mrf.mxu1 }
 0x3da   : > { %v6351_v61 = vpop.f32.mrf.mxu0  ;;  %v1885_v62 = vsel %vm1168_vm13, %v6349_v60, -inf }
 0x3db   : > { %1886 = vmax.xlane.f32.xlu2 %v1885_v62  ;;  %v2377_v0 = vsel %vm1168_vm13, %v6351_v61, -inf }
 0x3dc   : > { %2378 = vmax.xlane.f32.xlu0 %v2377_v0 }
 0x3e1   : > { %v6357_v27 = vpop.f32.mrf.mxu1 }
 0x3e2   : > { %v6359_v1 = vpop.f32.mrf.mxu0  ;;  %v2049_v3 = vsel %vm1168_vm13, %v6357_v27, -inf }
 0x3e3   : > { %v2380_v2 = vsel %vm1168_vm13, %v6359_v1, -inf  ;;  %2050 = vmax.xlane.f32.xlu1 %v2049_v3 }
 0x3e4   : > { %2381 = vmax.xlane.f32.xlu2 %v2380_v2 }
 0x3e9   : > { %v6365_v6 = vpop.f32.mrf.mxu1 }
 0x3ea   : > { %v2052_v10 = vsel %vm1168_vm13, %v6365_v6, -inf }
 0x3eb   : > { %2053 = vmax.xlane.f32.xlu0 %v2052_v10 }
 0x3ee   : > { %v1544_v18 = vpop.xlane.xlu1 %1543 }
 0x3ef   : > { %v1554_v20 = vsub.f32 %v6244_v42, %v1544_v18 }
 0x3f1   : > { %v6369_v11 = vpop.f32.mrf.mxu1  ;;  %v1558_v38 = vmul.f32 1.442695, %v1554_v20 }
 0x3f2   : > { %v2216_v13 = vsel %vm1168_vm13, %v6369_v11, -inf }
 0x3f3   : > { %2217 = vmax.xlane.f32.xlu2 %v2216_v13 }
 0x3f6   : > { %v1547_v19 = vpop.xlane.xlu0 %1546 }
 0x3f7   : > { %v1555_v21 = vsub.f32 %v6250_v45, %v1547_v19 }
 0x3f9   : > { %v1560_v25 = vmul.f32 1.442695, %v1555_v21  ;;  %v6375_v26 = vpop.f32.mrf.mxu1 }
 0x3fa   : > { %v2219_v34 = vsel %vm1168_vm13, %v6375_v26, -inf }
 0x3fb   : > { %5030 = vpow2.f32 %v1560_v25  ;;  %2220 = vmax.xlane.f32.xlu2 %v2219_v34 }
 0x3fc   : > { %5032 = vpow2.f32 %v1558_v38 }
 0x3fe   : > { %v1377_v39 = vpop.xlane.xlu2 %1376 }
 0x3ff   : > { %v1387_v47 = vsub.f32 %v6255_v36, %v1377_v39 }
 0x401   : > { %v6379_v46 = vpop.eup %5030  ;;  %v6382_v49 = vpop.f32.mrf.mxu1  ;;  %v1391_v53 = vmul.f32 1.442695, %v1387_v47 }
 0x402   : > { %v2383_v42 = vsel %vm1168_vm13, %v6382_v49, -inf  ;;  %v1569_v45 = vsel %vm1168_vm13, %v6379_v46, 0.0  ;;  %v6388_v59 = vpop.eup %5032 }
 0x403   : > { %2384 = vmax.xlane.f32.xlu1 %v2383_v42  ;;  %1570 = vadd.xlane.f32.xlu0 %v1569_v45  ;;  %5034 = vpow2.f32 %v1391_v53  ;;  %v1566_v2 = vsel %vm1168_vm13, %v6388_v59, 0.0 }
 0x406   : > { %v1380_v54 = vpop.xlane.xlu1 %1379 }
 0x407   : > { %v1388_v62 = vsub.f32 %v6261_v50, %v1380_v54 }
 0x409   : > { %v1393_v0 = vmul.f32 1.442695, %v1388_v62  ;;  %v6391_v3 = vpop.f32.mrf.mxu1  ;;  %v6397_v10 = vpop.eup %5034 }
 0x40a   : > { %v2386_v36 = vsel %vm1168_vm13, %v6391_v3, -inf  ;;  %v1399_v50 = vsel %vm1168_vm13, %v6397_v10, 0.0 }
 0x40b   : > { %5036 = vpow2.f32 %v1393_v0  ;;  %2387 = vmax.xlane.f32.xlu2 %v2386_v36  ;;  %1567 = vadd.xlane.f32.xlu1 %v1566_v2 }
 0x411   : > { %v6399_v13 = vpop.eup %5036 }
 0x412   : > { %v1402_v18 = vsel %vm1168_vm13, %v6399_v13, 0.0  ;;  %v1245_v25 = vpop.xlane.xlu1 %1244 }
 0x413   : > { %1400 = vadd.xlane.f32.xlu2 %v1399_v50  ;;  %1403 = vadd.xlane.f32.xlu1 %v1402_v18 }
 0x416   : > { %v1383_v19 = vpop.xlane.xlu0 %1382 }
 0x417   : > { %v1389_v21 = vsub.f32 %v6277_v63, %v1383_v19 }
 0x419   : > { %v1395_v20 = vmul.f32 1.442695, %v1389_v21 }
 0x41b   : > { %5038 = vpow2.f32 %v1395_v20 }
 0x41c   : > { %5040 = vrcp.f32 %v1245_v25 }
 0x41e   : > { %v1386_v34 = vpop.xlane.xlu2 %1385  ;;  %v1711_v38 = vpop.xlane.xlu0 %1710 }
 0x41f   : > { %v1390_v39 = vsub.f32 %v6284_v4, %v1386_v34  ;;  %v1721_v47 = vsub.f32 %v6270_v57, %v1711_v38 }
 0x421   : > { %v6408_v42 = vpop.eup %5038  ;;  %v1397_v45 = vmul.f32 1.442695, %v1390_v39  ;;  %v1725_v53 = vmul.f32 1.442695, %v1721_v47 }
 0x422   : > { %v1405_v54 = vsel %vm1168_vm13, %v6408_v42, 0.0  ;;  %v5041_v0 = vpop.eup %5040 }
 0x423   : > { %5042 = vpow2.f32 %v1397_v45  ;;  %1406 = vadd.xlane.f32.xlu1 %v1405_v54  ;;  %v1251_v36 = vpop.xlane.xlu1 %1250  ;;  %v1259_v18 = vmul.f32 %v5041_v0, %v6272_v58 }
 0x424   : > { %5044 = vpow2.f32 %v1725_v53 }
 0x425   : > { %v1263_v25 = vpack.c.bf16 %v1259_v18, %v1259_v18 }
 0x426   : > { %v1714_v63 = vpop.xlane.xlu2 %1713  ;;  %v1248_v62 = vpop.xlane.xlu0 %1247 }
 0x427   : > { %v1722_v2 = vsub.f32 %v6279_v35, %v1714_v63  ;;  %5046 = vrcp.f32 %v1248_v62  ;;  %v1269_v53 = vunpack.c.l.b16 %v1263_v25 }
 0x429   : > { %v6413_v4 = vpop.eup %5042  ;;  %v1727_v57 = vmul.f32 1.442695, %v1722_v2 }
 0x42a   : > { %v6415_v50 = vpop.eup %5044  ;;  %v1408_v19 = vsel %vm1168_vm13, %v6413_v4, 0.0 }
 0x42b   : > { %5048 = vpow2.f32 %v1727_v57  ;;  %1409 = vadd.xlane.f32.xlu0 %v1408_v19  ;;  %v1733_v21 = vsel %vm1168_vm13, %v6415_v50, 0.0 }
 0x42c   : > { %1734 = vadd.xlane.f32.xlu2 %v1733_v21  ;;  %5050 = vrcp.f32 %v1251_v36 }
 0x42d   : > { %v5047_v20 = vpop.eup %5046 }
 0x42e   : > { %v1260_v35 = vmul.f32 %v5047_v20, %v6296_v12  ;;  %v6423_v34 = vpop.xlane.xlu2 %1549  ;;  %v6425_v38 = vpop.xlane.xlu0 %1877 }
 0x42f   : > { %v1553_v39 = vpop.xlane.xlu1 %1552 }
 0x430   : > { %v1264_v47 = vpack.c.bf16 %v1260_v35, %v1260_v35  ;;  %v1557_v58 = vsub.f32 %v6307_v23, %v1553_v39 }
 0x431   : > { %v6428_v45 = vpop.eup %5048 }
 0x432   : > { %v1270_v54 = vunpack.c.l.b16 %v1264_v47  ;;  %v1564_v63 = vmul.f32 1.442695, %v1557_v58  ;;  %v1736_v62 = vsel %vm1168_vm13, %v6428_v45, 0.0  ;;  %v5051_v57 = vpop.eup %5050 }
 0x433   : > { %v1261_v20 = vmul.f32 %v5051_v57, %v6292_v8 }
 0x434   : > { %v1271_v0 = vpack.c.b16 %v1270_v54, %v1269_v53  ;;  %5052 = vpow2.f32 %v1564_v63  ;;  %1737 = vadd.xlane.f32.xlu2 %v1736_v62 }
 0x436   : > { %v1881_v12 = vpop.xlane.xlu2 %1880  ;;  %4417 = vmatmul.msk.bf16.vlgmr.msra.gmra.mxu3 %vm1168_vm13, %v1271_v0  ;;  %v1254_v2 = vpop.xlane.xlu0 %1253 }
 0x437   : > { %v1889_v18 = vsub.f32 %v6301_v17, %v1881_v12  ;;  %v2045_v23 = vpop.xlane.xlu1 %2044  ;;  %1466 = vmatpush.bf16.msra.mxu3 %v6248_v43  ;;  %5054 = vrcp.f32 %v1254_v2  ;;  %v1265_v17 = vpack.c.bf16 %v1261_v20, %v1261_v20 }
 0x438   : > { %v2055_v36 = vsub.f32 %v6309_v24, %v2045_v23 }
 0x439   : > { %v1894_v19 = vmul.f32 1.442695, %v1889_v18  ;;  %v1297_v12 = vunpack.c.l.b16 %v1265_v17 }
 0x43a   : > { %v6436_v21 = vpop.eup %5052  ;;  %v2059_v25 = vmul.f32 1.442695, %v2055_v36 }
 0x43b   : > { %5056 = vpow2.f32 %v1894_v19  ;;  %v1575_v35 = vsel %vm1168_vm13, %v6436_v21, 0.0 }
 0x43c   : > { %5058 = vpow2.f32 %v2059_v25  ;;  %1576 = vadd.xlane.f32.xlu1 %v1575_v35 }
 0x43d   : > { %v5055_v39 = vpop.eup %5054 }
 0x43e   : > { %v1262_v47 = vmul.f32 %v5055_v39, %v6317_v29  ;;  %v1717_v43 = vpop.xlane.xlu2 %1716  ;;  %v6442_v58 = vpop.xlane.xlu0 %2047 }
 0x43f   : > { %v1723_v24 = vsub.f32 %v6319_v31, %v1717_v43  ;;  %v1720_v53 = vpop.xlane.xlu1 %1719  ;;  %2121 = vrot.lane.b32.xlu0 %v6148_v44, %s5620_s24 }
 0x440   : > { %v1266_v8 = vpack.c.bf16 %v1262_v47, %v1262_v47  ;;  %v1724_v62 = vsub.f32 %v6329_v41, %v1720_v53 }
 0x441   : > { %v6447_v54 = vpop.eup %5056  ;;  %v1729_v63 = vmul.f32 1.442695, %v1723_v24 }
 0x442   : > { %v6450_v0 = vpop.eup %5058  ;;  %v1298_v2 = vunpack.c.l.b16 %v1266_v8  ;;  %v1903_v29 = vsel %vm1168_vm13, %v6447_v54, 0.0  ;;  %v1731_v18 = vmul.f32 1.442695, %v1724_v62  ;;  %v1556_v62 = vsub.f32 %v6299_v16, %v6423_v34 }
 0x443   : > { %5060 = vpow2.f32 %v1729_v63  ;;  %v2067_v31 = vsel %vm1168_vm13, %v6450_v0, 0.0  ;;  %1904 = vadd.xlane.f32.xlu2 %v1903_v29 }
 0x444   : > { %v1299_v57 = vpack.c.b16 %v1298_v2, %v1297_v12  ;;  %2068 = vadd.xlane.f32.xlu1 %v2067_v31  ;;  %5062 = vpow2.f32 %v1731_v18 }
 0x446   : > { %v2212_v23 = vpop.xlane.xlu2 %2211  ;;  %4418 = vmatmul.msk.bf16.vlgmr.msrb.gmra.mxu3 %vm1168_vm13, %v1299_v57  ;;  %v1884_v36 = vpop.xlane.xlu0 %1883  ;;  %v1562_v57 = vmul.f32 1.442695, %v1556_v62 }
 0x447   : > { %1633 = vmatpush.bf16.msrb.mxu3 %v6257_v48  ;;  %v1890_v19 = vsub.f32 %v6339_v51, %v1884_v36  ;;  %v2215_v35 = vpop.xlane.xlu1 %2214  ;;  %v2222_v43 = vsub.f32 %v6331_v28, %v2212_v23 }
 0x449   : > { %v6458_v41 = vpop.eup %5060  ;;  %v1896_v25 = vmul.f32 1.442695, %v1890_v19  ;;  %v2226_v51 = vmul.f32 1.442695, %v2222_v43 }
 0x44a   : > { %v1739_v20 = vsel %vm1168_vm13, %v6458_v41, 0.0  ;;  %v6463_v17 = vpop.eup %5062 }
 0x44b   : > { %1740 = vadd.xlane.f32.xlu2 %v1739_v20  ;;  %5064 = vpow2.f32 %v1896_v25  ;;  %v1742_v24 = vsel %vm1168_vm13, %v6463_v17, 0.0 }
 0x44e   : > { %v1887_v39 = vpop.xlane.xlu2 %1886 }
 0x44f   : > { %v1891_v47 = vsub.f32 %v6349_v60, %v1887_v39  ;;  %v2379_v53 = vpop.xlane.xlu0 %2378 }
 0x450   : > { %v2389_v28 = vsub.f32 %v6351_v61, %v2379_v53  ;;  %v1888_v61 = vsub.f32 %v6286_v5, %v6425_v38  ;;  %v2056_v5 = vsub.f32 %v6321_v33, %v6442_v58 }
 0x451   : > { %v1898_v48 = vmul.f32 1.442695, %v1891_v47  ;;  %v6469_v63 = vpop.eup %5064 }
 0x452   : > { %v1906_v31 = vsel %vm1168_vm13, %v6469_v63, 0.0  ;;  %v2393_v18 = vmul.f32 1.442695, %v2389_v28  ;;  %v1892_v19 = vmul.f32 1.442695, %v1888_v61 }
 0x453   : > { %5066 = vpow2.f32 %v1898_v48  ;;  %1743 = vadd.xlane.f32.xlu2 %v1742_v24  ;;  %v2061_v43 = vmul.f32 1.442695, %v2056_v5 }
 0x454   : > { %5068 = vpow2.f32 %v2226_v51  ;;  %v2223_v51 = vsub.f32 %v6341_v52, %v2215_v35 }
 0x456   : > { %v2051_v8 = vpop.xlane.xlu1 %2050 }
 0x457   : > { %v2057_v12 = vsub.f32 %v6357_v27, %v2051_v8  ;;  %v6481_v16 = vpop.xlane.xlu2 %2381  ;;  %v2228_v8 = vmul.f32 1.442695, %v2223_v51 }
 0x459   : > { %v6474_v60 = vpop.eup %5066  ;;  %v2063_v2 = vmul.f32 1.442695, %v2057_v12 }
 0x45a   : > { %v1909_v29 = vsel %vm1168_vm13, %v6474_v60, 0.0  ;;  %v6483_v27 = vpop.eup %5068 }
 0x45b   : > { %5070 = vpow2.f32 %v2063_v2  ;;  %1910 = vadd.xlane.f32.xlu1 %v1909_v29  ;;  %1907 = vadd.xlane.f32.xlu2 %v1906_v31  ;;  %v2234_v36 = vsel %vm1168_vm13, %v6483_v27, 0.0 }
 0x45c   : > { %5072 = vpow2.f32 %v1562_v57 }
 0x45d   : > { %5074 = vpow2.f32 %v2393_v18 }
 0x45e   : > { %5076 = vpow2.f32 %v1892_v19  ;;  %v2054_v62 = vpop.xlane.xlu0 %2053 }
 0x45f   : > { %5078 = vpow2.f32 %v2061_v43  ;;  %v2058_v2 = vsub.f32 %v6365_v6, %v2054_v62 }
 0x461   : > { %v6487_v34 = vpop.eup %5070  ;;  %v2065_v29 = vmul.f32 1.442695, %v2058_v2  ;;  %v2390_v2 = vsub.f32 %v6359_v1, %v6481_v16 }
 0x462   : > { %v2073_v23 = vsel %vm1168_vm13, %v6487_v34, 0.0  ;;  %v6493_v20 = vpop.eup %5072 }
 0x463   : > { %2074 = vadd.xlane.f32.xlu1 %v2073_v23  ;;  %2235 = vadd.xlane.f32.xlu2 %v2234_v36  ;;  %v6495_v39 = vpop.eup %5074  ;;  %v1572_v38 = vsel %vm1168_vm13, %v6493_v20, 0.0 }
 0x464   : > { %v2401_v47 = vsel %vm1168_vm13, %v6495_v39, 0.0  ;;  %v6503_v48 = vpop.eup %5076 }
 0x465   : > { %v1900_v33 = vsel %vm1168_vm13, %v6503_v48, 0.0  ;;  %v6509_v12 = vpop.eup %5078 }
 0x466   : > { %v2218_v25 = vpop.xlane.xlu2 %2217  ;;  %v2070_v52 = vsel %vm1168_vm13, %v6509_v12, 0.0 }
 0x467   : > { %v2224_v57 = vsub.f32 %v6369_v11, %v2218_v25 }
 0x469   : > { %1573 = vadd.xlane.f32.xlu0 %v1572_v38  ;;  %v2230_v23 = vmul.f32 1.442695, %v2224_v57 }
 0x46b   : > { %2402 = vadd.xlane.f32.xlu2 %v2401_v47 }
 0x46e   : > { %v2221_v24 = vpop.xlane.xlu2 %2220 }
 0x46f   : > { %v2225_v53 = vsub.f32 %v6375_v26, %v2221_v24 }
 0x471   : > { %v2232_v58 = vmul.f32 1.442695, %v2225_v53  ;;  %1901 = vadd.xlane.f32.xlu0 %v1900_v33 }
 0x473   : > { %5080 = vpow2.f32 %v2232_v58 }
 0x474   : > { %5082 = vpow2.f32 %v2228_v8 }
 0x475   : > { %5084 = vpow2.f32 %v2065_v29  ;;  %v2395_v29 = vmul.f32 1.442695, %v2390_v2 }
 0x476   : > { %v6511_v28 = vpop.xlane.xlu1 %2384  ;;  %5086 = vpow2.f32 %v2230_v23  ;;  %v1571_v24 = vpop.xlane.xlu0 %1570 }
 0x479   : > { %v6516_v35 = vpop.eup %5080  ;;  %2071 = vadd.xlane.f32.xlu0 %v2070_v52 }
 0x47a   : > { %v2243_v26 = vsel %vm1168_vm13, %v6516_v35, 0.0  ;;  %v6522_v31 = vpop.eup %5082 }
 0x47b   : > { %2244 = vadd.xlane.f32.xlu2 %v2243_v26  ;;  %v2237_v61 = vsel %vm1168_vm13, %v6522_v31, 0.0  ;;  %v6527_v36 = vpop.eup %5084 }
 0x47c   : > { %2263 = vrot.lane.b32.xlu1 %v6141_v32, %s5621_s30  ;;  %v2076_v38 = vsel %vm1168_vm13, %v6527_v36, 0.0  ;;  %v6531_v11 = vpop.eup %5086 }
 0x47d   : > { %v2240_v33 = vsel %vm1168_vm13, %v6531_v11, 0.0 }
 0x47e   : > { %v2388_v18 = vpop.xlane.xlu2 %2387  ;;  %v1568_v6 = vpop.xlane.xlu1 %1567 }
 0x481   : > { %2238 = vadd.xlane.f32.xlu0 %v2237_v61  ;;  %v2392_v61 = vsub.f32 %v6391_v3, %v2388_v18 }
 0x486   : > { %v1401_v19 = vpop.xlane.xlu2 %1400  ;;  %v1404_v5 = vpop.xlane.xlu1 %1403 }
 0x487   : > { %5088 = vrcp.f32 %v1401_v19 }
 0x488   : > { %5090 = vrcp.f32 %v1404_v5 }
 0x489   : > { %2077 = vadd.xlane.f32.xlu0 %v2076_v38  ;;  %5092 = vrcp.f32 %v1568_v6  ;;  %v2399_v38 = vmul.f32 1.442695, %v2392_v61 }
 0x48a   : > { %5094 = vrcp.f32 %v1571_v24 }
 0x48d   : > { %v5089_v25 = vpop.eup %5088 }
 0x48e   : > { %v5091_v47 = vpop.eup %5090  ;;  %v1415_v43 = vmul.f32 %v5089_v25, %v6397_v10 }
 0x48f   : > { %v1416_v51 = vmul.f32 %v5091_v47, %v6399_v13  ;;  %v5093_v52 = vpop.eup %5092 }
 0x490   : > { %v1419_v53 = vpack.c.bf16 %v1415_v43, %v1415_v43  ;;  %v5095_v13 = vpop.eup %5094  ;;  %v1582_v57 = vmul.f32 %v5093_v52, %v6388_v59 }
 0x491   : > { %v1420_v58 = vpack.c.bf16 %v1416_v51, %v1416_v51  ;;  %2241 = vadd.xlane.f32.xlu0 %v2240_v33  ;;  %v1583_v6 = vmul.f32 %v5095_v13, %v6379_v46 }
 0x492   : > { %v1425_v8 = vunpack.c.l.b16 %v1419_v53  ;;  %v1586_v23 = vpack.c.bf16 %v1582_v57, %v1582_v57 }
 0x493   : > { %v1426_v62 = vunpack.c.l.b16 %v1420_v58  ;;  %2288 = vrot.lane.b32.xlu2 %v6148_v44, %s5621_s30  ;;  %v1587_v16 = vpack.c.bf16 %v1583_v6, %v1583_v6 }
 0x494   : > { %v1592_v25 = vunpack.c.l.b16 %v1586_v23 }
 0x495   : > { %v1427_v10 = vpack.c.b16 %v1426_v62, %v1425_v8  ;;  %v1593_v59 = vunpack.c.l.b16 %v1587_v16 }
 0x496   : > { %v1407_v26 = vpop.xlane.xlu1 %1406 }
 0x497   : > { %4421 = vmatmul.msk.bf16.vlgmr.msrb.gmra.mxu2 %vm1168_vm13, %v1427_v10  ;;  %5096 = vrcp.f32 %v1407_v26  ;;  %v1594_v46 = vpack.c.b16 %v1593_v59, %v1592_v25 }
 0x498   : > { %1775 = vmatpush.bf16.msrb.mxu2 %v6241_v40  ;;  %5098 = vpow2.f32 %v2395_v29 }
 0x49d   : > { %v5097_v1 = vpop.eup %5096 }
 0x49e   : > { %v1410_v19 = vpop.xlane.xlu0 %1409  ;;  %v6546_v47 = vpop.eup %5098  ;;  %v1417_v40 = vmul.f32 %v5097_v1, %v6408_v42 }
 0x49f   : > { %v1735_v5 = vpop.xlane.xlu2 %1734  ;;  %5100 = vrcp.f32 %v1410_v19  ;;  %v2404_v3 = vsel %vm1168_vm13, %v6546_v47, 0.0 }
 0x4a0   : > { %5102 = vrcp.f32 %v1735_v5  ;;  %v1421_v18 = vpack.c.bf16 %v1417_v40, %v1417_v40 }
 0x4a1   : > { %5104 = vpow2.f32 %v2399_v38 }
 0x4a2   : > { %v1450_v58 = vunpack.c.l.b16 %v1421_v18 }
 0x4a5   : > { %v5101_v43 = vpop.eup %5100  ;;  %2430 = vrot.lane.b32.xlu0 %v6141_v32, %s5622_s21  ;;  %v2391_v32 = vsub.f32 %v6382_v49, %v6511_v28 }
 0x4a6   : > { %v1418_v24 = vmul.f32 %v5101_v43, %v6413_v4  ;;  %2405 = vadd.xlane.f32.xlu1 %v2404_v3  ;;  %v5103_v53 = vpop.eup %5102 }
 0x4a7   : > { %v1738_v51 = vpop.xlane.xlu2 %1737  ;;  %4425 = vmatmul.msk.bf16.vlgmr.msra.gmra.mxu2 %vm1168_vm13, %v1594_v46  ;;  %v6556_v33 = vpop.eup %5104  ;;  %v1749_v62 = vmul.f32 %v5103_v53, %v6415_v50  ;;  %v2397_v52 = vmul.f32 1.442695, %v2391_v32 }
 0x4a8   : > { %v1422_v42 = vpack.c.bf16 %v1418_v24, %v1418_v24  ;;  %5106 = vrcp.f32 %v1738_v51  ;;  %1942 = vmatpush.bf16.msra.mxu2 %v6231_v30  ;;  %v2410_v4 = vsel %vm1168_vm13, %v6556_v33, 0.0 }
 0x4a9   : > { %v1753_v30 = vpack.c.bf16 %v1749_v62, %v1749_v62  ;;  %5108 = vpow2.f32 %v2397_v52 }
 0x4aa   : > { %v1451_v8 = vunpack.c.l.b16 %v1422_v42 }
 0x4ab   : > { %v1759_v50 = vunpack.c.l.b16 %v1753_v30 }
 0x4ac   : > { %v1452_v2 = vpack.c.b16 %v1451_v8, %v1450_v58 }
 0x4ad   : > { %2455 = vrot.lane.b32.xlu0 %v6148_v44, %s5622_s21 }
 0x4ae   : > { %v5107_v10 = vpop.eup %5106  ;;  %2411 = vadd.xlane.f32.xlu1 %v2410_v4  ;;  %4422 = vmatmul.msk.bf16.vlgmr.msra.gmra.mxu3 %vm1168_vm13, %v1452_v2 }
 0x4af   : > { %v1750_v26 = vmul.f32 %v5107_v10, %v6428_v45  ;;  %1800 = vmatpush.bf16.msra.mxu3 %v6266_v55  ;;  %v6569_v44 = vpop.eup %5108  ;;  %v1577_v61 = vpop.xlane.xlu1 %1576 }
 0x4b0   : > { %v2407_v57 = vsel %vm1168_vm13, %v6569_v44, 0.0  ;;  %5110 = vrcp.f32 %v1577_v61 }
 0x4b1   : > { %v1754_v49 = vpack.c.bf16 %v1750_v26, %v1750_v26 }
 0x4b3   : > { %v1760_v28 = vunpack.c.l.b16 %v1754_v49 }
 0x4b5   : > { %v1761_v13 = vpack.c.b16 %v1760_v28, %v1759_v50 }
 0x4b6   : > { %v1905_v55 = vpop.xlane.xlu2 %1904  ;;  %v5111_v38 = vpop.eup %5110 }
 0x4b7   : > { %4429 = vmatmul.msk.bf16.vlgmr.msrb.gmra.mxu2 %vm1168_vm13, %v1761_v13  ;;  %v2069_v1 = vpop.xlane.xlu1 %2068  ;;  %v1585_v25 = vmul.f32 %v5111_v38, %v6436_v21 }
 0x4b8   : > { %2109 = vmatpush.bf16.msrb.mxu2 %v6236_v37  ;;  %v6578_v37 = vpop.permute.xlu0 %2121 }
 0x4b9   : > { %v1290_v29 = vpop.f32.mrf.mxu3  ;;  %v1589_v43 = vpack.c.bf16 %v1585_v25, %v1585_v25 }
 0x4ba   : > { %1323 = vst.msk [vmem:[#allocation3] sm:$0xff] %vm1168_vm13, %v1290_v29 }
 0x4bb   : > { %v1618_v53 = vunpack.c.l.b16 %v1589_v43 }
 0x4bc   : > { %2408 = vadd.xlane.f32.xlu2 %v2407_v57 }
 0x4be   : > { %v1741_v19 = vpop.xlane.xlu2 %1740 }
 0x4c1   : > { %v1292_v45 = vpop.f32.mrf.mxu3 }
 0x4c2   : > { %1324 = vst.msk [vmem:[#allocation3 + $0x8] sm:$0xff] %vm1168_vm13, %v1292_v45 }
 0x4c6   : > { %v1744_v16 = vpop.xlane.xlu2 %1743 }
 0x4c9   : > { %v1318_v6 = vpop.f32.mrf.mxu3 }
 0x4ca   : > { %1325 = vst.msk [vmem:[#allocation3 + $0x10] sm:$0xff] %vm1168_vm13, %v1318_v6 }
 0x4ce   : > { %v1911_v40 = vpop.xlane.xlu1 %1910  ;;  %v1908_v24 = vpop.xlane.xlu2 %1907 }
 0x4d1   : > { %v1320_v23 = vpop.f32.mrf.mxu3 }
 0x4d2   : > { %1326 = vst.msk [vmem:[#allocation3 + $0x18] sm:$0xff] %vm1168_vm13, %v1320_v23 }
 0x4d6   : > { %v2075_v2 = vpop.xlane.xlu1 %2074  ;;  %v2236_v49 = vpop.xlane.xlu2 %2235 }
 0x4dc   : > { %v1574_v5 = vpop.xlane.xlu0 %1573 }
 0x4dd   : > { %5112 = vrcp.f32 %v1574_v5 }
 0x4de   : > { %5114 = vrcp.f32 %v1905_v55 }
 0x4df   : > { %5116 = vrcp.f32 %v1744_v16 }
 0x4e3   : > { %v5113_v59 = vpop.eup %5112 }
 0x4e4   : > { %v1584_v46 = vmul.f32 %v5113_v59, %v6493_v20  ;;  %v1902_v3 = vpop.xlane.xlu0 %1901  ;;  %v5115_v18 = vpop.eup %5114 }
 0x4e5   : > { %5118 = vrcp.f32 %v1902_v3  ;;  %v1917_v42 = vmul.f32 %v5115_v18, %v6447_v54  ;;  %v5117_v58 = vpop.eup %5116 }
 0x4e6   : > { %v1588_v51 = vpack.c.bf16 %v1584_v46, %v1584_v46  ;;  %5120 = vrcp.f32 %v1741_v19  ;;  %v1752_v52 = vmul.f32 %v5117_v58, %v6463_v17  ;;  %v2403_v19 = vpop.xlane.xlu2 %2402 }
 0x4e7   : > { %v1921_v21 = vpack.c.bf16 %v1917_v42, %v1917_v42 }
 0x4e8   : > { %v1617_v32 = vunpack.c.l.b16 %v1588_v51  ;;  %v1756_v28 = vpack.c.bf16 %v1752_v52, %v1752_v52 }
 0x4e9   : > { %v1927_v54 = vunpack.c.l.b16 %v1921_v21 }
 0x4ea   : > { %v1619_v8 = vpack.c.b16 %v1618_v53, %v1617_v32 }
 0x4eb   : > { %v5119_v62 = vpop.eup %5118 }
 0x4ec   : > { %v1916_v4 = vmul.f32 %v5119_v62, %v6503_v48  ;;  %4426 = vmatmul.msk.bf16.vlgmr.msrb.gmra.mxu3 %vm1168_vm13, %v1619_v8  ;;  %v2072_v20 = vpop.xlane.xlu0 %2071  ;;  %v5121_v10 = vpop.eup %5120 }
 0x4ed   : > { %1967 = vmatpush.bf16.msrb.mxu3 %v6268_v56  ;;  %5122 = vrcp.f32 %v2072_v20  ;;  %v1751_v26 = vmul.f32 %v5121_v10, %v6458_v41  ;;  %v1785_v56 = vunpack.c.l.b16 %v1756_v28 }
 0x4ee   : > { %v1920_v30 = vpack.c.bf16 %v1916_v4, %v1916_v4  ;;  %5124 = vrcp.f32 %v2069_v1  ;;  %v2264_v57 = vpop.permute.xlu1 %2263  ;;  %v2245_v46 = vpop.xlane.xlu2 %2244 }
 0x4ef   : > { %v1755_v48 = vpack.c.bf16 %v1751_v26, %v1751_v26  ;;  %5126 = vrcp.f32 %v1911_v40 }
 0x4f0   : > { %v1926_v50 = vunpack.c.l.b16 %v1920_v30  ;;  %5128 = vrcp.f32 %v1908_v24 }
 0x4f1   : > { %v1784_v6 = vunpack.c.l.b16 %v1755_v48 }
 0x4f2   : > { %v1928_v13 = vpack.c.b16 %v1927_v54, %v1926_v50 }
 0x4f3   : > { %v5123_v29 = vpop.eup %5122  ;;  %v1786_v23 = vpack.c.b16 %v1785_v56, %v1784_v6 }
 0x4f4   : > { %4433 = vmatmul.msk.bf16.vlgmr.msra.gmra.mxu2 %vm1168_vm13, %v1928_v13  ;;  %v5125_v45 = vpop.eup %5124  ;;  %v2084_v17 = vmul.f32 %v5123_v29, %v6509_v12  ;;  %v2239_v41 = vpop.xlane.xlu0 %2238 }
 0x4f5   : > { %2276 = vmatpush.bf16.msra.mxu2 %v2264_v57  ;;  %v2083_v55 = vmul.f32 %v5125_v45, %v6450_v0  ;;  %v5127_v61 = vpop.eup %5126  ;;  %5130 = vrcp.f32 %v2239_v41 }
 0x4f6   : > { %v2088_v1 = vpack.c.bf16 %v2084_v17, %v2084_v17  ;;  %v5129_v16 = vpop.eup %5128  ;;  %v1919_v38 = vmul.f32 %v5127_v61, %v6474_v60  ;;  %5132 = vrcp.f32 %v2236_v49  ;;  %v2289_v8 = vpop.permute.xlu2 %2288 }
 0x4f7   : > { %v2087_v5 = vpack.c.bf16 %v2083_v55, %v2083_v55  ;;  %v1918_v25 = vmul.f32 %v5129_v16, %v6469_v63 }
 0x4f8   : > { %v2094_v12 = vunpack.c.l.b16 %v2088_v1  ;;  %v1923_v40 = vpack.c.bf16 %v1919_v38, %v1919_v38 }
 0x4f9   : > { %v2093_v0 = vunpack.c.l.b16 %v2087_v5  ;;  %v1922_v59 = vpack.c.bf16 %v1918_v25, %v1918_v25 }
 0x4fa   : > { %v1952_v51 = vunpack.c.l.b16 %v1923_v40 }
 0x4fb   : > { %v2095_v43 = vpack.c.b16 %v2094_v12, %v2093_v0  ;;  %v5131_v18 = vpop.eup %5130  ;;  %v1951_v53 = vunpack.c.l.b16 %v1922_v59 }
 0x4fc   : > { %4430 = vmatmul.msk.bf16.vlgmr.msra.gmra.mxu3 %vm1168_vm13, %v1786_v23  ;;  %v2078_v3 = vpop.xlane.xlu0 %2077  ;;  %v5133_v24 = vpop.eup %5132 }
 0x4fd   : > { %2134 = vmatpush.bf16.msra.mxu3 %v6578_v37  ;;  %5134 = vrcp.f32 %v2078_v3  ;;  %v2251_v37 = vmul.f32 %v5131_v18, %v6522_v31  ;;  %v2250_v63 = vmul.f32 %v5133_v24, %v6483_v27  ;;  %v1953_v60 = vpack.c.b16 %v1952_v51, %v1951_v53 }
 0x4fe   : > { %5136 = vrcp.f32 %v2075_v2 }
 0x4ff   : > { %v2255_v42 = vpack.c.bf16 %v2251_v37, %v2251_v37  ;;  %v2254_v58 = vpack.c.bf16 %v2250_v63, %v2250_v63  ;;  %5138 = vrcp.f32 %v2403_v19 }
 0x501   : > { %v2261_v21 = vunpack.c.l.b16 %v2255_v42  ;;  %v2260_v52 = vunpack.c.l.b16 %v2254_v58 }
 0x503   : > { %v5135_v32 = vpop.eup %5134  ;;  %v2262_v31 = vpack.c.b16 %v2261_v21, %v2260_v52 }
 0x504   : > { %4437 = vmatmul.msk.bf16.vlgmr.msrb.gmra.mxu2 %vm1168_vm13, %v2095_v43  ;;  %v5137_v62 = vpop.eup %5136  ;;  %v2086_v4 = vmul.f32 %v5135_v32, %v6527_v36  ;;  %v2242_v20 = vpop.xlane.xlu0 %2241 }
 0x505   : > { %v2085_v10 = vmul.f32 %v5137_v62, %v6487_v34  ;;  %5140 = vrcp.f32 %v2242_v20  ;;  %v5139_v50 = vpop.eup %5138 }
 0x506   : > { %v2090_v2 = vpack.c.bf16 %v2086_v4, %v2086_v4  ;;  %5142 = vrcp.f32 %v2245_v46  ;;  %v2417_v29 = vmul.f32 %v5139_v50, %v6495_v39 }
 0x507   : > { %v2089_v30 = vpack.c.bf16 %v2085_v10, %v2085_v10 }
 0x508   : > { %v2119_v27 = vunpack.c.l.b16 %v2090_v2  ;;  %v2421_v17 = vpack.c.bf16 %v2417_v29, %v2417_v29 }
 0x509   : > { %v2118_v26 = vunpack.c.l.b16 %v2089_v30 }
 0x50a   : > { %v2427_v19 = vunpack.c.l.b16 %v2421_v17 }
 0x50b   : > { %v2120_v28 = vpack.c.b16 %v2119_v27, %v2118_v26  ;;  %v5141_v13 = vpop.eup %5140 }
 0x50c   : > { %4434 = vmatmul.msk.bf16.vlgmr.msrb.gmra.mxu3 %vm1168_vm13, %v1953_v60  ;;  %v5143_v34 = vpop.eup %5142  ;;  %v2252_v48 = vmul.f32 %v5141_v13, %v6531_v11 }
 0x50d   : > { %2301 = vmatpush.bf16.msrb.mxu3 %v2289_v8  ;;  %v2253_v56 = vmul.f32 %v5143_v34, %v6516_v35 }
 0x50e   : > { %v2256_v6 = vpack.c.bf16 %v2252_v48, %v2252_v48 }
 0x50f   : > { %v2257_v23 = vpack.c.bf16 %v2253_v56, %v2253_v56 }
 0x510   : > { %v2285_v16 = vunpack.c.l.b16 %v2256_v6  ;;  %v4789_v6 = vld [vmem:[%s6018_s28 + $0x30] sm:$0xff] }
 0x511   : > { %v2286_v11 = vunpack.c.l.b16 %v2257_v23 }
 0x513   : > { %v2287_v38 = vpack.c.b16 %v2286_v11, %v2285_v16  ;;  %v4787_v16 = vld [vmem:[%s6018_s28 + $0x20] sm:$0xff] }
 0x514   : > { %4441 = vmatmul.msk.bf16.vlgmr.msra.gmra.mxu2 %vm1168_vm13, %v2262_v31 }
 0x517   : > { %v2431_v54 = vpop.permute.xlu0 %2430 }
 0x518   : > { %2443 = vmatpush.bf16.msrb.mxu2 %v2431_v54 }
 0x519   : > { %v2406_v49 = vpop.xlane.xlu1 %2405 }
 0x51a   : > { %v1443_v36 = vpop.f32.mrf.mxu2  ;;  %5144 = vrcp.f32 %v2406_v49 }
 0x51b   : > { %1477 = vrot.lane.b32.xlu1 %v1443_v36, %s5622_s21 }
 0x51c   : > { %4438 = vmatmul.msk.bf16.vlgmr.msra.gmra.mxu3 %vm1168_vm13, %v2120_v28 }
 0x51f   : > { %v2456_v57 = vpop.permute.xlu0 %2455 }
 0x520   : > { %v5145_v45 = vpop.eup %5144  ;;  %2468 = vmatpush.bf16.msra.mxu3 %v2456_v57 }
 0x521   : > { %v2418_v55 = vmul.f32 %v5145_v45, %v6546_v47  ;;  %v2412_v5 = vpop.xlane.xlu1 %2411 }
 0x522   : > { %v1445_v41 = vpop.f32.mrf.mxu2  ;;  %5146 = vrcp.f32 %v2412_v5 }
 0x523   : > { %v2422_v61 = vpack.c.bf16 %v2418_v55, %v2418_v55  ;;  %1479 = vrot.lane.b32.xlu0 %v1445_v41, %s5622_s21  ;;  %v4790_v55 = vld [vmem:[%s6018_s28 + $0x38] sm:$0xff] }
 0x524   : > { %2570 = vmatpush.bf16.msrb.mxu0 %v4790_v55 }
 0x525   : > { %v2428_v1 = vunpack.c.l.b16 %v2422_v61  ;;  %v4788_v61 = vld [vmem:[%s6018_s28 + $0x28] sm:$0xff] }
 0x527   : > { %v2429_v39 = vpack.c.b16 %v2428_v1, %v2427_v19 }
 0x528   : > { %v5147_v25 = vpop.eup %5146  ;;  %2571 = vmatpush.bf16.msrb.mxu0 %v4789_v6  ;;  %v4595_v6 = vld [vmem:[%s6021_s5 + $0xf0] sm:$0xf0] }
 0x529   : > { %4445 = vmatmul.msk.bf16.vlgmr.msrb.gmra.mxu2 %vm1168_vm13, %v2429_v39  ;;  %v2420_v40 = vmul.f32 %v5147_v25, %v6556_v33  ;;  %v4786_v39 = vld [vmem:[%s6018_s28 + $0x18] sm:$0xff] }
 0x52a   : > { %v1610_v35 = vpop.f32.mrf.mxu2 }
 0x52b   : > { %1644 = vrot.lane.b32.xlu0 %v1610_v35, %s5621_s30  ;;  %v2424_v43 = vpack.c.bf16 %v2420_v40, %v2420_v40  ;;  %v4785_v35 = vld [vmem:[%s6018_s28 + $0x10] sm:$0xff]  ;;  %v4783_v40 = vld [vmem:[%s6018_s28] sm:$0xff] }
 0x52c   : > { %4442 = vmatmul.msk.bf16.vlgmr.msrb.gmra.mxu3 %vm1168_vm13, %v2287_v38  ;;  %2572 = vmatpush.bf16.msrb.mxu0 %v4788_v61  ;;  %v4822_v61 = vld [vmem:[%s6021_s5 + $0xf4] sm:$0xf0] }
 0x52d   : > { %v2453_v51 = vunpack.c.l.b16 %v2424_v43 }
 0x52f   : > { %v2409_v47 = vpop.xlane.xlu2 %2408 }
 0x530   : > { %5148 = vrcp.f32 %v2409_v47  ;;  %2573 = vmatpush.bf16.msrb.mxu0 %v4787_v16  ;;  %v4784_v47 = vld [vmem:[%s6018_s28 + $0x8] sm:$0xff]  ;;  %v4603_v16 = vld [vmem:[%s6021_s5 + $0xf8] sm:$0xf0] }
 0x531   : > { %v1468_v12 = vpop.f32.mrf.mxu3 }
 0x532   : > { %v1612_v0 = vpop.f32.mrf.mxu2  ;;  %1481 = vrot.lane.b32.xlu2 %v1468_v12, %s5622_s21 }
 0x533   : > { %1646 = vrot.lane.b32.xlu0 %v1612_v0, %s5621_s30 }
 0x534   : > { %2574 = vmatpush.bf16.msrb.mxu0 %v4786_v39 }
 0x536   : > { %v5149_v59 = vpop.eup %5148 }
 0x537   : > { %v2419_v46 = vmul.f32 %v5149_v59, %v6569_v44 }
 0x538   : > { %2575 = vmatpush.bf16.msrb.mxu0 %v4785_v35 }
 0x539   : > { %v2423_v3 = vpack.c.bf16 %v2419_v46, %v2419_v46  ;;  %v1470_v18 = vpop.f32.mrf.mxu3 }
 0x53a   : > { %v1777_v24 = vpop.f32.mrf.mxu2  ;;  %1483 = vrot.lane.b32.xlu1 %v1470_v18, %s5622_s21 }
 0x53b   : > { %v2452_v53 = vunpack.c.l.b16 %v2423_v3  ;;  %1811 = vrot.lane.b32.xlu2 %v1777_v24, %s5620_s24 }
 0x53c   : > { %2576 = vmatpush.bf16.msrb.mxu0 %v4784_v47  ;;  %v4579_v47 = vld [vmem:[%s6021_s5 + $0xd0] sm:$0xf0] }
 0x53d   : > { %v2454_v37 = vpack.c.b16 %v2453_v51, %v2452_v53 }
 0x53f   : > { %4446 = vmatmul.msk.bf16.vlgmr.msra.gmra.mxu3 %vm1168_vm13, %v2454_v37 }
 0x540   : > { %2577 = vmatpush.bf16.msrb.mxu0 %v4783_v40 }
 0x542   : > { %v1779_v63 = vpop.f32.mrf.mxu2 }
 0x543   : > { %1813 = vrot.lane.b32.xlu1 %v1779_v63, %s5620_s24 }
 0x56f   : > { %v1635_v33 = vpop.f32.mrf.mxu3 }
 0x570   : > { %1648 = vrot.lane.b32.xlu0 %v1635_v33, %s5621_s30 }
 0x577   : > { %v1637_v60 = vpop.f32.mrf.mxu3  ;;  %v1944_v44 = vpop.f32.mrf.mxu2 }
 0x578   : > { %1650 = vrot.lane.b32.xlu2 %v1637_v60, %s5621_s30  ;;  %1978 = vrot.lane.b32.xlu0 %v1944_v44, %s5619_s26 }
 0x57f   : > { %v1802_v42 = vpop.f32.mrf.mxu3  ;;  %v1946_v32 = vpop.f32.mrf.mxu2 }
 0x580   : > { %1815 = vrot.lane.b32.xlu1 %v1802_v42, %s5620_s24  ;;  %v5008_v42 = vld [vmem:[%s787_s7] ss:$0 sm:$0xff] }
 0x587   : > { %v1804_v58 = vpop.f32.mrf.mxu3  ;;  %v2111_v8 = vpop.f32.mrf.mxu2 }
 0x588   : > { %1817 = vrot.lane.b32.xlu0 %v1804_v58, %s5620_s24  ;;  %1980 = vrot.lane.b32.xlu1 %v1946_v32, %s5619_s26 }
 0x58c   : > { %v1482_v62 = vpop.permute.xlu2 %1481 }
 0x58d   : > { %v1478_v21 = vpop.permute.xlu1 %1477  ;;  %1492 = vst.msk [vmem:[#allocation3 + $0x10] sm:$0xff] %vm1489_vm14, %v1482_v62 }
 0x58e   : > { %1490 = vst.msk [vmem:[#allocation3] sm:$0xff] %vm1489_vm14, %v1478_v21 }
 0x58f   : > { %v1969_v4 = vpop.f32.mrf.mxu3  ;;  %v2113_v20 = vpop.f32.mrf.mxu2 }
 0x590   : > { %2145 = vrot.lane.b32.xlu0 %v2111_v8, %s5616_s19  ;;  %2147 = vrot.lane.b32.xlu1 %v2113_v20, %s5616_s19 }
 0x595   : > { %v1480_v10 = vpop.permute.xlu0 %1479  ;;  %v1812_v30 = vpop.permute.xlu2 %1811 }
 0x596   : > { %1491 = vst.msk [vmem:[#allocation3 + $0x8] sm:$0xff] %vm1489_vm14, %v1480_v10 }
 0x597   : > { %v1971_v52 = vpop.f32.mrf.mxu3  ;;  %v2278_v31 = vpop.f32.mrf.mxu2 }
 0x598   : > { %1984 = vrot.lane.b32.xlu1 %v1971_v52, %s5619_s26  ;;  %2312 = vrot.lane.b32.xlu0 %v2278_v31, %s5618_s3 }
 0x59d   : > { %v1645_v2 = vpop.permute.xlu0 %1644 }
 0x59e   : > { %1657 = vst.msk [vmem:[#allocation3] sm:$0xff] %vm1656_vm15, %v1645_v2 }
 0x59f   : > { %v2136_v27 = vpop.f32.mrf.mxu3  ;;  %v2280_v54 = vpop.f32.mrf.mxu2  ;;  %1824 = vst.msk [vmem:[#allocation3] sm:$0xff] %vm1823_vm0, %v1812_v30 }
 0x5a0   : > { %2314 = vrot.lane.b32.xlu2 %v2280_v54, %s5618_s3 }
 0x5a5   : > { %v1647_v26 = vpop.permute.xlu0 %1646 }
 0x5a6   : > { %1658 = vst.msk [vmem:[#allocation3 + $0x8] sm:$0xff] %vm1656_vm15, %v1647_v26 }
 0x5a7   : > { %v2138_v49 = vpop.f32.mrf.mxu3 }
 0x5a8   : > { %1982 = vrot.lane.b32.xlu2 %v1969_v4, %s5619_s26 }
 0x5ac   : > { %v1484_v50 = vpop.permute.xlu1 %1483  ;;  %v2445_v28 = vpop.f32.mrf.mxu2 }
 0x5ad   : > { %1493 = vst.msk [vmem:[#allocation3 + $0x18] sm:$0xff] %vm1489_vm14, %v1484_v50  ;;  %2479 = vrot.lane.b32.xlu1 %v2445_v28, %s5617_s29 }
 0x5af   : > { %v2303_v36 = vpop.f32.mrf.mxu3 }
 0x5b0   : > { %2151 = vrot.lane.b32.xlu2 %v2138_v49, %s5616_s19 }
 0x5b4   : > { %v2447_v13 = vpop.f32.mrf.mxu2 }
 0x5b5   : > { %v1814_v34 = vpop.permute.xlu1 %1813  ;;  %2316 = vrot.lane.b32.xlu1 %v2303_v36, %s5618_s3  ;;  %2481 = vrot.lane.b32.xlu0 %v2447_v13, %s5617_s29 }
 0x5b6   : > { %1825 = vst.msk [vmem:[#allocation3 + $0x8] sm:$0xff] %vm1823_vm0, %v1814_v34 }
 0x5b7   : > { %v2305_v29 = vpop.f32.mrf.mxu3 }
 0x5bd   : > { %2149 = vrot.lane.b32.xlu0 %v2136_v27, %s5616_s19  ;;  %s7818_s19 = sld [smem:[#allocation45_spill]] }
 0x5c2   : > { %v2470_v48 = vpop.f32.mrf.mxu3 }
 0x5c3   : > { %2483 = vrot.lane.b32.xlu2 %v2470_v48, %s5617_s29 }
 0x5c5   : > { %2318 = vrot.lane.b32.xlu0 %v2305_v29, %s5618_s3  ;;  %s4043_s3 = sshll.u32 %s6027_s14, 4  ;;  %s4044_s3 = int_to_ptr.vmem [resolvable:$true] %s4043_s3 }
 0x5ca   : > { %v2472_v57 = vpop.f32.mrf.mxu3 }
 0x5cb   : > { %2485 = vrot.lane.b32.xlu1 %v2472_v57, %s5617_s29  ;;  %s7819_s29 = smov %s7818_s19 }
 0x5d2   : > { %v1651_v45 = vpop.permute.xlu2 %1650 }
 0x5d3   : > { %1660 = vst.msk [vmem:[#allocation3 + $0x18] sm:$0xff] %vm1656_vm15, %v1651_v45  ;;  %v4593_v45 = vld [vmem:[%s6021_s5 + $0xe0] sm:$0xf] }
 0x5e2   : > { %v1649_v56 = vpop.permute.xlu0 %1648 }
 0x5e3   : > { %1659 = vst.msk [vmem:[#allocation3 + $0x10] sm:$0xff] %vm1656_vm15, %v1649_v56  ;;  %v4821_v56 = vld [vmem:[%s6021_s5 + $0xec] sm:$0xf0] }
 0x5e4   : > { %v4594_v55 = vor.u32 %v4821_v56, %v4593_v45 }
 0x5e6   : > { %2893 = vmatpush.bf16.msrb.mxu1 %v4594_v55  ;;  %v4539_v55 = vld [vmem:[%s6021_s5 + $0x78] sm:$0xf0] }
 0x5ea   : > { %v1979_v17 = vpop.permute.xlu0 %1978 }
 0x5eb   : > { %1991 = vst.msk [vmem:[#allocation3] sm:$0xff] %vm1990_vm1, %v1979_v17  ;;  %v4819_v17 = vld [vmem:[%s6021_s5 + $0xe4] sm:$0xf] }
 0x5f2   : > { %v1816_v41 = vpop.permute.xlu1 %1815 }
 0x5f3   : > { %1826 = vst.msk [vmem:[#allocation3 + $0x10] sm:$0xff] %vm1823_vm0, %v1816_v41  ;;  %v4601_v41 = vld [vmem:[%s6021_s5 + $0xe8] sm:$0xf] }
 0x5fa   : > { %v1981_v23 = vpop.permute.xlu1 %1980  ;;  %v2315_v19 = vpop.permute.xlu2 %2314 }
 0x5fb   : > { %1992 = vst.msk [vmem:[#allocation3 + $0x8] sm:$0xff] %vm1990_vm1, %v1981_v23  ;;  %v1818_v1 = vpop.permute.xlu0 %1817  ;;  %v4598_v23 = vor.u32 %v4819_v17, %v4595_v6  ;;  %v4804_v17 = vld [vmem:[%s6021_s5 + $0x6c] sm:$0xf] }
 0x5fc   : > { %1827 = vst.msk [vmem:[#allocation3 + $0x18] sm:$0xff] %vm1823_vm0, %v1818_v1  ;;  %v4820_v1 = vld [vmem:[%s6021_s5 + $0xec] sm:$0xf]  ;;  %v4542_v6 = vor.u32 %v4804_v17, %v4539_v55 }
 0x5fd   : > { %v4606_v39 = vor.u32 %v4820_v1, %v4603_v16  ;;  %2912 = vmatpush.bf16.msra.mxu2 %v4598_v23  ;;  %v4799_v23 = vld [vmem:[%s6021_s5 + $0x44] sm:$0xf]  ;;  %v4515_v1 = vld [vmem:[%s6021_s5 + $0x50] sm:$0xf0]  ;;  %v4521_v16 = vld [vmem:[%s6021_s5 + $0x48] sm:$0xf] }
 0x5ff   : > { %2950 = vmatpush.bf16.msra.mxu0 %v4606_v39  ;;  %v4802_v39 = vld [vmem:[%s6021_s5 + $0x54] sm:$0xf0] }
 0x602   : > { %v2148_v5 = vpop.permute.xlu1 %2147  ;;  %v1983_v11 = vpop.permute.xlu2 %1982 }
 0x603   : > { %2159 = vst.msk [vmem:[#allocation3 + $0x8] sm:$0xff] %vm2157_vm2, %v2148_v5  ;;  %v2146_v38 = vpop.permute.xlu0 %2145  ;;  %v4577_v5 = vld [vmem:[%s6021_s5 + $0xc0] sm:$0xf] }
 0x604   : > { %1993 = vst.msk [vmem:[#allocation3 + $0x10] sm:$0xff] %vm1990_vm1, %v1983_v11  ;;  %v4817_v11 = vld [vmem:[%s6021_s5 + $0xcc] sm:$0xf0] }
 0x605   : > { %2158 = vst.msk [vmem:[#allocation3] sm:$0xff] %vm2157_vm2, %v2146_v38  ;;  %v4815_v38 = vld [vmem:[%s6021_s5 + $0xc4] sm:$0xf]  ;;  %v4578_v35 = vor.u32 %v4817_v11, %v4577_v5  ;;  %v4518_v5 = vor.u32 %v4799_v23, %v4515_v1  ;;  %v4522_v11 = vor.u32 %v4802_v39, %v4521_v16 }
 0x606   : > { %2326 = vst.msk [vmem:[#allocation3 + $0x8] sm:$0xff] %vm2324_vm3, %v2315_v19  ;;  %v4602_v19 = vor.u32 %v4822_v61, %v4601_v41  ;;  %v4513_v41 = vld [vmem:[%s6021_s5 + $0x40] sm:$0xf]  ;;  %v4801_v61 = vld [vmem:[%s6021_s5 + $0x4c] sm:$0xf0] }
 0x607   : > { %2894 = vmatpush.bf16.msrb.mxu1 %v4578_v35  ;;  %v4523_v35 = vld [vmem:[%s6021_s5 + $0x58] sm:$0xf0] }
 0x608   : > { %2931 = vmatpush.bf16.msrb.mxu3 %v4602_v19  ;;  %v4514_v19 = vor.u32 %v4801_v61, %v4513_v41 }
 0x60a   : > { %v1985_v25 = vpop.permute.xlu1 %1984  ;;  %v2152_v12 = vpop.permute.xlu2 %2151 }
 0x60b   : > { %1994 = vst.msk [vmem:[#allocation3 + $0x18] sm:$0xff] %vm1990_vm1, %v1985_v25  ;;  %v2313_v0 = vpop.permute.xlu0 %2312  ;;  %v4585_v25 = vld [vmem:[%s6021_s5 + $0xc8] sm:$0xf] }
 0x60c   : > { %2161 = vst.msk [vmem:[#allocation3 + $0x18] sm:$0xff] %vm2157_vm2, %v2152_v12  ;;  %v4818_v12 = vld [vmem:[%s6021_s5 + $0xd4] sm:$0xf0] }
 0x60d   : > { %2325 = vst.msk [vmem:[#allocation3] sm:$0xff] %vm2324_vm3, %v2313_v0  ;;  %v4582_v0 = vor.u32 %v4815_v38, %v4579_v47  ;;  %v4586_v40 = vor.u32 %v4818_v12, %v4585_v25  ;;  %v4800_v38 = vld [vmem:[%s6021_s5 + $0x4c] sm:$0xf]  ;;  %v4497_v12 = vld [vmem:[%s6021_s5 + $0x20] sm:$0xf] }
 0x60e   : > { %v4526_v47 = vor.u32 %v4800_v38, %v4523_v35  ;;  %v5010_v35 = vld [vmem:[%s790_s16] ss:$0 sm:$0xff] }
 0x60f   : > { %2913 = vmatpush.bf16.msra.mxu2 %v4582_v0  ;;  %2932 = vmatpush.bf16.msrb.mxu3 %v4586_v40  ;;  %v4797_v0 = vld [vmem:[%s6021_s5 + $0x2c] sm:$0xf0]  ;;  %v4795_v40 = vld [vmem:[%s6021_s5 + $0x24] sm:$0xf] }
 0x61d   : > { %v2484_v53 = vpop.permute.xlu2 %2483 }
 0x61f   : > { %v2480_v59 = vpop.permute.xlu1 %2479 }
 0x620   : > { %2492 = vst.msk [vmem:[#allocation3] sm:$0xff] %vm2491_vm4, %v2480_v59  ;;  %v4816_v59 = vld [vmem:[%s6021_s5 + $0xcc] sm:$0xf] }
 0x627   : > { %v2482_v43 = vpop.permute.xlu0 %2481  ;;  %v2496_v3 = vld [vmem:[#allocation3] sm:$0xff]  ;;  %v2317_v24 = vpop.permute.xlu1 %2316 }
 0x628   : > { %2493 = vst.msk [vmem:[#allocation3 + $0x8] sm:$0xff] %vm2491_vm4, %v2482_v43  ;;  %v4587_v43 = vld [vmem:[%s6021_s5 + $0xd8] sm:$0xf0] }
 0x62f   : > { %v2150_v46 = vpop.permute.xlu0 %2149  ;;  %v2497_v18 = vld [vmem:[#allocation3 + $0x8] sm:$0xff] }
 0x630   : > { %2160 = vst.msk [vmem:[#allocation3 + $0x10] sm:$0xff] %vm2157_vm2, %v2150_v46  ;;  %v2500_v51 = vpack.c.bf16 %v2497_v18, %v2496_v3  ;;  %v4590_v46 = vor.u32 %v4816_v59, %v4587_v43  ;;  %v4561_v3 = vld [vmem:[%s6021_s5 + $0xa0] sm:$0xf]  ;;  %v4813_v18 = vld [vmem:[%s6021_s5 + $0xac] sm:$0xf0]  ;;  %v4498_v43 = vor.u32 %v4797_v0, %v4497_v12 }
 0x631   : > { %2327 = vst.msk [vmem:[#allocation3 + $0x10] sm:$0xff] %vm2324_vm3, %v2317_v24  ;;  %v4811_v24 = vld [vmem:[%s6021_s5 + $0xa4] sm:$0xf] }
 0x632   : > { %2494 = vst.msk [vmem:[#allocation3 + $0x10] sm:$0xff] %vm2491_vm4, %v2484_v53  ;;  %2578 = vmatmul.bf16.vlgmr.msrb.gmra.mxu0 %v2500_v51  ;;  %v4562_v51 = vor.u32 %v4813_v18, %v4561_v3  ;;  %v4563_v53 = vld [vmem:[%s6021_s5 + $0xb0] sm:$0xf0]  ;;  %v4505_v3 = vld [vmem:[%s6021_s5 + $0x28] sm:$0xf] }
 0x633   : > { %2951 = vmatpush.bf16.msra.mxu0 %v4590_v46  ;;  %v4499_v46 = vld [vmem:[%s6021_s5 + $0x30] sm:$0xf0]  ;;  %v4798_v18 = vld [vmem:[%s6021_s5 + $0x34] sm:$0xf0] }
 0x634   : > { %2895 = vmatpush.bf16.msrb.mxu1 %v4562_v51  ;;  %v4506_v51 = vor.u32 %v4798_v18, %v4505_v3 }
 0x637   : > { %v2319_v37 = vpop.permute.xlu0 %2318 }
 0x638   : > { %2328 = vst.msk [vmem:[#allocation3 + $0x18] sm:$0xff] %vm2324_vm3, %v2319_v37  ;;  %v4569_v37 = vld [vmem:[%s6021_s5 + $0xa8] sm:$0xf] }
 0x639   : > { %v2498_v33 = vld [vmem:[#allocation3 + $0x10] sm:$0xff] }
 0x63d   : > { %v2486_v63 = vpop.permute.xlu1 %2485 }
 0x63e   : > { %2495 = vst.msk [vmem:[#allocation3 + $0x18] sm:$0xff] %vm2491_vm4, %v2486_v63  ;;  %v4814_v63 = vld [vmem:[%s6021_s5 + $0xb4] sm:$0xf0] }
 0x645   : > { %v2499_v60 = vld [vmem:[#allocation3 + $0x18] sm:$0xff] }
 0x646   : > { %v2501_v44 = vpack.c.bf16 %v2499_v60, %v2498_v33  ;;  %v4566_v33 = vor.u32 %v4811_v24, %v4563_v53  ;;  %v4570_v60 = vor.u32 %v4814_v63, %v4569_v37  ;;  %v4502_v24 = vor.u32 %v4795_v40, %v4499_v46  ;;  %v4796_v53 = vld [vmem:[%s6021_s5 + $0x2c] sm:$0xf]  ;;  %v4507_v37 = vld [vmem:[%s6021_s5 + $0x38] sm:$0xf0] }
 0x648   : > { %2583 = vmatmul.bf16.gmra.mxu0 %v2501_v44  ;;  %v4812_v44 = vld [vmem:[%s6021_s5 + $0xac] sm:$0xf]  ;;  %2914 = vmatpush.bf16.msra.mxu2 %v4566_v33  ;;  %v4510_v33 = vor.u32 %v4796_v53, %v4507_v37 }
 0x649   : > { %2933 = vmatpush.bf16.msrb.mxu3 %v4570_v60  ;;  %v4481_v60 = vld [vmem:[%s6021_s5] sm:$0xf] }
 0x6af   : > { %v2579_v32 = vpop.f32.mrf.mxu0 }
 0x6b0   : > { %v2580_v58 = vadd.f32 %v5008_v42, %v2579_v32 }
 0x6b2   : > { %v6682_v8 = vadd.f32 %v2580_v58, %v6033_v9  ;;  %v4545_v58 = vld [vmem:[%s6021_s5 + $0x80] sm:$0xf] }
 0x6b4   : > { %2595 = vadd.xlane.f32.xlu0 %v6682_v8 }
 0x6b7   : > { %v2581_v62 = vpop.f32.mrf.mxu0 }
 0x6b8   : > { %v2582_v21 = vadd.f32 %v5008_v42, %v2581_v62  ;;  %v4809_v62 = vld [vmem:[%s6021_s5 + $0x8c] sm:$0xf0] }
 0x6ba   : > { %v6686_v4 = vadd.f32 %v2582_v21, %v6039_v15  ;;  %v4807_v21 = vld [vmem:[%s6021_s5 + $0x84] sm:$0xf] }
 0x6bc   : > { %2597 = vadd.xlane.f32.xlu2 %v6686_v4 }
 0x6c5   : > { %v2584_v20 = vpop.f32.mrf.mxu0 }
 0x6c6   : > { %v2585_v10 = vadd.f32 %v5008_v42, %v2584_v20  ;;  %v4546_v20 = vor.u32 %v4809_v62, %v4545_v58  ;;  %v4483_v58 = vld [vmem:[%s6021_s5 + $0x10] sm:$0xf0]  ;;  %v4489_v62 = vld [vmem:[%s6021_s5 + $0x8] sm:$0xf] }
 0x6c8   : > { %v6690_v52 = vadd.f32 %v2585_v10, %v6031_v7  ;;  %v4547_v10 = vld [vmem:[%s6021_s5 + $0x90] sm:$0xf0]  ;;  %2896 = vmatpush.bf16.msrb.mxu1 %v4546_v20 }
 0x6ca   : > { %2599 = vadd.xlane.f32.xlu1 %v6690_v52 }
 0x6cd   : > { %v2586_v31 = vpop.f32.mrf.mxu0 }
 0x6ce   : > { %v2587_v2 = vadd.f32 %v5008_v42, %v2586_v31  ;;  %v4571_v42 = vld [vmem:[%s6021_s5 + $0xb8] sm:$0xf0]  ;;  %v4553_v31 = vld [vmem:[%s6021_s5 + $0x88] sm:$0xf] }
 0x6cf   : > { %v4574_v32 = vor.u32 %v4812_v44, %v4571_v42  ;;  %v4793_v44 = vld [vmem:[%s6021_s5 + $0xc] sm:$0xf0]  ;;  %v4791_v42 = vld [vmem:[%s6021_s5 + $0x4] sm:$0xf] }
 0x6d0   : > { %v6694_v9 = vadd.f32 %v2587_v2, %v6037_v14  ;;  %v4810_v2 = vld [vmem:[%s6021_s5 + $0x94] sm:$0xf0]  ;;  %v4486_v20 = vor.u32 %v4791_v42, %v4483_v58 }
 0x6d1   : > { %2952 = vmatpush.bf16.msra.mxu0 %v4574_v32  ;;  %v4482_v32 = vor.u32 %v4793_v44, %v4481_v60 }
 0x6d2   : > { %2601 = vadd.xlane.f32.xlu0 %v6694_v9 }
 0x727   : > { %v2596_v30 = vpop.xlane.xlu0 %2595 }
 0x728   : > { %v2603_v15 = vmul.f32 %v2596_v30, %v6043_v22  ;;  %v4550_v30 = vor.u32 %v4807_v21, %v4547_v10  ;;  %v4794_v21 = vld [vmem:[%s6021_s5 + $0x14] sm:$0xf0] }
 0x729   : > { %v4490_v10 = vor.u32 %v4794_v21, %v4489_v62 }
 0x72a   : > { %v6699_v27 = vsub.f32 %v6682_v8, %v2603_v15  ;;  %v4554_v15 = vor.u32 %v4810_v2, %v4553_v31  ;;  %2915 = vmatpush.bf16.msra.mxu2 %v4550_v30  ;;  %v4792_v31 = vld [vmem:[%s6021_s5 + $0xc] sm:$0xf]  ;;  %v4491_v2 = vld [vmem:[%s6021_s5 + $0x18] sm:$0xf0] }
 0x72b   : > { %v4494_v30 = vor.u32 %v4792_v31, %v4491_v2 }
 0x72c   : > { %v2611_v54 = vmul.f32 %v6699_v27, %v6699_v27  ;;  %2934 = vmatpush.bf16.msrb.mxu3 %v4554_v15 }
 0x72e   : > { %2615 = vadd.xlane.f32.xlu2 %v2611_v54  ;;  %v4808_v54 = vld [vmem:[%s6021_s5 + $0x8c] sm:$0xf] }
 0x72f   : > { %v2598_v7 = vpop.xlane.xlu2 %2597 }
 0x730   : > { %v2604_v26 = vmul.f32 %v2598_v7, %v6043_v22  ;;  %v4555_v7 = vld [vmem:[%s6021_s5 + $0x98] sm:$0xf0] }
 0x732   : > { %v6705_v14 = vsub.f32 %v6686_v4, %v2604_v26  ;;  %v4558_v26 = vor.u32 %v4808_v54, %v4555_v7 }
 0x734   : > { %v2612_v49 = vmul.f32 %v6705_v14, %v6705_v14  ;;  %2953 = vmatpush.bf16.msra.mxu0 %v4558_v26 }
 0x736   : > { %2617 = vadd.xlane.f32.xlu1 %v2612_v49  ;;  %v4529_v49 = vld [vmem:[%s6021_s5 + $0x60] sm:$0xf] }
 0x738   : > { %2954 = vmatpush.bf16.msra.mxu0 %v4542_v6 }
 0x73c   : > { %2955 = vmatpush.bf16.msra.mxu0 %v4526_v47 }
 0x73d   : > { %v2600_v50 = vpop.xlane.xlu1 %2599 }
 0x73e   : > { %v2605_v28 = vmul.f32 %v2600_v50, %v6043_v22  ;;  %v4805_v50 = vld [vmem:[%s6021_s5 + $0x6c] sm:$0xf0] }
 0x740   : > { %v6711_v36 = vsub.f32 %v6690_v52, %v2605_v28  ;;  %v4803_v28 = vld [vmem:[%s6021_s5 + $0x64] sm:$0xf]  ;;  %2956 = vmatpush.bf16.msra.mxu0 %v4510_v33 }
 0x742   : > { %v2613_v13 = vmul.f32 %v6711_v36, %v6711_v36 }
 0x744   : > { %2619 = vadd.xlane.f32.xlu0 %v2613_v13  ;;  %v4530_v13 = vor.u32 %v4805_v50, %v4529_v49  ;;  %2957 = vmatpush.bf16.msra.mxu0 %v4494_v30 }
 0x745   : > { %v2602_v34 = vpop.xlane.xlu0 %2601 }
 0x746   : > { %v2606_v29 = vmul.f32 %v2602_v34, %v6043_v22  ;;  %v4531_v34 = vld [vmem:[%s6021_s5 + $0x70] sm:$0xf0]  ;;  %2897 = vmatpush.bf16.msrb.mxu1 %v4530_v13 }
 0x747   : > { %v4534_v45 = vor.u32 %v4803_v28, %v4531_v34 }
 0x748   : > { %v6717_v48 = vsub.f32 %v6694_v9, %v2606_v29  ;;  %v4537_v29 = vld [vmem:[%s6021_s5 + $0x68] sm:$0xf] }
 0x749   : > { %2916 = vmatpush.bf16.msra.mxu2 %v4534_v45 }
 0x74a   : > { %v2614_v57 = vmul.f32 %v6717_v48, %v6717_v48  ;;  %2898 = vmatpush.bf16.msrb.mxu1 %v4514_v19  ;;  %v5009_v19 = vld [vmem:[%s670_s2] ss:$0 sm:$0xff] }
 0x74c   : > { %2621 = vadd.xlane.f32.xlu2 %v2614_v57  ;;  %v4806_v57 = vld [vmem:[%s6021_s5 + $0x74] sm:$0xf0]  ;;  %s5522_s5 = scalar_lea.hbm %s7819_s29, 32 }
 0x74d   : > { %v4538_v56 = vor.u32 %v4806_v57, %v4537_v29  ;;  %2917 = vmatpush.bf16.msra.mxu2 %v4518_v5 }
 0x74e   : > { %2899 = vmatpush.bf16.msrb.mxu1 %v4498_v43 }
 0x74f   : > { %2935 = vmatpush.bf16.msrb.mxu3 %v4538_v56 }
 0x751   : > { %2918 = vmatpush.bf16.msra.mxu2 %v4502_v24 }
 0x752   : > { %2900 = vmatpush.bf16.msrb.mxu1 %v4482_v32 }
 0x753   : > { %2936 = vmatpush.bf16.msrb.mxu3 %v4522_v11 }
 0x755   : > { %2919 = vmatpush.bf16.msra.mxu2 %v4486_v20  ;;  %v2723_v20 = vld [vmem:[%s6023_s18] sm:$0xf]  ;;  %s7817_s18 = sld [smem:[#allocation27_spill]] }
 0x756   : > { %v6803_v31 = vperm.slane %v2723_v20, 3 }
 0x757   : > { %2937 = vmatpush.bf16.msrb.mxu3 %v4506_v51 }
 0x75b   : > { %2938 = vmatpush.bf16.msrb.mxu3 %v4490_v10  ;;  %v6801_v10 = vperm.slane %v2723_v20, 0  ;;  %s7820_s24 = sand.u32 1, %s7817_s18  }
 0x75c   : > { %s4030_s30 = scalar_lea.sflag [#allocation8], %s7820_s24 }
 0x7a1   : > { %v2616_v25 = vpop.xlane.xlu2 %2615 }
 0x7a2   : > { %v2623_v59 = vmul.f32 %v2616_v25, %v6043_v22 }
 0x7a4   : > { %v2627_v63 = vadd.f32 1e-05, %v2623_v59 }
 0x7a6   : > { %5150 = vrsqrt.f32 %v2627_v63  ;;  %vm2637_vm6 = vweird.f32 %v2627_v63 }
 0x7a9   : > { %v2618_v15 = vpop.xlane.xlu1 %2617 }
 0x7aa   : > { %v2624_v54 = vmul.f32 %v2618_v15, %v6043_v22 }
 0x7ac   : > { %v5151_v7 = vpop.eup %5150  ;;  %v2628_v26 = vadd.f32 1e-05, %v2624_v54  ;;  %v6814_v54 = vperm.slane %v2723_v20, 1 }
 0x7ad   : > { %v2632_v49 = vmul.f32 %v5151_v7, %v2627_v63  ;;  %vm2638_vm5 = vweird.f32 %v5151_v7 }
 0x7ae   : > { %5152 = vrsqrt.f32 %v2628_v26  ;;  %vm2639_vm7 = vmor %vm2637_vm6, %vm2638_vm5  ;;  %vm2647_vm9 = vweird.f32 %v2628_v26 }
 0x7af   : > { %v2633_v50 = vmul.f32 %v5151_v7, %v2632_v49 }
 0x7b1   : > { %v2634_v28 = vmul.f32 0.5, %v2633_v50 }
 0x7b3   : > { %v2635_v13 = vsub.f32 1.5, %v2634_v28 }
 0x7b4   : > { %v5153_v34 = vpop.eup %5152 }
 0x7b5   : > { %v2636_v29 = vmul.f32 %v5151_v7, %v2635_v13  ;;  %v2642_v57 = vmul.f32 %v5153_v34, %v2628_v26  ;;  %vm2648_vm8 = vweird.f32 %v5153_v34  ;;  %v6819_v26 = vperm.slane %v2723_v20, 2 }
 0x7b6   : > { %vm2649_vm10 = vmor %vm2647_vm9, %vm2648_vm8 }
 0x7b7   : > { %v2643_v45 = vmul.f32 %v5153_v34, %v2642_v57  ;;  %v2620_v56 = vpop.xlane.xlu0 %2619  ;;  %v2640_v55 = vsel %vm2639_vm7, %v5151_v7, %v2636_v29 }
 0x7b8   : > { %v2625_v17 = vmul.f32 %v2620_v56, %v6043_v22  ;;  %v2671_v23 = vmul.f32 %v2640_v55, %v6699_v27 }
 0x7b9   : > { %v2644_v6 = vmul.f32 0.5, %v2643_v45 }
 0x7ba   : > { %v2629_v41 = vadd.f32 1e-05, %v2625_v17  ;;  %v2678_v38 = vmul.f32 %v5009_v19, %v2671_v23 }
 0x7bb   : > { %v2645_v61 = vsub.f32 1.5, %v2644_v6 }
 0x7bc   : > { %5154 = vrsqrt.f32 %v2629_v41  ;;  %v2685_v0 = vadd.f32 %v5010_v35, %v2678_v38  ;;  %vm2657_vm12 = vweird.f32 %v2629_v41 }
 0x7bd   : > { %v2646_v1 = vmul.f32 %v5153_v34, %v2645_v61 }
 0x7bf   : > { %v2650_v16 = vsel %vm2649_vm10, %v5153_v34, %v2646_v1  ;;  %v2622_v39 = vpop.xlane.xlu2 %2621 }
 0x7c0   : > { %v2672_v5 = vmul.f32 %v2650_v16, %v6705_v14  ;;  %v2626_v11 = vmul.f32 %v2622_v39, %v6043_v22 }
 0x7c2   : > { %v5155_v47 = vpop.eup %5154  ;;  %v2630_v27 = vadd.f32 1e-05, %v2626_v11  ;;  %v2679_v25 = vmul.f32 %v5009_v19, %v2672_v5 }
 0x7c3   : > { %v2652_v12 = vmul.f32 %v5155_v47, %v2629_v41  ;;  %vm2658_vm11 = vweird.f32 %v5155_v47 }
 0x7c4   : > { %5156 = vrsqrt.f32 %v2630_v27  ;;  %v2686_v40 = vadd.f32 %v5010_v35, %v2679_v25  ;;  %vm2659_vm13 = vmor %vm2657_vm12, %vm2658_vm11  ;;  %vm2667_vm15 = vweird.f32 %v2630_v27 }
 0x7c5   : > { %v2653_v59 = vmul.f32 %v5155_v47, %v2652_v12 }
 0x7c6   : > { %v2689_v43 = vpack.c.bf16 %v2686_v40, %v2685_v0 }
 0x7c7   : > { %v2654_v46 = vmul.f32 0.5, %v2653_v59 }
 0x7c8   : > { %2901 = vmatmul.bf16.vlgmr.msrb.gmra.mxu1 %v2689_v43  ;;  %2920 = vmatmul.bf16.vlgmr.msra.gmra.mxu2 %v2689_v43 }
 0x7c9   : > { %v2655_v14 = vsub.f32 1.5, %v2654_v46  ;;  %2939 = vmatmul.bf16.vlgmr.msrb.gmra.mxu3 %v2689_v43  ;;  %2958 = vmatmul.bf16.vlgmr.msra.gmra.mxu0 %v2689_v43 }
 0x7ca   : > { %v5157_v22 = vpop.eup %5156 }
 0x7cb   : > { %v2656_v3 = vmul.f32 %v5155_v47, %v2655_v14  ;;  %v2662_v18 = vmul.f32 %v5157_v22, %v2630_v27  ;;  %vm2668_vm14 = vweird.f32 %v5157_v22 }
 0x7cc   : > { %vm2669_vm0 = vmor %vm2667_vm15, %vm2668_vm14 }
 0x7cd   : > { %v2663_v24 = vmul.f32 %v5157_v22, %v2662_v18  ;;  %v2660_v51 = vsel %vm2659_vm13, %v5155_v47, %v2656_v3 }
 0x7ce   : > { %v2673_v63 = vmul.f32 %v2660_v51, %v6711_v36 }
 0x7cf   : > { %v2664_v53 = vmul.f32 0.5, %v2663_v24 }
 0x7d0   : > { %v2680_v42 = vmul.f32 %v5009_v19, %v2673_v63 }
 0x7d1   : > { %v2665_v37 = vsub.f32 1.5, %v2664_v53 }
 0x7d2   : > { %v2687_v58 = vadd.f32 %v5010_v35, %v2680_v42 }
 0x7d3   : > { %v2666_v33 = vmul.f32 %v5157_v22, %v2665_v37 }
 0x7d5   : > { %v2670_v60 = vsel %vm2669_vm0, %v5157_v22, %v2666_v33 }
 0x7d6   : > { %v2674_v44 = vmul.f32 %v2670_v60, %v6717_v48 }
 0x7d8   : > { %v2681_v32 = vmul.f32 %v5009_v19, %v2674_v44 }
 0x7da   : > { %v2688_v62 = vadd.f32 %v5010_v35, %v2681_v32 }
 0x7dc   : > { %v2690_v21 = vpack.c.bf16 %v2688_v62, %v2687_v58 }
 0x7de   : > { %2906 = vmatmul.bf16.gmra.mxu1 %v2690_v21  ;;  %2925 = vmatmul.bf16.gmra.mxu2 %v2690_v21 }
 0x7df   : > { %2944 = vmatmul.bf16.gmra.mxu3 %v2690_v21  ;;  %2963 = vmatmul.bf16.gmra.mxu0 %v2690_v21 }
 0x845   : > { %v2902_v36 = vpop.f32.mrf.mxu1 }
 0x846   : > { %v6806_v2 = vadd.f32 %v2902_v36, %v6801_v10  ;;  %v2959_v30 = vpop.f32.mrf.mxu0 }
 0x847   : > { %v6809_v48 = vadd.f32 %v2959_v30, %v6803_v31 }
 0x848   : > { %v6812_v15 = vmul.f32 0.70710677, %v6806_v2 }
 0x849   : > { %v6817_v7 = vmul.f32 0.70710677, %v6809_v48 }
 0x84a   : > { %v3001_v49 = vmul.f32 %v6812_v15, %v6812_v15 }
 0x84b   : > { %v3121_v50 = vmul.f32 %v6817_v7, %v6817_v7  ;;  %v2921_v28 = vpop.f32.mrf.mxu2 }
 0x84c   : > { %v6825_v13 = vmin.f32 %v3001_v49, 16.0  ;;  %v6828_v34 = vadd.f32 %v2921_v28, %v6814_v54  ;;  %v2940_v29 = vpop.f32.mrf.mxu3 }
 0x84d   : > { %v6830_v57 = vmin.f32 %v3121_v50, 16.0  ;;  %v6833_v45 = vadd.f32 %v2940_v29, %v6819_v26  ;;  %v2904_v47 = vpop.f32.mrf.mxu1 }
 0x84e   : > { %v3014_v56 = vmul.f32 3.8918573e-05, %v6825_v13  ;;  %v3003_v17 = vmul.f32 2.1237322e-06, %v6825_v13  ;;  %v6839_v6 = vmul.f32 0.70710677, %v6828_v34  ;;  %v6858_v43 = vadd.f32 %v2904_v47, %v6801_v10  ;;  %v2961_v29 = vpop.f32.mrf.mxu0 }
 0x84f   : > { %v3134_v55 = vmul.f32 3.8918573e-05, %v6830_v57  ;;  %v6844_v19 = vmul.f32 0.70710677, %v6833_v45  ;;  %v3123_v16 = vmul.f32 2.1237322e-06, %v6830_v57 }
 0x850   : > { %v3015_v41 = vadd.f32 0.001143296, %v3014_v56  ;;  %v3041_v23 = vmul.f32 %v6839_v6, %v6839_v6  ;;  %v3004_v39 = vadd.f32 0.00028619796, %v3003_v17  ;;  %v6867_v63 = vmul.f32 0.70710677, %v6858_v43 }
 0x851   : > { %v3135_v61 = vadd.f32 0.001143296, %v3134_v55  ;;  %v3081_v35 = vmul.f32 %v6844_v19, %v6844_v19  ;;  %v3124_v12 = vadd.f32 0.00028619796, %v3123_v16 }
 0x852   : > { %v3016_v1 = vmul.f32 %v3015_v41, %v6825_v13  ;;  %v6849_v11 = vmin.f32 %v3041_v23, 16.0  ;;  %v3005_v40 = vmul.f32 %v3004_v39, %v6825_v13  ;;  %v3161_v30 = vmul.f32 %v6867_v63, %v6867_v63 }
 0x853   : > { %v3136_v5 = vmul.f32 %v3135_v61, %v6830_v57  ;;  %v6860_v22 = vmin.f32 %v3081_v35, 16.0  ;;  %v3125_v24 = vmul.f32 %v3124_v12, %v6830_v57  ;;  %v2962_v23 = vadd.f32 %v2961_v29, %v6803_v31 }
 0x854   : > { %v3017_v38 = vadd.f32 0.014752088, %v3016_v1  ;;  %v3054_v0 = vmul.f32 3.8918573e-05, %v6849_v11  ;;  %v3006_v53 = vadd.f32 0.0036580483, %v3005_v40 }
 0x855   : > { %v3137_v27 = vadd.f32 0.014752088, %v3136_v5  ;;  %v3094_v44 = vmul.f32 3.8918573e-05, %v6860_v22  ;;  %v3126_v42 = vadd.f32 0.0036580483, %v3125_v24 }
 0x856   : > { %v3018_v25 = vmul.f32 %v3017_v38, %v6825_v13  ;;  %v3055_v14 = vadd.f32 0.001143296, %v3054_v0  ;;  %v3043_v58 = vmul.f32 2.1237322e-06, %v6849_v11  ;;  %v3007_v62 = vmul.f32 %v3006_v53, %v6825_v13 }
 0x857   : > { %v3138_v59 = vmul.f32 %v3137_v27, %v6830_v57  ;;  %v3095_v36 = vadd.f32 0.001143296, %v3094_v44  ;;  %v3127_v49 = vmul.f32 %v3126_v42, %v6830_v57  ;;  %v6881_v61 = vmin.f32 %v3161_v30, 16.0 }
 0x858   : > { %v3019_v46 = vadd.f32 0.112945676, %v3018_v25  ;;  %v3056_v51 = vmul.f32 %v3055_v14, %v6849_v11  ;;  %v3044_v28 = vadd.f32 0.00028619796, %v3043_v58  ;;  %v3008_v56 = vadd.f32 0.05243302, %v3007_v62 }
 0x859   : > { %v3139_v3 = vadd.f32 0.112945676, %v3138_v59  ;;  %v3096_v41 = vmul.f32 %v3095_v36, %v6860_v22  ;;  %v3128_v1 = vadd.f32 0.05243302, %v3127_v49  ;;  %v3083_v5 = vmul.f32 2.1237322e-06, %v6860_v22 }
 0x85a   : > { %v3020_v18 = vmul.f32 %v3019_v46, %v6825_v13  ;;  %v3057_v60 = vadd.f32 0.014752088, %v3056_v51  ;;  %v3045_v39 = vmul.f32 %v3044_v28, %v6849_v11  ;;  %v3009_v38 = vmul.f32 %v3008_v56, %v6825_v13  ;;  %v2923_v28 = vpop.f32.mrf.mxu2 }
 0x85b   : > { %v3140_v37 = vmul.f32 %v3139_v3, %v6830_v57  ;;  %v3097_v47 = vadd.f32 0.014752088, %v3096_v41  ;;  %v3174_v27 = vmul.f32 3.8918573e-05, %v6881_v61  ;;  %v6892_v25 = vmul.f32 0.70710677, %v2962_v23 }
 0x85c   : > { %v3021_v33 = vadd.f32 0.4994258, %v3020_v18  ;;  %v3058_v20 = vmul.f32 %v3057_v60, %v6849_v11  ;;  %v3129_v12 = vmul.f32 %v3128_v1, %v6830_v57  ;;  %v3046_v0 = vadd.f32 0.0036580483, %v3045_v39 }
 0x85d   : > { %v3141_v32 = vadd.f32 0.4994258, %v3140_v37  ;;  %v3084_v40 = vadd.f32 0.00028619796, %v3083_v5  ;;  %v3010_v59 = vadd.f32 0.18741608, %v3009_v38  ;;  %v3098_v14 = vmul.f32 %v3097_v47, %v6860_v22 }
 0x85e   : > { %v3022_v21 = vmul.f32 %v3021_v33, %v6825_v13  ;;  %v3059_v55 = vadd.f32 0.112945676, %v3058_v20  ;;  %v3175_v3 = vadd.f32 0.001143296, %v3174_v27  ;;  %v3281_v24 = vmul.f32 %v6892_v25, %v6892_v25 }
 0x85f   : > { %v3142_v50 = vmul.f32 %v3141_v32, %v6830_v57  ;;  %v3130_v51 = vadd.f32 0.18741608, %v3129_v12  ;;  %v3047_v53 = vmul.f32 %v3046_v0, %v6849_v11  ;;  %v3085_v37 = vmul.f32 %v3084_v40, %v6860_v22 }
 0x860   : > { %v6878_v17 = vadd.f32 1.0, %v3022_v21  ;;  %v3060_v35 = vmul.f32 %v3059_v55, %v6849_v11  ;;  %v3011_v33 = vmul.f32 %v3010_v59, %v6825_v13  ;;  %v3163_v60 = vmul.f32 2.1237322e-06, %v6881_v61 }
 0x861   : > { %v6884_v16 = vadd.f32 1.0, %v3142_v50  ;;  %v3176_v44 = vmul.f32 %v3175_v3, %v6881_v61  ;;  %v3099_v62 = vadd.f32 0.112945676, %v3098_v14  ;;  %v6912_v21 = vmul.f32 0.5, %v6806_v2 }
 0x862   : > { %5158 = vrcp.f32 %v6878_v17  ;;  %v3061_v46 = vadd.f32 0.4994258, %v3060_v35  ;;  %v6914_v36 = vmin.f32 %v3281_v24, 16.0  ;;  %v6917_v13 = vmul.f32 0.5, %v6809_v48 }
 0x863   : > { %5160 = vrcp.f32 %v6884_v16  ;;  %v3177_v20 = vadd.f32 0.014752088, %v3176_v44  ;;  %v3131_v30 = vmul.f32 %v3130_v51, %v6830_v57  ;;  %v3048_v49 = vadd.f32 0.05243302, %v3047_v53 }
 0x864   : > { %v3062_v58 = vmul.f32 %v3061_v46, %v6849_v11  ;;  %v3086_v50 = vadd.f32 0.0036580483, %v3085_v37  ;;  %v3012_v29 = vadd.f32 1.1283791, %v3011_v33  ;;  %v3164_v55 = vadd.f32 0.00028619796, %v3163_v60 }
 0x865   : > { %v3178_v41 = vmul.f32 %v3177_v20, %v6881_v61  ;;  %v6924_v1 = vmul.f32 0.5, %v6828_v34  ;;  %v3100_v48 = vmul.f32 %v3099_v62, %v6860_v22  ;;  %v6930_v57 = vmul.f32 0.5, %v6833_v45 }
 0x866   : > { %v6926_v39 = vadd.f32 1.0, %v3062_v58  ;;  %v6933_v5 = vmul.f32 0.5, %v6858_v43  ;;  %v3294_v38 = vmul.f32 3.8918573e-05, %v6914_v36  ;;  %v6937_v35 = vadd.f32 %v2923_v28, %v6814_v54 }
 0x867   : > { %v3132_v47 = vadd.f32 1.1283791, %v3131_v30  ;;  %v3049_v27 = vmul.f32 %v3048_v49, %v6849_v11  ;;  %v3087_v34 = vmul.f32 %v3086_v50, %v6860_v22  ;;  %v3179_v12 = vadd.f32 0.112945676, %v3178_v41 }
 0x868   : > { %v6897_v18 = vpop.eup %5158  ;;  %v6942_v0 = vmul.f32 %v3012_v29, %v6812_v15  ;;  %v3165_v45 = vmul.f32 %v3164_v55, %v6881_v61  ;;  %v6945_v59 = vmul.f32 0.5, %v2962_v23  ;;  %5162 = vrcp.f32 %v6926_v39 }
 0x869   : > { %v6906_v42 = vpop.eup %5160  ;;  %v3025_v32 = vmul.f32 %v6897_v18, %v6878_v17  ;;  %v3101_v46 = vadd.f32 0.4994258, %v3100_v48  ;;  %v3180_v14 = vmul.f32 %v3179_v12, %v6881_v61  ;;  %vm3029_vm1 = vweird.f32 %v6878_v17 }
 0x86a   : > { %v3145_v56 = vmul.f32 %v6906_v42, %v6884_v16  ;;  %v3033_v3 = vand.u32 2147483647, %v6878_v17  ;;  %v3295_v24 = vadd.f32 0.001143296, %v3294_v38  ;;  %v6953_v15 = vmul.f32 0.70710677, %v6937_v35 }
 0x86b   : > { %v3026_v2 = vsub.f32 1.0, %v3025_v32  ;;  %v3035_v51 = vand.u32 2147483648, %v6878_v17  ;;  %v6957_v23 = vmul.f32 %v3132_v47, %v6817_v7  ;;  %v3050_v53 = vadd.f32 0.18741608, %v3049_v27  ;;  %v2942_v47 = vpop.f32.mrf.mxu3 }
 0x86c   : > { %v3146_v40 = vsub.f32 1.0, %v3145_v56  ;;  %v3088_v37 = vadd.f32 0.05243302, %v3087_v34  ;;  %vm3030_vm2 = vweird.f32 %v6897_v18  ;;  %v3166_v60 = vadd.f32 0.0036580483, %v3165_v45 }
 0x86d   : > { %v3027_v43 = vmul.f32 %v6897_v18, %v3026_v2  ;;  %v3296_v44 = vmul.f32 %v3295_v24, %v6914_v36  ;;  %v3102_v58 = vmul.f32 %v3101_v46, %v6860_v22  ;;  %v3181_v62 = vadd.f32 0.4994258, %v3180_v14  ;;  %vm6982_vm5 = vmor %vm3029_vm1, %vm3030_vm2 }
 0x86e   : > { %v3147_v33 = vmul.f32 %v6906_v42, %v3146_v40  ;;  %v3201_v20 = vmul.f32 %v6953_v15, %v6953_v15  ;;  %vm6966_vm3 = vcmp.eq.f32.partialorder %v3033_v3, 8.507059e+37  ;;  %vm3149_vm4 = vweird.f32 %v6884_v16  ;;  %v6972_v50 = vpop.eup %5162 }
 0x86f   : > { %v3028_v32 = vadd.f32 %v6897_v18, %v3027_v43  ;;  %v3153_v30 = vand.u32 2147483647, %v6884_v16  ;;  %v3297_v49 = vadd.f32 0.014752088, %v3296_v44  ;;  %v3036_v28 = vor.u32 1.1754944e-38, %v3035_v51 }
 0x870   : > { %v3155_v29 = vand.u32 2147483648, %v6884_v16  ;;  %v3089_v56 = vmul.f32 %v3088_v37, %v6860_v22  ;;  %v6976_v55 = vmin.f32 %v3201_v20, 16.0  ;;  %vm3150_vm6 = vweird.f32 %v6906_v42 }
 0x871   : > { %v3051_v2 = vmul.f32 %v3050_v53, %v6849_v11  ;;  %v3167_v48 = vmul.f32 %v3166_v60, %v6881_v61  ;;  %v3298_v38 = vmul.f32 %v3297_v49, %v6914_v36  ;;  %v3032_v27 = vsel %vm6982_vm5, %v6897_v18, %v3028_v32  ;;  %vm7014_vm8 = vmor %vm3149_vm4, %vm3150_vm6  ;;  %v2907_v60 = vpop.f32.mrf.mxu1 }
 0x872   : > { %v3148_v34 = vadd.f32 %v6906_v42, %v3147_v33  ;;  %v6994_v17 = vadd.f32 1.0, %v3102_v58  ;;  %v3182_v12 = vmul.f32 %v3181_v62, %v6881_v61  ;;  %vm6997_vm7 = vcmp.eq.f32.partialorder %v3153_v30, 8.507059e+37 }
 0x873   : > { %v3065_v11 = vmul.f32 %v6972_v50, %v6926_v39  ;;  %v3283_v45 = vmul.f32 2.1237322e-06, %v6914_v36  ;;  %v3299_v43 = vadd.f32 0.112945676, %v3298_v38  ;;  %v3156_v46 = vor.u32 1.1754944e-38, %v3155_v29 }
 0x874   : > { %v3090_v14 = vadd.f32 0.18741608, %v3089_v56  ;;  %v3214_v18 = vmul.f32 3.8918573e-05, %v6976_v55  ;;  %v7006_v3 = vadd.f32 %v2942_v47, %v6819_v26  ;;  %v3037_v24 = vsel %vm6966_vm3, %v3036_v28, %v3032_v27 }
 0x875   : > { %v3052_v53 = vadd.f32 1.1283791, %v3051_v2  ;;  %v3168_v37 = vadd.f32 0.05243302, %v3167_v48  ;;  %v3300_v33 = vmul.f32 %v3299_v43, %v6914_v36  ;;  %v3152_v44 = vsel %vm7014_vm8, %v6906_v42, %v3148_v34 }
 0x876   : > { %5164 = vrcp.f32 %v6994_v17  ;;  %v7023_v32 = vadd.f32 1.0, %v3182_v12  ;;  %v3215_v58 = vadd.f32 0.001143296, %v3214_v18  ;;  %v3066_v62 = vsub.f32 1.0, %v3065_v11 }
 0x877   : > { %v3284_v16 = vadd.f32 0.00028619796, %v3283_v45  ;;  %v3301_v20 = vadd.f32 0.4994258, %v3300_v33  ;;  %v7026_v7 = vmul.f32 0.5, %v6937_v35  ;;  %v3091_v30 = vmul.f32 %v3090_v14, %v6860_v22 }
 0x878   : > { %v3216_v49 = vmul.f32 %v3215_v58, %v6976_v55  ;;  %v7031_v28 = vmul.f32 0.70710677, %v7006_v3  ;;  %v7034_v42 = vadd.f32 %v2907_v60, %v6801_v10  ;;  %v3038_v29 = vmul.f32 %v3037_v24, %v6942_v0 }
 0x879   : > { %v3157_v56 = vsel %vm6997_vm7, %v3156_v46, %v3152_v44  ;;  %v3073_v41 = vand.u32 2147483647, %v6926_v39  ;;  %v3169_v35 = vmul.f32 %v3168_v37, %v6881_v61  ;;  %5166 = vrcp.f32 %v7023_v32 }
 0x87a   : > { %v3302_v22 = vmul.f32 %v3301_v20, %v6914_v36  ;;  %v3217_v2 = vadd.f32 0.014752088, %v3216_v49  ;;  %v3241_v48 = vmul.f32 %v7031_v28, %v7031_v28  ;;  %v7046_v38 = vmul.f32 %v3052_v53, %v6839_v6 }
 0x87b   : > { %v3067_v0 = vmul.f32 %v6972_v50, %v3066_v62  ;;  %v3285_v47 = vmul.f32 %v3284_v16, %v6914_v36  ;;  %v7051_v27 = vmul.f32 0.70710677, %v7034_v42  ;;  %vm3069_vm9 = vweird.f32 %v6926_v39 }
 0x87c   : > { %v7053_v34 = vpop.eup %5164  ;;  %v7056_v12 = vadd.f32 1.0, %v3302_v22  ;;  %v3218_v40 = vmul.f32 %v3217_v2, %v6976_v55  ;;  %v7059_v11 = vmin.f32 %v3241_v48, 16.0  ;;  %v3158_v6 = vmul.f32 %v3157_v56, %v6957_v23 }
 0x87d   : > { %v3075_v45 = vand.u32 2147483648, %v6926_v39  ;;  %v3092_v43 = vadd.f32 1.1283791, %v3091_v30  ;;  %v3321_v46 = vmul.f32 %v7051_v27, %v7051_v27  ;;  %v4607_v14 = vclamps-f32 %v3038_v29, 1.0 }
 0x87e   : > { %vm3070_vm10 = vweird.f32 %v6972_v50  ;;  %vm7066_vm11 = vcmp.eq.f32.partialorder %v3073_v41, 8.507059e+37  ;;  %v3170_v24 = vadd.f32 0.18741608, %v3169_v35  ;;  %v3068_v51 = vadd.f32 %v6972_v50, %v3067_v0 }
 0x87f   : > { %v3105_v53 = vmul.f32 %v7053_v34, %v6994_v17  ;;  %v3286_v23 = vadd.f32 0.0036580483, %v3285_v47  ;;  %v3219_v37 = vadd.f32 0.112945676, %v3218_v40  ;;  %v7073_v33 = vpop.eup %5166  ;;  %5168 = vrcp.f32 %v7056_v12  ;;  %vm7086_vm12 = vmor %vm3069_vm9, %vm3070_vm10 }
 0x880   : > { %v3203_v60 = vmul.f32 2.1237322e-06, %v6976_v55  ;;  %v3254_v44 = vmul.f32 3.8918573e-05, %v7059_v11  ;;  %v7078_v58 = vmin.f32 %v3321_v46, 16.0  ;;  %v4610_v62 = vclamps-f32 %v3158_v6, 1.0 }
 0x881   : > { %v3076_v16 = vor.u32 1.1754944e-38, %v3075_v45  ;;  %v3115_v20 = vand.u32 2147483648, %v6994_v17  ;;  %v3220_v30 = vmul.f32 %v3219_v37, %v6976_v55  ;;  %v3641_v49 = vadd.f32 1.0, %v4607_v14  ;;  %v2964_v37 = vpop.f32.mrf.mxu0 }
 0x882   : > { %v3171_v56 = vmul.f32 %v3170_v24, %v6881_v61  ;;  %v3255_v41 = vadd.f32 0.001143296, %v3254_v44  ;;  %v3334_v35 = vmul.f32 3.8918573e-05, %v7078_v58  ;;  %v3072_v22 = vsel %vm7086_vm12, %v6972_v50, %v3068_v51 }
 0x883   : > { %v3106_v2 = vsub.f32 1.0, %v3105_v53  ;;  %v3185_v48 = vmul.f32 %v7073_v33, %v7023_v32  ;;  %v3287_v0 = vmul.f32 %v3286_v23, %v6914_v36  ;;  %v3204_v39 = vadd.f32 0.00028619796, %v3203_v60 }
 0x884   : > { %v3243_v47 = vmul.f32 2.1237322e-06, %v7059_v11  ;;  %v3256_v40 = vmul.f32 %v3255_v41, %v7059_v11  ;;  %v3335_v6 = vadd.f32 0.001143296, %v3334_v35  ;;  %v7101_v61 = vmul.f32 %v3092_v43, %v6844_v19 }
 0x885   : > { %v3113_v45 = vand.u32 2147483647, %v6994_v17  ;;  %v7104_v46 = vor.u32 1.1754944e-38, %v3115_v20  ;;  %v3221_v50 = vadd.f32 0.4994258, %v3220_v30  ;;  %v7106_v14 = vpop.eup %5168  ;;  %v7109_v24 = vmul.f32 %v3641_v49, %v6912_v21 }
 0x886   : > { %v7111_v51 = vadd.f32 1.0, %v4610_v62  ;;  %v3172_v53 = vadd.f32 1.1283791, %v3171_v56  ;;  %v3257_v23 = vadd.f32 0.014752088, %v3256_v40  ;;  %v3077_v60 = vsel %vm7066_vm11, %v3076_v16, %v3072_v22 }
 0x887   : > { %vm3109_vm13 = vweird.f32 %v6994_v17  ;;  %v3186_v19 = vsub.f32 1.0, %v3185_v48  ;;  %v3288_v43 = vadd.f32 0.05243302, %v3287_v0  ;;  %v3336_v44 = vmul.f32 %v3335_v6, %v7078_v58  ;;  %v2926_v6 = vpop.f32.mrf.mxu2 }
 0x888   : > { %v3107_v20 = vmul.f32 %v7053_v34, %v3106_v2  ;;  %v3205_v30 = vmul.f32 %v3204_v39, %v6976_v55  ;;  %v3244_v21 = vadd.f32 0.00028619796, %v3243_v47  ;;  %v3258_v62 = vmul.f32 %v3257_v23, %v7059_v11 }
 0x889   : > { %v3305_v49 = vmul.f32 %v7106_v14, %v7056_v12  ;;  %v3222_v29 = vmul.f32 %v3221_v50, %v6976_v55  ;;  %v3337_v18 = vadd.f32 0.014752088, %v3336_v44  ;;  %v7124_v16 = vadd.f32 %v2964_v37, %v6803_v31 }
 0x88a   : > { %v3078_v56 = vmul.f32 %v3077_v60, %v7046_v38  ;;  %vm3110_vm14 = vweird.f32 %v7053_v34  ;;  %v7129_v41 = vmul.f32 %v3172_v53, %v6867_v63  ;;  %v3323_v35 = vmul.f32 2.1237322e-06, %v7078_v58 }
 0x88b   : > { %vm7132_vm15 = vcmp.eq.f32.partialorder %v3113_v45, 8.507059e+37  ;;  %v3187_v2 = vmul.f32 %v7073_v33, %v3186_v19  ;;  %v3193_v48 = vand.u32 2147483647, %v7023_v32  ;;  %v3289_v0 = vmul.f32 %v3288_v43, %v6914_v36  ;;  %vm7160_vm1 = vmor %vm3109_vm13, %vm3110_vm14 }
 0x88c   : > { %v3259_v39 = vadd.f32 0.112945676, %v3258_v62  ;;  %v3108_v38 = vadd.f32 %v7053_v34, %v3107_v20  ;;  %v3206_v47 = vadd.f32 0.0036580483, %v3205_v30  ;;  %v3245_v40 = vmul.f32 %v3244_v21, %v7059_v11 }
 0x88d   : > { %v3338_v63 = vmul.f32 %v3337_v18, %v7078_v58  ;;  %v3306_v50 = vsub.f32 1.0, %v3305_v49  ;;  %v7142_v45 = vadd.f32 1.0, %v3222_v29  ;;  %v7146_v23 = vmul.f32 0.70710677, %v7124_v16 }
 0x88e   : > { %v3260_v53 = vmul.f32 %v3259_v39, %v7059_v11  ;;  %vm3190_vm0 = vweird.f32 %v7073_v33  ;;  %v3195_v37 = vand.u32 2147483648, %v7023_v32  ;;  %v3324_v60 = vadd.f32 0.00028619796, %v3323_v35  ;;  %v4854_v39 = vld [vmem:[%s6025_s9 + $0xf8] sm:$0xff] }
 0x88f   : > { %v3339_v19 = vadd.f32 0.112945676, %v3338_v63  ;;  %v3188_v43 = vadd.f32 %v7073_v33, %v3187_v2  ;;  %v3441_v20 = vmul.f32 %v7146_v23, %v7146_v23  ;;  %v7154_v30 = vadd.f32 %v2926_v6, %v6814_v54  ;;  %3998 = vmatpush.bf16.msrb.mxu0 %v4854_v39 }
 0x890   : > { %v3261_v44 = vadd.f32 0.4994258, %v3260_v53  ;;  %vm3189_vm2 = vweird.f32 %v7023_v32  ;;  %v3290_v62 = vadd.f32 0.18741608, %v3289_v0  ;;  %v3246_v49 = vadd.f32 0.0036580483, %v3245_v40 }
 0x891   : > { %v3340_v29 = vmul.f32 %v3339_v19, %v7078_v58  ;;  %v3112_v18 = vsel %vm7160_vm1, %v7053_v34, %v3108_v38  ;;  %v3307_v35 = vmul.f32 %v7106_v14, %v3306_v50  ;;  %v3207_v2 = vmul.f32 %v3206_v47, %v6976_v55  ;;  %vm7174_vm3 = vmor %vm3189_vm2, %vm3190_vm0 }
 0x892   : > { %5170 = vrcp.f32 %v7142_v45  ;;  %v4608_v17 = vclamps-f32 %v3078_v56, 1.0  ;;  %v3262_v32 = vmul.f32 %v3261_v44, %v7059_v11  ;;  %v3325_v0 = vmul.f32 %v3324_v60, %v7078_v58 }
 0x893   : > { %v7180_v40 = vmin.f32 %v3441_v20, 16.0  ;;  %v3192_v34 = vsel %vm7174_vm3, %v7073_v33, %v3188_v43  ;;  %vm3194_vm4 = vcmp.eq.f32.partialorder %v3193_v48, 8.507059e+37  ;;  %v3196_v38 = vor.u32 1.1754944e-38, %v3195_v37 }
 0x894   : > { %v7186_v56 = vmul.f32 0.70710677, %v7154_v30  ;;  %v3117_v47 = vsel %vm7132_vm15, %v7104_v46, %v3112_v18  ;;  %v3291_v63 = vmul.f32 %v3290_v62, %v6914_v36  ;;  %v3247_v6 = vmul.f32 %v3246_v49, %v7059_v11 }
 0x895   : > { %v3341_v50 = vadd.f32 0.4994258, %v3340_v29  ;;  %v3308_v53 = vadd.f32 %v7106_v14, %v3307_v35  ;;  %vm3310_vm5 = vweird.f32 %v7106_v14  ;;  %v3208_v60 = vadd.f32 0.05243302, %v3207_v2  ;;  %v4830_v2 = vld [vmem:[%s6025_s9 + $0x38] sm:$0xff] }
 0x896   : > { %v3454_v33 = vmul.f32 3.8918573e-05, %v7180_v40  ;;  %v3197_v48 = vsel %vm3194_vm4, %v3196_v38, %v3192_v34  ;;  %v3315_v37 = vand.u32 2147483648, %v7056_v12  ;;  %v7197_v19 = vadd.f32 1.0, %v3262_v32  ;;  %3941 = vmatpush.bf16.msra.mxu1 %v4830_v2 }
 0x897   : > { %v3326_v22 = vadd.f32 0.0036580483, %v3325_v0  ;;  %v3118_v36 = vmul.f32 %v3117_v47, %v7101_v61  ;;  %vm3309_vm6 = vweird.f32 %v7056_v12  ;;  %v3313_v43 = vand.u32 2147483647, %v7056_v12  ;;  %v2945_v47 = vpop.f32.mrf.mxu3 }
 0x898   : > { %v7199_v46 = vpop.eup %5170  ;;  %v3361_v44 = vmul.f32 %v7186_v56, %v7186_v56  ;;  %v3642_v20 = vadd.f32 1.0, %v4608_v17  ;;  %vm7206_vm7 = vmor %vm3309_vm6, %vm3310_vm5  ;;  %v3248_v62 = vadd.f32 0.05243302, %v3247_v6  ;;  %v3342_v49 = vmul.f32 %v3341_v50, %v7078_v58 }
 0x899   : > { %v3455_v29 = vadd.f32 0.001143296, %v3454_v33  ;;  %v3198_v18 = vmul.f32 %v3197_v48, %v7129_v41  ;;  %v3292_v35 = vadd.f32 1.1283791, %v3291_v63  ;;  %v3312_v61 = vsel %vm7206_vm7, %v7106_v14, %v3308_v53 }
 0x89a   : > { %v3209_v12 = vmul.f32 %v3208_v60, %v6976_v55  ;;  %v3316_v17 = vor.u32 1.1754944e-38, %v3315_v37  ;;  %v3225_v32 = vmul.f32 %v7199_v46, %v7142_v45  ;;  %5172 = vrcp.f32 %v7197_v19 }
 0x89b   : > { %v3327_v0 = vmul.f32 %v3326_v22, %v7078_v58  ;;  %v4609_v34 = vclamps-f32 %v3118_v36, 1.0  ;;  %vm3314_vm8 = vcmp.eq.f32.partialorder %v3313_v43, 8.507059e+37  ;;  %v3456_v41 = vmul.f32 %v3455_v29, %v7180_v40 }
 0x89c   : > { %v7223_v38 = vmin.f32 %v3361_v44, 16.0  ;;  %v3317_v14 = vsel %vm3314_vm8, %v3316_v17, %v3312_v61  ;;  %v3249_v63 = vmul.f32 %v3248_v62, %v7059_v11  ;;  %v7226_v6 = vadd.f32 1.0, %v3342_v49 }
 0x89d   : > { %v3443_v50 = vmul.f32 2.1237322e-06, %v7180_v40  ;;  %v4611_v53 = vclamps-f32 %v3198_v18, 1.0  ;;  %v3293_v60 = vmul.f32 %v3292_v35, %v6892_v25  ;;  %v3210_v33 = vadd.f32 0.18741608, %v3209_v12 }
 0x89e   : > { %v3457_v48 = vadd.f32 0.014752088, %v3456_v41  ;;  %v3226_v37 = vsub.f32 1.0, %v3225_v32  ;;  %v3328_v22 = vadd.f32 0.05243302, %v3327_v0  ;;  %v7232_v43 = vadd.f32 %v2945_v47, %v6819_v26 }
 0x89f   : > { %v3374_v36 = vmul.f32 3.8918573e-05, %v7223_v38  ;;  %v7236_v44 = vmul.f32 %v7111_v51, %v6917_v13  ;;  %v7239_v21 = vmul.f32 %v3642_v20, %v6924_v1  ;;  %v3643_v62 = vadd.f32 1.0, %v4609_v34 }
 0x8a0   : > { %v3318_v49 = vmul.f32 %v3317_v14, %v3293_v60  ;;  %v7241_v29 = vpop.eup %5172  ;;  %v3250_v25 = vadd.f32 0.18741608, %v3249_v63  ;;  %5174 = vrcp.f32 %v7226_v6  ;;  %v3444_v18 = vadd.f32 0.00028619796, %v3443_v50 }
 0x8a1   : > { %v3458_v35 = vmul.f32 %v3457_v48, %v7180_v40  ;;  %v3645_v61 = vadd.f32 1.0, %v4611_v53  ;;  %v3211_v12 = vmul.f32 %v3210_v33, %v6976_v55  ;;  %v7247_v2 = vmul.f32 0.5, %v7006_v3 }
 0x8a2   : > { %v3375_v13 = vadd.f32 0.001143296, %v3374_v36  ;;  %v3227_v1 = vmul.f32 %v7199_v46, %v3226_v37  ;;  %v7251_v51 = vmul.f32 0.5, %v7034_v42  ;;  %v3329_v20 = vmul.f32 %v3328_v22, %v7078_v58 }
 0x8a3   : > { %v7255_v39 = vmul.f32 0.70710677, %v7232_v43  ;;  %v7258_v17 = vmul.f32 %v3643_v62, %v6930_v57  ;;  %v3265_v55 = vmul.f32 %v7241_v29, %v7197_v19  ;;  %v7263_v3 = vmul.f32 0.5, %v7124_v16  ;;  %v2909_v62 = vpop.f32.mrf.mxu1 }
 0x8a4   : > { %v3376_v32 = vmul.f32 %v3375_v13, %v7223_v38  ;;  %v4614_v0 = vclamps-f32 %v3318_v49, 1.0  ;;  %v3251_v42 = vmul.f32 %v3250_v25, %v7059_v11  ;;  %v3445_v34 = vmul.f32 %v3444_v18, %v7180_v40 }
 0x8a5   : > { %v3459_v41 = vadd.f32 0.112945676, %v3458_v35  ;;  %v7269_v47 = vmul.f32 %v3645_v61, %v6933_v5  ;;  %v3212_v14 = vadd.f32 1.1283791, %v3211_v12  ;;  %v3233_v57 = vand.u32 2147483647, %v7142_v45 }
 0x8a6   : > { %v3235_v63 = vand.u32 2147483648, %v7142_v45  ;;  %v7273_v50 = vpop.eup %5174  ;;  %v3228_v16 = vadd.f32 %v7199_v46, %v3227_v1  ;;  %vm3230_vm9 = vweird.f32 %v7199_v46  ;;  %v3330_v53 = vadd.f32 0.18741608, %v3329_v20 }
 0x8a7   : > { %v3401_v11 = vmul.f32 %v7255_v39, %v7255_v39  ;;  %vm3229_vm10 = vweird.f32 %v7142_v45  ;;  %v3266_v60 = vsub.f32 1.0, %v3265_v55  ;;  %v3363_v5 = vmul.f32 2.1237322e-06, %v7223_v38  ;;  %v4851_v45 = vld [vmem:[%s6025_s9 + $0xe0] sm:$0xff] }
 0x8a8   : > { %v3377_v33 = vadd.f32 0.014752088, %v3376_v32  ;;  %v3648_v48 = vadd.f32 1.0, %v4614_v0  ;;  %v3252_v37 = vadd.f32 1.1283791, %v3251_v42  ;;  %v3460_v36 = vmul.f32 %v3459_v41, %v7180_v40  ;;  %vm7285_vm11 = vmor %vm3229_vm10, %vm3230_vm9 }
 0x8a9   : > { %v3446_v22 = vadd.f32 0.0036580483, %v3445_v34  ;;  %v3673_v49 = vpack.c.bf16 %v7269_v47, %v7109_v24  ;;  %v3213_v25 = vmul.f32 %v3212_v14, %v6953_v15  ;;  %vm7289_vm12 = vcmp.eq.f32.partialorder %v3233_v57, 8.507059e+37  ;;  %v4829_v57 = vld [vmem:[%s6025_s9 + $0x30] sm:$0xff] }
 0x8aa   : > { %v3345_v35 = vmul.f32 %v7273_v50, %v7226_v6  ;;  %v3232_v61 = vsel %vm7285_vm11, %v7199_v46, %v3228_v16  ;;  %v3236_v12 = vor.u32 1.1754944e-38, %v3235_v63  ;;  %v3331_v13 = vmul.f32 %v3330_v53, %v7078_v58  ;;  %v4853_v63 = vld [vmem:[%s6025_s9 + $0xf0] sm:$0xff]  ;;  %3942 = vmatpush.bf16.msra.mxu1 %v4829_v57 }
 0x8ab   : > { %v7299_v1 = vmin.f32 %v3401_v11, 16.0  ;;  %v3267_v15 = vmul.f32 %v7241_v29, %v3266_v60  ;;  %v3364_v20 = vadd.f32 0.00028619796, %v3363_v5  ;;  %v3378_v55 = vmul.f32 %v3377_v33, %v7223_v38  ;;  %v2966_v5 = vpop.f32.mrf.mxu0  ;;  %3999 = vmatpush.bf16.msrb.mxu0 %v4853_v63  ;;  %v4837_v57 = vld [vmem:[%s6025_s9 + $0x70] sm:$0xff] }
 0x8ac   : > { %v7304_v32 = vadd.f32 %v2909_v62, %v6801_v10  ;;  %v7307_v0 = vmul.f32 %v3648_v48, %v6945_v59  ;;  %v7310_v46 = vmul.f32 %v3252_v37, %v7031_v28  ;;  %v3447_v58 = vmul.f32 %v3446_v22, %v7180_v40  ;;  %v4846_v62 = vld [vmem:[%s6025_s9 + $0xb8] sm:$0xff]  ;;  %v4845_v63 = vld [vmem:[%s6025_s9 + $0xb0] sm:$0xff] }
 0x8ad   : > { %v3461_v42 = vadd.f32 0.4994258, %v3460_v36  ;;  %vm3269_vm13 = vweird.f32 %v7197_v19  ;;  %v3273_v34 = vand.u32 2147483647, %v7197_v19  ;;  %v3275_v41 = vand.u32 2147483648, %v7197_v19  ;;  %v4838_v36 = vld [vmem:[%s6025_s9 + $0x78] sm:$0xff]  ;;  %3979 = vmatpush.bf16.msra.mxu3 %v4846_v62 }
 0x8ae   : > { %v3346_v14 = vsub.f32 1.0, %v3345_v35  ;;  %v3237_v10 = vsel %vm7289_vm12, %v3236_v12, %v3232_v61  ;;  %vm3270_vm14 = vweird.f32 %v7241_v29  ;;  %v7319_v59 = vadd.f32 1.1283791, %v3331_v13  ;;  %3960 = vmatpush.bf16.msrb.mxu2 %v4838_v36 }
 0x8af   : > { %v3414_v28 = vmul.f32 3.8918573e-05, %v7299_v1  ;;  %v3268_v16 = vadd.f32 %v7241_v29, %v3267_v15  ;;  %v3365_v53 = vmul.f32 %v3364_v20, %v7223_v38  ;;  %v3379_v11 = vadd.f32 0.112945676, %v3378_v55  ;;  %vm7346_vm0 = vmor %vm3269_vm13, %vm3270_vm14  ;;  %v4828_v20 = vld [vmem:[%s6025_s9 + $0x28] sm:$0xff] }
 0x8b0   : > { %v7327_v60 = vmul.f32 0.70710677, %v7304_v32  ;;  %v3676_v33 = vpack.c.bf16 %v7307_v0, %v7236_v44  ;;  %v3355_v48 = vand.u32 2147483648, %v7226_v6  ;;  %v3448_v37 = vadd.f32 0.05243302, %v3447_v58  ;;  %v4852_v55 = vld [vmem:[%s6025_s9 + $0xe8] sm:$0xff]  ;;  %3943 = vmatpush.bf16.msra.mxu1 %v4828_v20 }
 0x8b1   : > { %v3462_v22 = vmul.f32 %v3461_v42, %v7180_v40  ;;  %v3238_v18 = vmul.f32 %v3237_v10, %v3213_v25  ;;  %vm7335_vm15 = vcmp.eq.f32.partialorder %v3273_v34, 8.507059e+37  ;;  %v3347_v35 = vmul.f32 %v7273_v50, %v3346_v14  ;;  %4000 = vmatpush.bf16.msrb.mxu0 %v4852_v55  ;;  %3980 = vmatpush.bf16.msra.mxu3 %v4845_v63  ;;  %v4836_v20 = vld [vmem:[%s6025_s9 + $0x68] sm:$0xff]  ;;  %v4850_v63 = vld [vmem:[%s6025_s9 + $0xd8] sm:$0xff] }
 0x8b2   : > { %v3481_v61 = vmul.f32 %v7327_v60, %v7327_v60  ;;  %v3276_v13 = vor.u32 1.1754944e-38, %v3275_v41  ;;  %vm3349_vm1 = vweird.f32 %v7226_v6  ;;  %v3415_v25 = vadd.f32 0.001143296, %v3414_v28  ;;  %v2928_v28 = vpop.f32.mrf.mxu2  ;;  %3961 = vmatpush.bf16.msrb.mxu2 %v4837_v57 }
 0x8b3   : > { %v7352_v15 = vadd.f32 %v2966_v5, %v6803_v31  ;;  %v3272_v19 = vsel %vm7346_vm0, %v7241_v29, %v3268_v16  ;;  %v3366_v58 = vadd.f32 0.0036580483, %v3365_v53  ;;  %v3380_v42 = vmul.f32 %v3379_v11, %v7223_v38 }
 0x8b4   : > { %v7360_v34 = vmin.f32 %v3481_v61, 16.0  ;;  %v3353_v41 = vand.u32 2147483647, %v7226_v6  ;;  %v3356_v14 = vor.u32 1.1754944e-38, %v3355_v48  ;;  %v3449_v31 = vmul.f32 %v3448_v37, %v7180_v40 }
 0x8b5   : > { %v7364_v10 = vadd.f32 1.0, %v3462_v22  ;;  %v4612_v29 = vclamps-f32 %v3238_v18, 1.0  ;;  %v3348_v16 = vadd.f32 %v7273_v50, %v3347_v35  ;;  %vm3350_vm2 = vweird.f32 %v7273_v50  ;;  %v4827_v22 = vld [vmem:[%s6025_s9 + $0x20] sm:$0xff]  ;;  %4001 = vmatpush.bf16.msrb.mxu0 %v4851_v45 }
 0x8b6   : > { %v3483_v53 = vmul.f32 2.1237322e-06, %v7360_v34  ;;  %v3277_v11 = vsel %vm7335_vm15, %v3276_v13, %v3272_v19  ;;  %v3416_v5 = vmul.f32 %v3415_v25, %v7299_v1  ;;  %v3494_v48 = vmul.f32 3.8918573e-05, %v7360_v34  ;;  %vm7386_vm3 = vmor %vm3349_vm1, %vm3350_vm2  ;;  %3944 = vmatpush.bf16.msra.mxu1 %v4827_v22  ;;  %3962 = vmatpush.bf16.msrb.mxu2 %v4836_v20  ;;  %v4835_v22 = vld [vmem:[%s6025_s9 + $0x60] sm:$0xff] }
 0x8b7   : > { %v7376_v37 = vmul.f32 0.70710677, %v7352_v15  ;;  %v3367_v36 = vmul.f32 %v3366_v58, %v7223_v38  ;;  %v3381_v62 = vadd.f32 0.4994258, %v3380_v42  ;;  %v7381_v35 = vadd.f32 %v2928_v28, %v6814_v54  ;;  %v4844_v54 = vld [vmem:[%s6025_s9 + $0xa8] sm:$0xff] }
 0x8b8   : > { %v3484_v18 = vadd.f32 0.00028619796, %v3483_v53  ;;  %v3450_v12 = vadd.f32 0.18741608, %v3449_v31  ;;  %5176 = vrcp.f32 %v7364_v10  ;;  %v3495_v13 = vadd.f32 0.001143296, %v3494_v48  ;;  %3981 = vmatpush.bf16.msra.mxu3 %v4844_v54 }
 0x8b9   : > { %v3601_v25 = vmul.f32 %v7376_v37, %v7376_v37  ;;  %v3278_v55 = vmul.f32 %v3277_v11, %v7310_v46  ;;  %v3352_v6 = vsel %vm7386_vm3, %v7273_v50, %v3348_v16  ;;  %v3403_v19 = vmul.f32 2.1237322e-06, %v7299_v1  ;;  %v4826_v46 = vld [vmem:[%s6025_s9 + $0x18] sm:$0xff]  ;;  %4002 = vmatpush.bf16.msrb.mxu0 %v4850_v63 }
 0x8ba   : > { %v3485_v58 = vmul.f32 %v3484_v18, %v7360_v34  ;;  %v3646_v42 = vadd.f32 1.0, %v4612_v29  ;;  %v3417_v31 = vadd.f32 0.014752088, %v3416_v5  ;;  %v3496_v28 = vmul.f32 %v3495_v13, %v7360_v34  ;;  %3945 = vmatpush.bf16.msra.mxu1 %v4826_v46  ;;  %v4843_v18 = vld [vmem:[%s6025_s9 + $0xa0] sm:$0xff]  ;;  %3963 = vmatpush.bf16.msrb.mxu2 %v4835_v22  ;;  %v4848_v22 = vld [vmem:[%s6025_s9 + $0xc8] sm:$0xff] }
 0x8bb   : > { %v7402_v57 = vmin.f32 %v3601_v25, 16.0  ;;  %vm3354_vm4 = vcmp.eq.f32.partialorder %v3353_v41, 8.507059e+37  ;;  %v3368_v53 = vadd.f32 0.05243302, %v3367_v36  ;;  %v3382_v50 = vmul.f32 %v3381_v62, %v7223_v38 }
 0x8bc   : > { %v7408_v16 = vmul.f32 0.70710677, %v7381_v35  ;;  %v3357_v11 = vsel %vm3354_vm4, %v3356_v14, %v3352_v6  ;;  %v3451_v29 = vmul.f32 %v3450_v12, %v7180_v40  ;;  %v3486_v5 = vadd.f32 0.0036580483, %v3485_v58  ;;  %3982 = vmatpush.bf16.msra.mxu3 %v4843_v18 }
 0x8bd   : > { %v3497_v48 = vadd.f32 0.014752088, %v3496_v28  ;;  %v4613_v45 = vclamps-f32 %v3278_v55, 1.0  ;;  %v3333_v41 = vmul.f32 %v7319_v59, %v7051_v27  ;;  %v3603_v36 = vmul.f32 2.1237322e-06, %v7402_v57  ;;  %v4825_v27 = vld [vmem:[%s6025_s9 + $0x10] sm:$0xff] }
 0x8be   : > { %v3614_v62 = vmul.f32 3.8918573e-05, %v7402_v57  ;;  %v7417_v61 = vpop.eup %5176  ;;  %v7420_v40 = vmul.f32 %v3646_v42, %v7026_v7  ;;  %v3404_v14 = vadd.f32 0.00028619796, %v3403_v19  ;;  %v3418_v12 = vmul.f32 %v3417_v31, %v7299_v1  ;;  %v4849_v59 = vld [vmem:[%s6025_s9 + $0xd0] sm:$0xff]  ;;  %3946 = vmatpush.bf16.msra.mxu1 %v4825_v27  ;;  %v4834_v42 = vld [vmem:[%s6025_s9 + $0x58] sm:$0xff] }
 0x8bf   : > { %v3498_v13 = vmul.f32 %v3497_v48, %v7360_v34  ;;  %v3358_v25 = vmul.f32 %v3357_v11, %v3333_v41  ;;  %v7426_v20 = vadd.f32 1.0, %v3382_v50  ;;  %v3604_v54 = vadd.f32 0.00028619796, %v3603_v36  ;;  %v4842_v31 = vld [vmem:[%s6025_s9 + $0x98] sm:$0xff]  ;;  %4003 = vmatpush.bf16.msrb.mxu0 %v4849_v59  ;;  %3964 = vmatpush.bf16.msrb.mxu2 %v4834_v42  ;;  %v4824_v48 = vld [vmem:[%s6025_s9 + $0x8] sm:$0xff] }
 0x8c0   : > { %v3615_v55 = vadd.f32 0.001143296, %v3614_v62  ;;  %v3452_v6 = vadd.f32 1.1283791, %v3451_v29  ;;  %v7429_v7 = vmul.f32 0.5, %v7304_v32  ;;  %v3487_v19 = vmul.f32 %v3486_v5, %v7360_v34  ;;  %3983 = vmatpush.bf16.msra.mxu3 %v4842_v31 }
 0x8c1   : > { %v3521_v58 = vmul.f32 %v7408_v16, %v7408_v16  ;;  %v3647_v28 = vadd.f32 1.0, %v4613_v45  ;;  %v3465_v46 = vmul.f32 %v7417_v61, %v7364_v10  ;;  %v3369_v63 = vmul.f32 %v3368_v53, %v7223_v38 }
 0x8c2   : > { %v3499_v50 = vadd.f32 0.112945676, %v3498_v13  ;;  %v3473_v32 = vand.u32 2147483647, %v7364_v10  ;;  %v3419_v11 = vadd.f32 0.112945676, %v3418_v12  ;;  %v3605_v29 = vmul.f32 %v3604_v54, %v7402_v57  ;;  %3947 = vmatpush.bf16.msra.mxu1 %v4824_v48 }
 0x8c3   : > { %v3616_v5 = vmul.f32 %v3615_v55, %v7402_v57  ;;  %v4615_v18 = vclamps-f32 %v3358_v25, 1.0  ;;  %5178 = vrcp.f32 %v7426_v20  ;;  %v3405_v53 = vmul.f32 %v3404_v14, %v7299_v1  ;;  %v4833_v13 = vld [vmem:[%s6025_s9 + $0x50] sm:$0xff]  ;;  %4004 = vmatpush.bf16.msrb.mxu0 %v4848_v22 }
 0x8c4   : > { %v3500_v45 = vmul.f32 %v3499_v50, %v7360_v34  ;;  %v3674_v41 = vpack.c.bf16 %v7420_v40, %v7239_v21  ;;  %v3488_v36 = vadd.f32 0.05243302, %v3487_v19  ;;  %v7449_v12 = vmin.f32 %v3521_v58, 16.0  ;;  %v4841_v14 = vld [vmem:[%s6025_s9 + $0x90] sm:$0xff]  ;;  %3965 = vmatpush.bf16.msrb.mxu2 %v4833_v13  ;;  %v4823_v58 = vld [vmem:[%s6025_s9] sm:$0xff] }
 0x8c5   : > { %v3617_v62 = vadd.f32 0.014752088, %v3616_v5  ;;  %v7453_v27 = vmul.f32 %v3452_v6, %v7146_v23  ;;  %v3466_v59 = vsub.f32 1.0, %v3465_v46  ;;  %v3606_v54 = vadd.f32 0.0036580483, %v3605_v29  ;;  %v4847_v50 = vld [vmem:[%s6025_s9 + $0xc0] sm:$0xff]  ;;  %v2947_v29 = vpop.f32.mrf.mxu3  ;;  %3984 = vmatpush.bf16.msra.mxu3 %v4841_v14 }
 0x8c6   : > { %v3501_v25 = vadd.f32 0.4994258, %v3500_v45  ;;  %v3420_v55 = vmul.f32 %v3419_v11, %v7299_v1  ;;  %v3523_v19 = vmul.f32 2.1237322e-06, %v7449_v12  ;;  %v3534_v31 = vmul.f32 3.8918573e-05, %v7449_v12  ;;  %3948 = vmatpush.bf16.msra.mxu1 %v4823_v58 }
 0x8c7   : > { %v3618_v42 = vmul.f32 %v3617_v62, %v7402_v57  ;;  %v7463_v5 = vmul.f32 %v3647_v28, %v7247_v2  ;;  %vm3469_vm5 = vweird.f32 %v7364_v10  ;;  %v3475_v23 = vand.u32 2147483648, %v7364_v10  ;;  %4005 = vmatpush.bf16.msrb.mxu0 %v4847_v50  ;;  %v4839_v58 = vld [vmem:[%s6025_s9 + $0x80] sm:$0xff] }
 0x8c8   : > { %v3370_v6 = vadd.f32 0.18741608, %v3369_v63  ;;  %v3406_v46 = vadd.f32 0.0036580483, %v3405_v53  ;;  %v3649_v11 = vadd.f32 1.0, %v4615_v18  ;;  %v3502_v48 = vmul.f32 %v3501_v25, %v7360_v34 }
 0x8c9   : > { %v3619_v22 = vadd.f32 0.112945676, %v3618_v42  ;;  %v3524_v45 = vadd.f32 0.00028619796, %v3523_v19  ;;  %v7468_v62 = vpop.eup %5178  ;;  %v3467_v2 = vmul.f32 %v7417_v61, %v3466_v59  ;;  %v3489_v28 = vmul.f32 %v3488_v36, %v7360_v34  ;;  %v4832_v42 = vld [vmem:[%s6025_s9 + $0x48] sm:$0xff]  ;;  %3949 = vmatmul.bf16.vlgmr.msra.gmra.mxu1 %v3673_v49 }
 0x8ca   : > { %v3607_v13 = vmul.f32 %v3606_v54, %v7402_v57  ;;  %v3535_v63 = vadd.f32 0.001143296, %v3534_v31  ;;  %v3421_v53 = vadd.f32 0.4994258, %v3420_v55  ;;  %v7473_v14 = vadd.f32 1.0, %v3502_v48  ;;  %v4840_v19 = vld [vmem:[%s6025_s9 + $0x88] sm:$0xff]  ;;  %3966 = vmatpush.bf16.msrb.mxu2 %v4832_v42  ;;  %4006 = vmatmul.bf16.vlgmr.msrb.gmra.mxu0 %v3676_v33 }
 0x8cb   : > { %v3620_v18 = vmul.f32 %v3619_v22, %v7402_v57  ;;  %v7477_v25 = vadd.f32 %v2947_v29, %v6819_v26  ;;  %vm7481_vm6 = vcmp.eq.f32.partialorder %v3473_v32, 8.507059e+37  ;;  %v3476_v36 = vor.u32 1.1754944e-38, %v3475_v23  ;;  %3985 = vmatpush.bf16.msra.mxu3 %v4840_v19 }
 0x8cc   : > { %v3371_v54 = vmul.f32 %v3370_v6, %v7223_v38  ;;  %v3407_v55 = vmul.f32 %v3406_v46, %v7299_v1  ;;  %v3536_v31 = vmul.f32 %v3535_v63, %v7449_v12  ;;  %vm3470_vm7 = vweird.f32 %v7417_v61  ;;  %v4831_v38 = vld [vmem:[%s6025_s9 + $0x40] sm:$0xff] }
 0x8cd   : > { %v3385_v26 = vmul.f32 %v7468_v62, %v7426_v20  ;;  %5180 = vrcp.f32 %v7473_v14  ;;  %v3525_v32 = vmul.f32 %v3524_v45, %v7449_v12  ;;  %v3468_v50 = vadd.f32 %v7417_v61, %v3467_v2  ;;  %vm7517_vm8 = vmor %vm3469_vm5, %vm3470_vm7 }
 0x8ce   : > { %v3490_v23 = vadd.f32 0.18741608, %v3489_v28  ;;  %v3608_v6 = vadd.f32 0.05243302, %v3607_v13  ;;  %v3621_v46 = vadd.f32 0.4994258, %v3620_v18  ;;  %v3675_v24 = vpack.c.bf16 %v7463_v5, %v7258_v17  ;;  %3967 = vmatpush.bf16.msrb.mxu2 %v4831_v38 }
 0x8cf   : > { %v3422_v47 = vmul.f32 %v3421_v53, %v7299_v1  ;;  %v3537_v49 = vadd.f32 0.014752088, %v3536_v31  ;;  %v7506_v29 = vmul.f32 0.70710677, %v7477_v25  ;;  %v7509_v48 = vmul.f32 %v3649_v11, %v7251_v51  ;;  %3986 = vmatpush.bf16.msra.mxu3 %v4839_v58 }
 0x8d0   : > { %v3395_v22 = vand.u32 2147483648, %v7426_v20  ;;  %v3408_v45 = vadd.f32 0.05243302, %v3407_v55  ;;  %v3622_v2 = vmul.f32 %v3621_v46, %v7402_v57  ;;  %v3386_v17 = vsub.f32 1.0, %v3385_v26 }
 0x8d1   : > { %v3526_v0 = vadd.f32 0.0036580483, %v3525_v32  ;;  %v3538_v33 = vmul.f32 %v3537_v49, %v7449_v12  ;;  %v3561_v51 = vmul.f32 %v7506_v29, %v7506_v29  ;;  %v3472_v5 = vsel %vm7517_vm8, %v7417_v61, %v3468_v50  ;;  %3968 = vmatmul.bf16.vlgmr.msrb.gmra.mxu2 %v3674_v41 }
 0x8d2   : > { %v3491_v11 = vmul.f32 %v3490_v23, %v7360_v34  ;;  %v3609_v10 = vmul.f32 %v3608_v6, %v7402_v57  ;;  %v7529_v28 = vadd.f32 1.0, %v3622_v2  ;;  %v7531_v63 = vadd.f32 1.1283791, %v3371_v54  ;;  %3987 = vmatmul.bf16.vlgmr.msra.gmra.mxu3 %v3675_v24 }
 0x8d3   : > { %v5181_v13 = vpop.eup %5180  ;;  %v7533_v53 = vadd.f32 1.0, %v3422_v47  ;;  %v3539_v18 = vadd.f32 0.112945676, %v3538_v33  ;;  %v7535_v42 = vmin.f32 %v3561_v51, 16.0  ;;  %v3393_v19 = vand.u32 2147483647, %v7426_v20 }
 0x8d4   : > { %v7538_v55 = vor.u32 1.1754944e-38, %v3395_v22  ;;  %v3409_v61 = vmul.f32 %v3408_v45, %v7299_v1  ;;  %v3505_v34 = vmul.f32 %v5181_v13, %v7473_v14  ;;  %v3477_v54 = vsel %vm7481_vm6, %v3476_v36, %v3472_v5 }
 0x8d5   : > { %v3387_v31 = vmul.f32 %v7468_v62, %v3386_v17  ;;  %5182 = vrcp.f32 %v7529_v28  ;;  %v3527_v26 = vmul.f32 %v3526_v0, %v7449_v12  ;;  %v3492_v32 = vadd.f32 1.1283791, %v3491_v11 }
 0x8d6   : > { %v3506_v38 = vsub.f32 1.0, %v3505_v34  ;;  %v3610_v58 = vadd.f32 0.18741608, %v3609_v10  ;;  %v3540_v50 = vmul.f32 %v3539_v18, %v7449_v12  ;;  %vm3389_vm9 = vweird.f32 %v7426_v20 }
 0x8d7   : > { %5184 = vrcp.f32 %v7533_v53  ;;  %v3515_v21 = vand.u32 2147483648, %v7473_v14  ;;  %v3563_v40 = vmul.f32 2.1237322e-06, %v7535_v42  ;;  %v3574_v41 = vmul.f32 3.8918573e-05, %v7535_v42 }
 0x8d8   : > { %v3507_v59 = vmul.f32 %v5181_v13, %v3506_v38  ;;  %vm3510_vm10 = vweird.f32 %v5181_v13  ;;  %v3513_v36 = vand.u32 2147483647, %v7473_v14  ;;  %v3541_v23 = vadd.f32 0.4994258, %v3540_v50 }
 0x8d9   : > { %vm3390_vm11 = vweird.f32 %v7468_v62  ;;  %v3528_v6 = vadd.f32 0.05243302, %v3527_v26  ;;  %v3564_v46 = vadd.f32 0.00028619796, %v3563_v40  ;;  %v3575_v24 = vadd.f32 0.001143296, %v3574_v41 }
 0x8da   : > { %v3508_v47 = vadd.f32 %v5181_v13, %v3507_v59  ;;  %vm3509_vm12 = vweird.f32 %v7473_v14  ;;  %v3611_v49 = vmul.f32 %v3610_v58, %v7402_v57  ;;  %v3542_v22 = vmul.f32 %v3541_v23, %v7449_v12  ;;  %vm7583_vm0 = vmor %vm3389_vm9, %vm3390_vm11 }
 0x8db   : > { %v5183_v45 = vpop.eup %5182  ;;  %v3388_v2 = vadd.f32 %v7468_v62, %v3387_v31  ;;  %vm3511_vm13 = vmor %vm3509_vm12, %vm3510_vm10  ;;  %v3516_v44 = vor.u32 1.1754944e-38, %v3515_v21  ;;  %v3565_v17 = vmul.f32 %v3564_v46, %v7535_v42  ;;  %v3576_v0 = vmul.f32 %v3575_v24, %v7535_v42 }
 0x8dc   : > { %vm7564_vm14 = vcmp.eq.f32.partialorder %v3393_v19, 8.507059e+37  ;;  %v3493_v51 = vmul.f32 %v3492_v32, %v7327_v60  ;;  %v3512_v14 = vsel %vm3511_vm13, %v5181_v13, %v3508_v47  ;;  %vm3514_vm15 = vcmp.eq.f32.partialorder %v3513_v36, 8.507059e+37 }
 0x8dd   : > { %v3625_v57 = vmul.f32 %v5183_v45, %v7529_v28  ;;  %v7570_v5 = vpop.eup %5184  ;;  %v3517_v11 = vsel %vm3514_vm15, %v3516_v44, %v3512_v14  ;;  %v3529_v10 = vmul.f32 %v3528_v6, %v7449_v12  ;;  %v7573_v18 = vadd.f32 1.0, %v3542_v22 }
 0x8de   : > { %v3577_v34 = vadd.f32 0.014752088, %v3576_v0  ;;  %v3478_v31 = vmul.f32 %v3477_v54, %v7453_v27  ;;  %v3518_v19 = vmul.f32 %v3517_v11, %v3493_v51  ;;  %v3612_v26 = vadd.f32 1.1283791, %v3611_v49 }
 0x8df   : > { %v3626_v38 = vsub.f32 1.0, %v3625_v57  ;;  %v3633_v58 = vand.u32 2147483647, %v7529_v28  ;;  %v3635_v60 = vand.u32 2147483648, %v7529_v28  ;;  %5186 = vrcp.f32 %v7573_v18 }
 0x8e0   : > { %v3566_v13 = vadd.f32 0.0036580483, %v3565_v17  ;;  %v4619_v50 = vclamps-f32 %v3518_v19, 1.0  ;;  %vm3630_vm1 = vweird.f32 %v5183_v45  ;;  %v3578_v54 = vmul.f32 %v3577_v34, %v7535_v42 }
 0x8e1   : > { %v3627_v27 = vmul.f32 %v5183_v45, %v3626_v38  ;;  %v3392_v21 = vsel %vm7583_vm0, %v7468_v62, %v3388_v2  ;;  %v3410_v40 = vadd.f32 0.18741608, %v3409_v61  ;;  %v3425_v41 = vmul.f32 %v7570_v5, %v7533_v53 }
 0x8e2   : > { %v3530_v59 = vadd.f32 0.18741608, %v3529_v10  ;;  %v3653_v36 = vadd.f32 1.0, %v4619_v50  ;;  %vm3629_vm2 = vweird.f32 %v7529_v28  ;;  %v3579_v23 = vadd.f32 0.112945676, %v3578_v54 }
 0x8e3   : > { %v3628_v20 = vadd.f32 %v5183_v45, %v3627_v27  ;;  %v4618_v6 = vclamps-f32 %v3478_v31, 1.0  ;;  %v3613_v46 = vmul.f32 %v3612_v26, %v7376_v37  ;;  %vm3631_vm3 = vmor %vm3629_vm2, %vm3630_vm1  ;;  %v3636_v24 = vor.u32 1.1754944e-38, %v3635_v60 }
 0x8e4   : > { %v3567_v47 = vmul.f32 %v3566_v13, %v7535_v42  ;;  %v3669_v49 = vmul.f32 %v3653_v36, %v7429_v7  ;;  %vm3634_vm4 = vcmp.eq.f32.partialorder %v3633_v58, 8.507059e+37  ;;  %v3580_v61 = vmul.f32 %v3579_v23, %v7535_v42 }
 0x8e5   : > { %v3632_v62 = vsel %vm3631_vm3, %v5183_v45, %v3628_v20  ;;  %v5187_v22 = vpop.eup %5186  ;;  %v3397_v2 = vsel %vm7564_vm14, %v7538_v55, %v3392_v21  ;;  %v3426_v28 = vsub.f32 1.0, %v3425_v41  ;;  %v3531_v17 = vmul.f32 %v3530_v59, %v7449_v12 }
 0x8e6   : > { %v3637_v44 = vsel %vm3634_vm4, %v3636_v24, %v3632_v62  ;;  %v3373_v37 = vmul.f32 %v7531_v63, %v7186_v56  ;;  %v2984_v0 = vmul.f32 0.5, %v7352_v15  ;;  %v3545_v7 = vmul.f32 %v5187_v22, %v7573_v18 }
 0x8e7   : > { %v3638_v51 = vmul.f32 %v3637_v44, %v3613_v46  ;;  %v3652_v45 = vadd.f32 1.0, %v4618_v6  ;;  %v3568_v14 = vadd.f32 0.05243302, %v3567_v47  ;;  %v3581_v57 = vadd.f32 0.4994258, %v3580_v61 }
 0x8e8   : > { %v3677_v11 = vpack.c.bf16 %v3669_v49, %v7509_v48  ;;  %v3398_v10 = vmul.f32 %v3397_v2, %v3373_v37  ;;  %v3411_v55 = vmul.f32 %v3410_v40, %v7299_v1  ;;  %v3546_v34 = vsub.f32 1.0, %v3545_v7 }
 0x8e9   : > { %v4622_v33 = vclamps-f32 %v3638_v51, 1.0  ;;  %v3427_v12 = vmul.f32 %v7570_v5, %v3426_v28  ;;  %v3532_v31 = vadd.f32 1.1283791, %v3531_v17  ;;  %v3555_v56 = vand.u32 2147483648, %v7573_v18 }
 0x8ea   : > { %v3582_v15 = vmul.f32 %v3581_v57, %v7535_v42  ;;  %3954 = vmatmul.bf16.gmra.mxu1 %v3677_v11  ;;  %v3547_v19 = vmul.f32 %v5187_v22, %v3546_v34  ;;  %vm3550_vm5 = vweird.f32 %v5187_v22  ;;  %v3553_v26 = vand.u32 2147483647, %v7573_v18 }
 0x8eb   : > { %v3656_v63 = vadd.f32 1.0, %v4622_v33  ;;  %v3668_v48 = vmul.f32 %v3652_v45, %v7263_v3  ;;  %v3435_v38 = vand.u32 2147483648, %v7533_v53  ;;  %v3569_v1 = vmul.f32 %v3568_v14, %v7535_v42 }
 0x8ec   : > { %v3583_v58 = vadd.f32 1.0, %v3582_v15  ;;  %v4616_v60 = vclamps-f32 %v3398_v10, 1.0  ;;  %v3548_v32 = vadd.f32 %v5187_v22, %v3547_v19  ;;  %vm3549_vm6 = vweird.f32 %v7573_v18 }
 0x8ed   : > { %v3672_v13 = vmul.f32 %v3656_v63, %v2984_v0  ;;  %v3428_v50 = vadd.f32 %v7570_v5, %v3427_v12  ;;  %vm3430_vm7 = vweird.f32 %v7570_v5  ;;  %vm3551_vm8 = vmor %vm3549_vm6, %vm3550_vm5  ;;  %v3556_v27 = vor.u32 1.1754944e-38, %v3555_v56 }
 0x8ee   : > { %5188 = vrcp.f32 %v3583_v58  ;;  %v3533_v54 = vmul.f32 %v3532_v31, %v7408_v16  ;;  %v3552_v3 = vsel %vm3551_vm8, %v5187_v22, %v3548_v32  ;;  %vm3554_vm9 = vcmp.eq.f32.partialorder %v3553_v26, 8.507059e+37 }
 0x8ef   : > { %v3680_v21 = vpack.c.bf16 %v3672_v13, %v3668_v48  ;;  %vm3429_vm10 = vweird.f32 %v7533_v53  ;;  %v3433_v40 = vand.u32 2147483647, %v7533_v53  ;;  %v3557_v41 = vsel %vm3554_vm9, %v3556_v27, %v3552_v3 }
 0x8f0   : > { %v3570_v59 = vadd.f32 0.18741608, %v3569_v1  ;;  %vm3431_vm11 = vmor %vm3429_vm10, %vm3430_vm7  ;;  %v3558_v18 = vmul.f32 %v3557_v41, %v3533_v54  ;;  %v3412_v36 = vadd.f32 1.1283791, %v3411_v55  ;;  %v3650_v23 = vadd.f32 1.0, %v4616_v60 }
 0x8f1   : > { %4011 = vmatmul.bf16.gmra.mxu0 %v3680_v21  ;;  %v3432_v20 = vsel %vm3431_vm11, %v7570_v5, %v3428_v50  ;;  %v3436_v6 = vor.u32 1.1754944e-38, %v3435_v38  ;;  %v2978_v16 = vmul.f32 0.5, %v7154_v30  ;;  %vm3434_vm12 = vcmp.eq.f32.partialorder %v3433_v40, 8.507059e+37 }
 0x8f2   : > { %v4620_v46 = vclamps-f32 %v3558_v18, 1.0  ;;  %v3571_v47 = vmul.f32 %v3570_v59, %v7535_v42  ;;  %v2982_v53 = vmul.f32 0.5, %v7381_v35  ;;  %v3413_v22 = vmul.f32 %v3412_v36, %v7255_v39 }
 0x8f3   : > { %v3437_v49 = vsel %vm3434_vm12, %v3436_v6, %v3432_v20  ;;  %v3666_v2 = vmul.f32 %v3650_v23, %v2978_v16  ;;  %v3595_v37 = vand.u32 2147483648, %v3583_v58  ;;  %v3593_v51 = vand.u32 2147483647, %v3583_v58 }
 0x8f4   : > { %v5189_v24 = vpop.eup %5188  ;;  %v3654_v62 = vadd.f32 1.0, %v4620_v46  ;;  %v3438_v5 = vmul.f32 %v3437_v49, %v3413_v22  ;;  %v3572_v17 = vadd.f32 1.1283791, %v3571_v47  ;;  %vm3589_vm14 = vweird.f32 %v3583_v58 }
 0x8f5   : > { %v3585_v61 = vmul.f32 %v5189_v24, %v3583_v58  ;;  %vm3590_vm13 = vweird.f32 %v5189_v24  ;;  %v3596_v42 = vor.u32 1.1754944e-38, %v3595_v37  ;;  %vm3594_vm0 = vcmp.eq.f32.partialorder %v3593_v51, 8.507059e+37 }
 0x8f6   : > { %v3670_v28 = vmul.f32 %v3654_v62, %v2982_v53  ;;  %vm3591_vm15 = vmor %vm3589_vm14, %vm3590_vm13  ;;  %v4617_v35 = vclamps-f32 %v3438_v5, 1.0  ;;  %v3573_v45 = vmul.f32 %v3572_v17, %v7506_v29  ;;  %v2979_v55 = vmul.f32 0.5, %v7232_v43  ;;  %v5011_v29 = vld [vmem:[%s793_s27] ss:$0 sm:$0xff]  ;;  %s4037_s27 = sld [smem:[%s4883_s4 + %s7831_s23]] }
 0x8f7   : > { %v3586_v44 = vsub.f32 1.0, %v3585_v61  ;;  %v2983_v33 = vmul.f32 0.5, %v7477_v25 }
 0x8f8   : > { %v3678_v30 = vpack.c.bf16 %v3670_v28, %v3666_v2  ;;  %v3651_v11 = vadd.f32 1.0, %v4617_v35 }
 0x8f9   : > { %v3587_v0 = vmul.f32 %v5189_v24, %v3586_v44 }
 0x8fa   : > { %3973 = vmatmul.bf16.gmra.mxu2 %v3678_v30  ;;  %v3667_v12 = vmul.f32 %v3651_v11, %v2979_v55 }
 0x8fb   : > { %v3588_v7 = vadd.f32 %v5189_v24, %v3587_v0 }
 0x8fc   : > { %s4855_s20 = sshll.u32 %s4037_s27, 5 }
 0x8fd   : > { %v3592_v39 = vsel %vm3591_vm15, %v5189_v24, %v3588_v7  ;;  %s4042_s23 = scalar_lea.hbm %s7818_s19, %s4855_s20 }
 0x8fe   : > { %v3597_v14 = vsel %vm3594_vm0, %v3596_v42, %v3592_v39  ;;  %s4045_s26 = sshll.u32 %s4042_s23, 4  ;;  %s4046_s26 = int_to_ptr.hbm [resolvable:$true] %s4045_s26 }
 0x8ff   : > { %v3598_v57 = vmul.f32 %v3597_v14, %v3573_v45  ;;  %s5516_s21 = sshra.s32 %s4046_s26, 4  ;;  %s5517_s21 = int_to_ptr.hbm [resolvable:$true] %s5516_s21 }
 0x900   : > { %s5518_s28 = scalar_lea.hbm %s5517_s21, 32  ;;  %p5523_p13 = scmp.lt.s32.totalorder %s5517_s21, %s7819_s29 }
 0x901   : > { %v4621_v10 = vclamps-f32 %v3598_v57, 1.0  ;;  %p5519_p10 = scmp.ne.s32.totalorder %s5517_s21, %s5518_s28  ;;  %p5524_p3 = scmp.lt.s32.totalorder %s5522_s5, %s5518_s28 }
 0x903   : > { %v3655_v34 = vadd.f32 1.0, %v4621_v10  ;;  %p5520_p11 = pnand %p5519_p10, %p5773_p12  ;;  %p5525_p7 = por %p5524_p3, %p5523_p13 }
 0x905   : > { %v3671_v31 = vmul.f32 %v3655_v34, %v2983_v33  ;;  %p5521_p8 = pneg %p5520_p11 }
 0x907   : > { %v3679_v56 = vpack.c.bf16 %v3671_v31, %v3667_v12  ;;  %p5526_p5 = pnand %p5525_p7, %p5521_p8 }
 0x909   : > { %3992 = vmatmul.bf16.gmra.mxu3 %v3679_v56 }
 0x946   : > { %v3950_v15 = vpop.f32.mrf.mxu1 }
 0x947   : > { %v3951_v63 = vadd.f32 %v5011_v29, %v3950_v15  ;;  %v4007_v38 = vpop.f32.mrf.mxu0 }
 0x94e   : > { %v3952_v25 = vpop.f32.mrf.mxu1 }
 0x94f   : > { %v3953_v58 = vadd.f32 %v5011_v29, %v3952_v25  ;;  %v4009_v54 = vpop.f32.mrf.mxu0 }
 0x954   : > { %v3969_v19 = vpop.f32.mrf.mxu2 }
 0x955   : > { %v3988_v26 = vpop.f32.mrf.mxu3  ;;  %v3970_v48 = vadd.f32 %v3969_v19, %v3951_v63 }
 0x957   : > { %v3989_v43 = vadd.f32 %v3988_v26, %v3970_v48 }
 0x959   : > { %v4008_v1 = vadd.f32 %v4007_v38, %v3989_v43 }
 0x95b   : > { %v4017_v60 = vadd.f32 %v4008_v1, %v6682_v8 }
 0x95c   : > { %v3971_v13 = vpop.f32.mrf.mxu2 }
 0x95d   : > { %4021 = vst [vmem:[#allocation2 + $0x10] sm:$0xff] %v4017_v60  ;;  %v3972_v32 = vadd.f32 %v3971_v13, %v3953_v58  ;;  %v3990_v50 = vpop.f32.mrf.mxu3 }
 0x95e   : > { %4025 = vst [vmem:[%s6027_s14] sm:$0xff] %v4017_v60 }
 0x95f   : > { %v3991_v27 = vadd.f32 %v3990_v50, %v3972_v32 }
 0x961   : > { %v4010_v3 = vadd.f32 %v4009_v54, %v3991_v27 }
 0x963   : > { %v4018_v21 = vadd.f32 %v4010_v3, %v6686_v4 }
 0x965   : > { %4022 = vst [vmem:[#allocation2] sm:$0xff] %v4018_v21 }
 0x966   : > { %4026 = vst [vmem:[%s6027_s14 + $0x8] sm:$0xff] %v4018_v21 }
 0x967   : > { %v3955_v40 = vpop.f32.mrf.mxu1 }
 0x968   : > { %v3956_v8 = vadd.f32 %v5011_v29, %v3955_v40 }
 0x96e   : > { %v4012_v18 = vpop.f32.mrf.mxu0 }
 0x96f   : > { %v3957_v36 = vpop.f32.mrf.mxu1 }
 0x970   : > { %v3958_v46 = vadd.f32 %v5011_v29, %v3957_v36 }
 0x976   : > { %v4014_v53 = vpop.f32.mrf.mxu0 }
 0x97d   : > { %v3974_v41 = vpop.f32.mrf.mxu2 }
 0x97e   : > { %v3975_v59 = vadd.f32 %v3974_v41, %v3956_v8 }
 0x985   : > { %v3976_v6 = vpop.f32.mrf.mxu2 }
 0x986   : > { %v3977_v16 = vadd.f32 %v3976_v6, %v3958_v46 }
 0x98c   : > { %v3993_v20 = vpop.f32.mrf.mxu3 }
 0x98d   : > { %v3994_v23 = vadd.f32 %v3993_v20, %v3975_v59 }
 0x98f   : > { %v4013_v4 = vadd.f32 %v4012_v18, %v3994_v23 }
 0x991   : > { %v4019_v24 = vadd.f32 %v4013_v4, %v6690_v52 }
 0x993   : > { %4023 = vst [vmem:[#allocation2 + $0x18] sm:$0xff] %v4019_v24 }
 0x994   : > { %4027 = vst [vmem:[%s6027_s14 + $0x10] sm:$0xff] %v4019_v24  ;;  %v3995_v47 = vpop.f32.mrf.mxu3 }
 0x995   : > { %v3996_v49 = vadd.f32 %v3995_v47, %v3977_v16 }
 0x997   : > { %v4015_v62 = vadd.f32 %v4014_v53, %v3996_v49 }
 0x999   : > { %v4020_v61 = vadd.f32 %v4015_v62, %v6694_v9 }
 0x99b   : > { %4024 = vst [vmem:[#allocation2 + $0x8] sm:$0xff] %v4020_v61 }
 0x99c   : > { %4028 = vst [vmem:[%s6027_s14 + $0x18] sm:$0xff] %v4020_v61 }
 0x99d   : > { %5529 = shalt.err (!%p5526_p5)
}
 0x99e   : > { %s5623_s14 = smov 128   ;;  %s5624_s2 = smov 8  }
 0x99f   : > { %4885 = dma.vmem_to_hbm [thread:$0]  (%p5773_p12), %s4044_s3, 512, %s4046_s26, %s4030_s30, %s5623_s14, %s5623_s14, %s5624_s2  }
 0x9a0 PF: > { %s7821_s13 = sld [smem:[#allocation26_spill]]  ;;  %p4928_p9 = scmp.ge.s32.totalorder %s5602_s22, 2 }
 0x9a2   : > { %p4920_p4 = pnand %p4928_p9, %p5778_p0 }
 0x9a4   : > { %p4921_p1 = pneg %p4920_p4 }
 0x9a6   : > { %s4060_s4 = sand.u32 1, %s7821_s13  }
 0x9a7   : > { %s4061_s27 = scalar_lea.sflag [#allocation8], %s4060_s4 }
 0x9a8   : > { %5573 = dma.done.wait (%p4921_p1), %s4061_s27, 512  }
 0x9a9   : > { %5575 = vsyncadd (%p4921_p1), %s4061_s27, 4294966784  ;;  %s7823_s22 = sld [smem:[#allocation31_spill]] }
 0x9aa   : > { %s7824_s17 = sld [smem:[#allocation27_spill]] }
 0x9ab   : > { %s7825_s18 = sld [smem:[#allocation28_spill]] }
 0x9ac   : > { %s7826_s19 = sld [smem:[#allocation36_spill]] }
 0x9ad   : > { %s7827_s20 = sld [smem:[#allocation29_spill]] }
 0x9ae   : > { %s7828_s21 = sld [smem:[#allocation30_spill]] }
 0x9af   : > { %s7829_s0 = sld [smem:[#allocation32_spill]]  ;;  %p34_p12 = scmp.ge.s32.totalorder %s7823_s22, 6  }
 0x9b1   :  { %36 = sbr.rel (!%p34_p12) target bundleno = 21 (0x15), region = 214 }
 0x9b6   :  { %4067 = vsyncpa [#allocation7], 1 }
 0x9b7   :  { %4069 = vsyncpa [#allocation7 + $0x1], 1 }
 0x9b8   :  { %4070 = vsyncpa [#allocation10], 1 }
 0x9b9   :  { %4071 = vsyncpa [#allocation8], 1 }
 0x9ba   :  { %4073 = vsyncpa [#allocation8 + $0x1], 1 }

</bundles_post_ra>
